<compile_context>
chip_gen: v5e
topology: v5e:2x2
jax: 0.10.0
libtpu: 0.0.40
codegen_flags: <defaults>
</compile_context>

<pallas_src>
import jax
import jax.numpy as jnp
from jax.experimental import pallas as pl
from jax.experimental.pallas import tpu as pltpu


NEG_SLOPE = 0.01      # PyTorch nn.LeakyReLU default
LANE = 128
BF16_SUBLANE = 16


def _leaky_relu(v):
    return jnp.where(v >= 0, v, NEG_SLOPE * v)


def _round_up(n, m):
    return ((n + m - 1) // m) * m


# ----------------------------------------------------------------------------
# Fused kernel: one batch tile runs the whole network.  Weights/biases are
# grid-invariant VMEM-resident blocks; activations are carried bf16, all
# matmuls accumulate in f32 on the MXU, bias adds are f32.
# ----------------------------------------------------------------------------
def net_kernel(x_ref, w_in_ref, b_in_ref,
               rw1_ref, rb1_ref, rw2_ref, rb2_ref, rw3_ref, rb3_ref,
               ws_ref, bs_ref, wo_ref, bo_ref,
               out_ref, shp_ref):
    def lin(v_bf16, w_bf16, b_f32):
        return jnp.dot(v_bf16, w_bf16, preferred_element_type=jnp.float32) + b_f32

    x = x_ref[...]                                                # (TB, Kp) bf16
    h = _leaky_relu(lin(x, w_in_ref[...], b_in_ref[...])).astype(jnp.bfloat16)

    num_res = rw1_ref.shape[0]
    for l in range(num_res):        # static unroll; resblock weights resident
        t = _leaky_relu(lin(h, rw1_ref[l], rb1_ref[l])).astype(jnp.bfloat16)
        t = _leaky_relu(lin(t, rw2_ref[l], rb2_ref[l])).astype(jnp.bfloat16)
        t = lin(t, rw3_ref[l], rb3_ref[l])                        # (TB, Hp) f32
        # ResBlock2 inside Net has in == out == hidden -> identity shortcut:
        # plain residual add, no eye-matrix matmul.
        h = jnp.maximum(t + h.astype(jnp.float32), 0.0).astype(jnp.bfloat16)

    # Second-to-last layer of Net: the LeakyReLU output is returned as
    # `shapelets_logit` AND fed to the final Linear.
    s = _leaky_relu(lin(h, ws_ref[...], bs_ref[...]))             # (TB, Sp) f32
    shp_ref[...] = s.astype(shp_ref.dtype)
    out_ref[...] = lin(s.astype(jnp.bfloat16), wo_ref[...],
                       bo_ref[...]).astype(out_ref.dtype)


# ----------------------------------------------------------------------------
# Parameter init (mirrors the PyTorch module: xavier_normal_ weights,
# default-uniform biases), stored in logical (in, out) layout, f32.
# ----------------------------------------------------------------------------
def init_net_params(key, k_in, hidden, mid, shaplet_out, out_size, num_res):
    def xavier(k, fi, fo):
        std = (2.0 / (fi + fo)) ** 0.5
        return std * jax.random.normal(k, (fi, fo), dtype=jnp.float32)

    def bias(k, fi, fo):
        bound = 1.0 / (fi ** 0.5)
        return jax.random.uniform(k, (fo,), dtype=jnp.float32,
                                  minval=-bound, maxval=bound)

    keys = iter(jax.random.split(key, 6 + 6 * num_res))
    p = {
        "w_in": xavier(next(keys), k_in, hidden),
        "b_in": bias(next(keys), k_in, hidden),
        "res": [],
    }
    for _ in range(num_res):
        p["res"].append({
            "w1": xavier(next(keys), hidden, mid), "b1": bias(next(keys), hidden, mid),
            "w2": xavier(next(keys), mid, mid),    "b2": bias(next(keys), mid, mid),
            "w3": xavier(next(keys), mid, hidden), "b3": bias(next(keys), mid, hidden),
        })
    p["w_s"] = xavier(next(keys), hidden, shaplet_out)
    p["b_s"] = bias(next(keys), hidden, shaplet_out)
    p["w_o"] = xavier(next(keys), shaplet_out, out_size)
    p["b_o"] = bias(next(keys), shaplet_out, out_size)
    return p


# ----------------------------------------------------------------------------
# Pack params for the kernel: zero-pad output feature dims to multiples of
# 128 lanes, pad the first-layer contraction dim only to 16 (bf16 sublane),
# cast weights to bf16 once, stack the resblock weights along a layer axis.
# ----------------------------------------------------------------------------
def pack_params(params):
    def padw(w, row_mult=LANE):
        fi, fo = w.shape
        wp = jnp.pad(w, ((0, _round_up(fi, row_mult) - fi),
                         (0, _round_up(fo, LANE) - fo)))
        return wp.astype(jnp.bfloat16)

    def padb(b):
        fo = b.shape[-1]
        bp = jnp.pad(b.reshape(1, fo), ((0, 0), (0, _round_up(fo, LANE) - fo)))
        return bp.astype(jnp.float32)

    res = params["res"]
    assert len(res) >= 1, "pack_params expects at least one ResBlock2 layer"
    return {
        # K is only padded to 16: a 16-deep contraction costs the MXU the same
        # as 128, and it keeps x's HBM stream ~8x smaller.
        "w_in": padw(params["w_in"], row_mult=BF16_SUBLANE),
        "b_in": padb(params["b_in"]),
        "rw1": jnp.stack([padw(r["w1"]) for r in res]),
        "rb1": jnp.stack([padb(r["b1"]) for r in res]),
        "rw2": jnp.stack([padw(r["w2"]) for r in res]),
        "rb2": jnp.stack([padb(r["b2"]) for r in res]),
        "rw3": jnp.stack([padw(r["w3"]) for r in res]),
        "rb3": jnp.stack([padb(r["b3"]) for r in res]),
        "w_s": padw(params["w_s"]), "b_s": padb(params["b_s"]),
        "w_o": padw(params["w_o"]), "b_o": padb(params["b_o"]),
    }


# ----------------------------------------------------------------------------
# Wrapper helpers
# ----------------------------------------------------------------------------
def _resident_spec(arr, buffer_count):
    """Full-extent, grid-invariant block (weights stay resident in VMEM).
    Closure bound via a default arg — no late-binding-lambda bug."""
    zero = (0,) * arr.ndim
    if buffer_count is None:
        return pl.BlockSpec(arr.shape, lambda i, _z=zero: _z)
    return pl.BlockSpec(arr.shape, lambda i, _z=zero: _z,
                        pipeline_mode=pl.Buffered(buffer_count=buffer_count))


def _pick_batch_tile(batch, block_b=None, *, max_tb=512, min_steps=2):
    """Largest bf16-aligned batch tile that still leaves >= min_steps grid
    steps (keeps both v7x TensorCores busy); bigger tiles amortize per-step
    overhead on v5e/v6e."""
    b16 = _round_up(max(batch, 1), BF16_SUBLANE)
    if block_b is not None:
        tb = min(_round_up(block_b, BF16_SUBLANE), b16)
    else:
        tb = min(max_tb, b16)
        while b16 // tb < min_steps and tb > BF16_SUBLANE:
            tb = _round_up(tb // 2, BF16_SUBLANE)
    return tb, _round_up(batch, tb)


# ----------------------------------------------------------------------------
# Wrapper: batch-tiled pallas_call; weights are grid-invariant resident blocks.
# ----------------------------------------------------------------------------
def net_forward(x, packed, *, out_features, shaplet_features, block_b=None):
    B, K = x.shape
    Kp, Hp = packed["w_in"].shape
    Sp = packed["w_s"].shape[1]
    Op = packed["w_o"].shape[1]
    assert K <= Kp

    TB, Bp = _pick_batch_tile(B, block_b)
    assert TB % BF16_SUBLANE == 0 and Bp % TB == 0

    # x streamed in bf16 (halves the only per-tile HBM->VMEM stream).
    xp = jnp.pad(x.astype(jnp.bfloat16), ((0, Bp - B), (0, Kp - K)))

    weight_order = ("w_in", "b_in", "rw1", "rb1", "rw2", "rb2",
                    "rw3", "rb3", "w_s", "b_s", "w_o", "b_o")
    weights = tuple(packed[k] for k in weight_order)

    # VMEM budget from actual buffer sizes (weights, double-buffered streams,
    # activation headroom) instead of a blanket 32 MiB reservation.
    weight_bytes = sum(int(w.size) * w.dtype.itemsize for w in weights)
    stream_bytes = TB * (Kp * 2 + Op * 4 + Sp * 4)
    act_bytes = TB * max(Hp, Sp, Op) * 4
    vmem_limit = int(min(64 << 20,
                         max(8 << 20,
                             2 * weight_bytes + 2 * stream_bytes
                             + 24 * act_bytes + (2 << 20))))

    out_shape = (jax.ShapeDtypeStruct((Bp, Op), jnp.float32),
                 jax.ShapeDtypeStruct((Bp, Sp), jnp.float32))
    out_specs = (pl.BlockSpec((TB, Op), lambda i: (i, 0)),
                 pl.BlockSpec((TB, Sp), lambda i: (i, 0)))

    def call(weight_buffer_count):
        in_specs = [pl.BlockSpec((TB, Kp), lambda i: (i, 0))]
        in_specs += [_resident_spec(w, weight_buffer_count) for w in weights]
        return pl.pallas_call(
            net_kernel,
            grid=(Bp // TB,),
            in_specs=in_specs,
            out_specs=out_specs,
            out_shape=out_shape,
            compiler_params=pltpu.CompilerParams(
                dimension_semantics=("parallel",),   # batch axis across TCs
                vmem_limit_bytes=vmem_limit),
        )(xp, *weights)

    try:
        # Grid-invariant weights: single buffer (saves VMEM on v7x when the
        # model grows; no perf cost since they are DMA'd once).
        out_p, shp_p = call(1)
    except Exception:
        # This JAX build rejects Buffered(1); fall back to default buffering.
        out_p, shp_p = call(None)

    # Slice away batch / lane padding outside the kernel (exact: padded lanes
    # are provably zero through the whole chain since leaky_relu(0) == 0).
    return out_p[:B, :out_features], shp_p[:B, :shaplet_features]


# ----------------------------------------------------------------------------
# Plain-JAX reference mirroring the kernel math exactly (bf16 inputs and
# bf16-carried activations, f32 MXU accumulation and bias adds).
# ----------------------------------------------------------------------------
def reference_forward(x, params):
    def lin(v, w, b):
        return jnp.dot(v, w.astype(jnp.bfloat16),
                       preferred_element_type=jnp.float32) + b

    h = _leaky_relu(lin(x.astype(jnp.bfloat16), params["w_in"],
                        params["b_in"])).astype(jnp.bfloat16)
    for r in params["res"]:
        t = _leaky_relu(lin(h, r["w1"], r["b1"])).astype(jnp.bfloat16)
        t = _leaky_relu(lin(t, r["w2"], r["b2"])).astype(jnp.bfloat16)
        t = lin(t, r["w3"], r["b3"])
        h = jnp.maximum(t + h.astype(jnp.float32), 0.0).astype(jnp.bfloat16)
    s = _leaky_relu(lin(h, params["w_s"], params["b_s"]))
    out = lin(s.astype(jnp.bfloat16), params["w_o"], params["b_o"])
    return out, s


if __name__ == "__main__":
    key = jax.random.PRNGKey(0)
    k_x, k_p = jax.random.split(key)

    # small but lane/tile friendly example config:
    #   cfg.timeseries.K=12, hidden_size=128, num_mlp_layers=2 (middle=16 is
    #   hard-coded in Net), shaplet_outsize=40, output_size=6, batch=256
    batch, K, hidden, mid, shaplet, out_size, num_res = 256, 12, 128, 16, 40, 6, 2

    x = jax.random.normal(k_x, (batch, K), dtype=jnp.float32)
    params = init_net_params(k_p, K, hidden, mid, shaplet, out_size, num_res)
    packed = pack_params(params)

    out, shp = net_forward(x, packed, out_features=out_size,
                           shaplet_features=shaplet)
    out, shp = jax.block_until_ready((out, shp))

    ref_out, ref_shp = reference_forward(x, params)
    assert out.shape == (batch, out_size)
    assert shp.shape == (batch, shaplet)
    assert jnp.allclose(out, ref_out, atol=2e-3, rtol=2e-3), "final output mismatch"
    assert jnp.allclose(shp, ref_shp, atol=2e-3, rtol=2e-3), "shapelets_logit mismatch"

    print("KERNEL_OK")
</pallas_src>

<mosaic_0001>
module attributes {stable_mosaic.version = 11 : i64} {
  func.func @net_kernel(%arg0: i32, %arg1: memref<128x16xbf16, #tpu.memory_space<vmem>>, %arg2: memref<16x128xbf16, #tpu.memory_space<vmem>>, %arg3: memref<1x128xf32, #tpu.memory_space<vmem>>, %arg4: memref<2x128x128xbf16, #tpu.memory_space<vmem>>, %arg5: memref<2x1x128xf32, #tpu.memory_space<vmem>>, %arg6: memref<2x128x128xbf16, #tpu.memory_space<vmem>>, %arg7: memref<2x1x128xf32, #tpu.memory_space<vmem>>, %arg8: memref<2x128x128xbf16, #tpu.memory_space<vmem>>, %arg9: memref<2x1x128xf32, #tpu.memory_space<vmem>>, %arg10: memref<128x128xbf16, #tpu.memory_space<vmem>>, %arg11: memref<1x128xf32, #tpu.memory_space<vmem>>, %arg12: memref<128x128xbf16, #tpu.memory_space<vmem>>, %arg13: memref<1x128xf32, #tpu.memory_space<vmem>>, %arg14: memref<128x128xf32, #tpu.memory_space<vmem>>, %arg15: memref<128x128xf32, #tpu.memory_space<vmem>>) attributes {dimension_semantics = [#tpu.dimension_semantics<parallel>], iteration_bounds = array<i64: 2>, scalar_prefetch = 0 : i64, scratch_operands = 0 : i64, tpu.core_type = #tpu.core_type<tc>, window_params = [{transform_indices = @transform_0, window_bounds = array<i64: 128, 16>}, {pipeline_mode = #tpu.pipeline_mode<synchronous>, transform_indices = @transform_1, window_bounds = array<i64: 16, 128>}, {pipeline_mode = #tpu.pipeline_mode<synchronous>, transform_indices = @transform_2, window_bounds = array<i64: 1, 128>}, {pipeline_mode = #tpu.pipeline_mode<synchronous>, transform_indices = @transform_3, window_bounds = array<i64: 2, 128, 128>}, {pipeline_mode = #tpu.pipeline_mode<synchronous>, transform_indices = @transform_4, window_bounds = array<i64: 2, 1, 128>}, {pipeline_mode = #tpu.pipeline_mode<synchronous>, transform_indices = @transform_5, window_bounds = array<i64: 2, 128, 128>}, {pipeline_mode = #tpu.pipeline_mode<synchronous>, transform_indices = @transform_6, window_bounds = array<i64: 2, 1, 128>}, {pipeline_mode = #tpu.pipeline_mode<synchronous>, transform_indices = @transform_7, window_bounds = array<i64: 2, 128, 128>}, {pipeline_mode = #tpu.pipeline_mode<synchronous>, transform_indices = @transform_8, window_bounds = array<i64: 2, 1, 128>}, {pipeline_mode = #tpu.pipeline_mode<synchronous>, transform_indices = @transform_9, window_bounds = array<i64: 128, 128>}, {pipeline_mode = #tpu.pipeline_mode<synchronous>, transform_indices = @transform_10, window_bounds = array<i64: 1, 128>}, {pipeline_mode = #tpu.pipeline_mode<synchronous>, transform_indices = @transform_11, window_bounds = array<i64: 128, 128>}, {pipeline_mode = #tpu.pipeline_mode<synchronous>, transform_indices = @transform_12, window_bounds = array<i64: 1, 128>}, {transform_indices = @transform_13, window_bounds = array<i64: 128, 128>}, {transform_indices = @transform_14, window_bounds = array<i64: 128, 128>}]} {
    %c0 = arith.constant 0 : index
    %c0_0 = arith.constant 0 : index
    %0 = vector.load %arg1[%c0, %c0_0] : memref<128x16xbf16, #tpu.memory_space<vmem>>, vector<128x16xbf16>
    %c0_1 = arith.constant 0 : index
    %c0_2 = arith.constant 0 : index
    %1 = vector.load %arg2[%c0_1, %c0_2] : memref<16x128xbf16, #tpu.memory_space<vmem>>, vector<16x128xbf16>
    %c0_3 = arith.constant 0 : index
    %c0_4 = arith.constant 0 : index
    %2 = vector.load %arg3[%c0_3, %c0_4] : memref<1x128xf32, #tpu.memory_space<vmem>>, vector<1x128xf32>
    %cst = arith.constant dense<0.000000e+00> : vector<128x128xf32>
    %3 = tpu.matmul %0, %1, %cst {dimension_numbers = #tpu.dot_dimension_numbers<[1], [0], [0], [1], [0, 0, 1, 1], [], []>} : vector<128x16xbf16>, vector<16x128xbf16>, vector<128x128xf32> -> vector<128x128xf32>
    %4 = vector.broadcast %2 : vector<1x128xf32> to vector<128x128xf32>
    %5 = arith.addf %3, %4 : vector<128x128xf32>
    %cst_5 = arith.constant 0.000000e+00 : f32
    %6 = vector.broadcast %cst_5 : f32 to vector<128x128xf32>
    %7 = arith.cmpf oge, %5, %6 : vector<128x128xf32>
    %cst_6 = arith.constant 0.00999999977 : f32
    %8 = vector.broadcast %cst_6 : f32 to vector<128x128xf32>
    %9 = arith.mulf %8, %5 : vector<128x128xf32>
    %10 = arith.select %7, %5, %9 : vector<128x128xi1>, vector<128x128xf32>
    %11 = arith.truncf %10 : vector<128x128xf32> to vector<128x128xbf16>
    %c0_7 = arith.constant 0 : index
    %c0_8 = arith.constant 0 : index
    %c0_9 = arith.constant 0 : index
    %12 = vector.load %arg4[%c0_7, %c0_8, %c0_9] : memref<2x128x128xbf16, #tpu.memory_space<vmem>>, vector<1x128x128xbf16>
    %13 = vector.shape_cast %12 : vector<1x128x128xbf16> to vector<128x128xbf16>
    %c0_10 = arith.constant 0 : index
    %c0_11 = arith.constant 0 : index
    %c0_12 = arith.constant 0 : index
    %14 = vector.load %arg5[%c0_10, %c0_11, %c0_12] : memref<2x1x128xf32, #tpu.memory_space<vmem>>, vector<1x1x128xf32>
    %15 = vector.shape_cast %14 : vector<1x1x128xf32> to vector<1x128xf32>
    %cst_13 = arith.constant dense<0.000000e+00> : vector<128x128xf32>
    %16 = tpu.matmul %11, %13, %cst_13 {dimension_numbers = #tpu.dot_dimension_numbers<[1], [0], [0], [1], [0, 0, 1, 1], [], []>} : vector<128x128xbf16>, vector<128x128xbf16>, vector<128x128xf32> -> vector<128x128xf32>
    %17 = vector.broadcast %15 : vector<1x128xf32> to vector<128x128xf32>
    %18 = arith.addf %16, %17 : vector<128x128xf32>
    %cst_14 = arith.constant 0.000000e+00 : f32
    %19 = vector.broadcast %cst_14 : f32 to vector<128x128xf32>
    %20 = arith.cmpf oge, %18, %19 : vector<128x128xf32>
    %cst_15 = arith.constant 0.00999999977 : f32
    %21 = vector.broadcast %cst_15 : f32 to vector<128x128xf32>
    %22 = arith.mulf %21, %18 : vector<128x128xf32>
    %23 = arith.select %20, %18, %22 : vector<128x128xi1>, vector<128x128xf32>
    %24 = arith.truncf %23 : vector<128x128xf32> to vector<128x128xbf16>
    %c0_16 = arith.constant 0 : index
    %c0_17 = arith.constant 0 : index
    %c0_18 = arith.constant 0 : index
    %25 = vector.load %arg6[%c0_16, %c0_17, %c0_18] : memref<2x128x128xbf16, #tpu.memory_space<vmem>>, vector<1x128x128xbf16>
    %26 = vector.shape_cast %25 : vector<1x128x128xbf16> to vector<128x128xbf16>
    %c0_19 = arith.constant 0 : index
    %c0_20 = arith.constant 0 : index
    %c0_21 = arith.constant 0 : index
    %27 = vector.load %arg7[%c0_19, %c0_20, %c0_21] : memref<2x1x128xf32, #tpu.memory_space<vmem>>, vector<1x1x128xf32>
    %28 = vector.shape_cast %27 : vector<1x1x128xf32> to vector<1x128xf32>
    %cst_22 = arith.constant dense<0.000000e+00> : vector<128x128xf32>
    %29 = tpu.matmul %24, %26, %cst_22 {dimension_numbers = #tpu.dot_dimension_numbers<[1], [0], [0], [1], [0, 0, 1, 1], [], []>} : vector<128x128xbf16>, vector<128x128xbf16>, vector<128x128xf32> -> vector<128x128xf32>
    %30 = vector.broadcast %28 : vector<1x128xf32> to vector<128x128xf32>
    %31 = arith.addf %29, %30 : vector<128x128xf32>
    %cst_23 = arith.constant 0.000000e+00 : f32
    %32 = vector.broadcast %cst_23 : f32 to vector<128x128xf32>
    %33 = arith.cmpf oge, %31, %32 : vector<128x128xf32>
    %cst_24 = arith.constant 0.00999999977 : f32
    %34 = vector.broadcast %cst_24 : f32 to vector<128x128xf32>
    %35 = arith.mulf %34, %31 : vector<128x128xf32>
    %36 = arith.select %33, %31, %35 : vector<128x128xi1>, vector<128x128xf32>
    %37 = arith.truncf %36 : vector<128x128xf32> to vector<128x128xbf16>
    %c0_25 = arith.constant 0 : index
    %c0_26 = arith.constant 0 : index
    %c0_27 = arith.constant 0 : index
    %38 = vector.load %arg8[%c0_25, %c0_26, %c0_27] : memref<2x128x128xbf16, #tpu.memory_space<vmem>>, vector<1x128x128xbf16>
    %39 = vector.shape_cast %38 : vector<1x128x128xbf16> to vector<128x128xbf16>
    %c0_28 = arith.constant 0 : index
    %c0_29 = arith.constant 0 : index
    %c0_30 = arith.constant 0 : index
    %40 = vector.load %arg9[%c0_28, %c0_29, %c0_30] : memref<2x1x128xf32, #tpu.memory_space<vmem>>, vector<1x1x128xf32>
    %41 = vector.shape_cast %40 : vector<1x1x128xf32> to vector<1x128xf32>
    %cst_31 = arith.constant dense<0.000000e+00> : vector<128x128xf32>
    %42 = tpu.matmul %37, %39, %cst_31 {dimension_numbers = #tpu.dot_dimension_numbers<[1], [0], [0], [1], [0, 0, 1, 1], [], []>} : vector<128x128xbf16>, vector<128x128xbf16>, vector<128x128xf32> -> vector<128x128xf32>
    %43 = vector.broadcast %41 : vector<1x128xf32> to vector<128x128xf32>
    %44 = arith.addf %42, %43 : vector<128x128xf32>
    %45 = arith.extf %11 : vector<128x128xbf16> to vector<128x128xf32>
    %46 = arith.addf %44, %45 : vector<128x128xf32>
    %cst_32 = arith.constant 0.000000e+00 : f32
    %47 = vector.broadcast %cst_32 : f32 to vector<128x128xf32>
    %48 = arith.maximumf %46, %47 : vector<128x128xf32>
    %49 = arith.truncf %48 : vector<128x128xf32> to vector<128x128xbf16>
    %c1 = arith.constant 1 : index
    %c0_33 = arith.constant 0 : index
    %c0_34 = arith.constant 0 : index
    %50 = vector.load %arg4[%c1, %c0_33, %c0_34] : memref<2x128x128xbf16, #tpu.memory_space<vmem>>, vector<1x128x128xbf16>
    %51 = vector.shape_cast %50 : vector<1x128x128xbf16> to vector<128x128xbf16>
    %c1_35 = arith.constant 1 : index
    %c0_36 = arith.constant 0 : index
    %c0_37 = arith.constant 0 : index
    %52 = vector.load %arg5[%c1_35, %c0_36, %c0_37] : memref<2x1x128xf32, #tpu.memory_space<vmem>>, vector<1x1x128xf32>
    %53 = vector.shape_cast %52 : vector<1x1x128xf32> to vector<1x128xf32>
    %cst_38 = arith.constant dense<0.000000e+00> : vector<128x128xf32>
    %54 = tpu.matmul %49, %51, %cst_38 {dimension_numbers = #tpu.dot_dimension_numbers<[1], [0], [0], [1], [0, 0, 1, 1], [], []>} : vector<128x128xbf16>, vector<128x128xbf16>, vector<128x128xf32> -> vector<128x128xf32>
    %55 = vector.broadcast %53 : vector<1x128xf32> to vector<128x128xf32>
    %56 = arith.addf %54, %55 : vector<128x128xf32>
    %cst_39 = arith.constant 0.000000e+00 : f32
    %57 = vector.broadcast %cst_39 : f32 to vector<128x128xf32>
    %58 = arith.cmpf oge, %56, %57 : vector<128x128xf32>
    %cst_40 = arith.constant 0.00999999977 : f32
    %59 = vector.broadcast %cst_40 : f32 to vector<128x128xf32>
    %60 = arith.mulf %59, %56 : vector<128x128xf32>
    %61 = arith.select %58, %56, %60 : vector<128x128xi1>, vector<128x128xf32>
    %62 = arith.truncf %61 : vector<128x128xf32> to vector<128x128xbf16>
    %c1_41 = arith.constant 1 : index
    %c0_42 = arith.constant 0 : index
    %c0_43 = arith.constant 0 : index
    %63 = vector.load %arg6[%c1_41, %c0_42, %c0_43] : memref<2x128x128xbf16, #tpu.memory_space<vmem>>, vector<1x128x128xbf16>
    %64 = vector.shape_cast %63 : vector<1x128x128xbf16> to vector<128x128xbf16>
    %c1_44 = arith.constant 1 : index
    %c0_45 = arith.constant 0 : index
    %c0_46 = arith.constant 0 : index
    %65 = vector.load %arg7[%c1_44, %c0_45, %c0_46] : memref<2x1x128xf32, #tpu.memory_space<vmem>>, vector<1x1x128xf32>
    %66 = vector.shape_cast %65 : vector<1x1x128xf32> to vector<1x128xf32>
    %cst_47 = arith.constant dense<0.000000e+00> : vector<128x128xf32>
    %67 = tpu.matmul %62, %64, %cst_47 {dimension_numbers = #tpu.dot_dimension_numbers<[1], [0], [0], [1], [0, 0, 1, 1], [], []>} : vector<128x128xbf16>, vector<128x128xbf16>, vector<128x128xf32> -> vector<128x128xf32>
    %68 = vector.broadcast %66 : vector<1x128xf32> to vector<128x128xf32>
    %69 = arith.addf %67, %68 : vector<128x128xf32>
    %cst_48 = arith.constant 0.000000e+00 : f32
    %70 = vector.broadcast %cst_48 : f32 to vector<128x128xf32>
    %71 = arith.cmpf oge, %69, %70 : vector<128x128xf32>
    %cst_49 = arith.constant 0.00999999977 : f32
    %72 = vector.broadcast %cst_49 : f32 to vector<128x128xf32>
    %73 = arith.mulf %72, %69 : vector<128x128xf32>
    %74 = arith.select %71, %69, %73 : vector<128x128xi1>, vector<128x128xf32>
    %75 = arith.truncf %74 : vector<128x128xf32> to vector<128x128xbf16>
    %c1_50 = arith.constant 1 : index
    %c0_51 = arith.constant 0 : index
    %c0_52 = arith.constant 0 : index
    %76 = vector.load %arg8[%c1_50, %c0_51, %c0_52] : memref<2x128x128xbf16, #tpu.memory_space<vmem>>, vector<1x128x128xbf16>
    %77 = vector.shape_cast %76 : vector<1x128x128xbf16> to vector<128x128xbf16>
    %c1_53 = arith.constant 1 : index
    %c0_54 = arith.constant 0 : index
    %c0_55 = arith.constant 0 : index
    %78 = vector.load %arg9[%c1_53, %c0_54, %c0_55] : memref<2x1x128xf32, #tpu.memory_space<vmem>>, vector<1x1x128xf32>
    %79 = vector.shape_cast %78 : vector<1x1x128xf32> to vector<1x128xf32>
    %cst_56 = arith.constant dense<0.000000e+00> : vector<128x128xf32>
    %80 = tpu.matmul %75, %77, %cst_56 {dimension_numbers = #tpu.dot_dimension_numbers<[1], [0], [0], [1], [0, 0, 1, 1], [], []>} : vector<128x128xbf16>, vector<128x128xbf16>, vector<128x128xf32> -> vector<128x128xf32>
    %81 = vector.broadcast %79 : vector<1x128xf32> to vector<128x128xf32>
    %82 = arith.addf %80, %81 : vector<128x128xf32>
    %83 = arith.extf %49 : vector<128x128xbf16> to vector<128x128xf32>
    %84 = arith.addf %82, %83 : vector<128x128xf32>
    %cst_57 = arith.constant 0.000000e+00 : f32
    %85 = vector.broadcast %cst_57 : f32 to vector<128x128xf32>
    %86 = arith.maximumf %84, %85 : vector<128x128xf32>
    %87 = arith.truncf %86 : vector<128x128xf32> to vector<128x128xbf16>
    %c0_58 = arith.constant 0 : index
    %c0_59 = arith.constant 0 : index
    %88 = vector.load %arg10[%c0_58, %c0_59] : memref<128x128xbf16, #tpu.memory_space<vmem>>, vector<128x128xbf16>
    %c0_60 = arith.constant 0 : index
    %c0_61 = arith.constant 0 : index
    %89 = vector.load %arg11[%c0_60, %c0_61] : memref<1x128xf32, #tpu.memory_space<vmem>>, vector<1x128xf32>
    %cst_62 = arith.constant dense<0.000000e+00> : vector<128x128xf32>
    %90 = tpu.matmul %87, %88, %cst_62 {dimension_numbers = #tpu.dot_dimension_numbers<[1], [0], [0], [1], [0, 0, 1, 1], [], []>} : vector<128x128xbf16>, vector<128x128xbf16>, vector<128x128xf32> -> vector<128x128xf32>
    %91 = vector.broadcast %89 : vector<1x128xf32> to vector<128x128xf32>
    %92 = arith.addf %90, %91 : vector<128x128xf32>
    %cst_63 = arith.constant 0.000000e+00 : f32
    %93 = vector.broadcast %cst_63 : f32 to vector<128x128xf32>
    %94 = arith.cmpf oge, %92, %93 : vector<128x128xf32>
    %cst_64 = arith.constant 0.00999999977 : f32
    %95 = vector.broadcast %cst_64 : f32 to vector<128x128xf32>
    %96 = arith.mulf %95, %92 : vector<128x128xf32>
    %97 = arith.select %94, %92, %96 : vector<128x128xi1>, vector<128x128xf32>
    %c0_65 = arith.constant 0 : index
    %c0_66 = arith.constant 0 : index
    %98 = vector.load %arg15[%c0_65, %c0_66] : memref<128x128xf32, #tpu.memory_space<vmem>>, vector<128x128xf32>
    tpu.vector_store %arg15[%c0_65, %c0_66], %97 {strides = array<i32>} : memref<128x128xf32, #tpu.memory_space<vmem>>, vector<128x128xf32>,
    %99 = arith.truncf %97 : vector<128x128xf32> to vector<128x128xbf16>
    %c0_67 = arith.constant 0 : index
    %c0_68 = arith.constant 0 : index
    %100 = vector.load %arg12[%c0_67, %c0_68] : memref<128x128xbf16, #tpu.memory_space<vmem>>, vector<128x128xbf16>
    %c0_69 = arith.constant 0 : index
    %c0_70 = arith.constant 0 : index
    %101 = vector.load %arg13[%c0_69, %c0_70] : memref<1x128xf32, #tpu.memory_space<vmem>>, vector<1x128xf32>
    %cst_71 = arith.constant dense<0.000000e+00> : vector<128x128xf32>
    %102 = tpu.matmul %99, %100, %cst_71 {dimension_numbers = #tpu.dot_dimension_numbers<[1], [0], [0], [1], [0, 0, 1, 1], [], []>} : vector<128x128xbf16>, vector<128x128xbf16>, vector<128x128xf32> -> vector<128x128xf32>
    %103 = vector.broadcast %101 : vector<1x128xf32> to vector<128x128xf32>
    %104 = arith.addf %102, %103 : vector<128x128xf32>
    %c0_72 = arith.constant 0 : index
    %c0_73 = arith.constant 0 : index
    %105 = vector.load %arg14[%c0_72, %c0_73] : memref<128x128xf32, #tpu.memory_space<vmem>>, vector<128x128xf32>
    tpu.vector_store %arg14[%c0_72, %c0_73], %104 {strides = array<i32>} : memref<128x128xf32, #tpu.memory_space<vmem>>, vector<128x128xf32>,
    return
  }
  func.func @transform_0(%arg0: i32) -> (i32, i32) {
    %c0_i32 = arith.constant 0 : i32
    %c0_i32_0 = arith.constant 0 : i32
    return %arg0, %c0_i32 : i32, i32
  }
  func.func @transform_1(%arg0: i32) -> (i32, i32) {
    %c0_i32 = arith.constant 0 : i32
    %c0_i32_0 = arith.constant 0 : i32
    %c0_i32_1 = arith.constant 0 : i32
    return %c0_i32, %c0_i32_0 : i32, i32
  }
  func.func @transform_2(%arg0: i32) -> (i32, i32) {
    %c0_i32 = arith.constant 0 : i32
    %c0_i32_0 = arith.constant 0 : i32
    %c0_i32_1 = arith.constant 0 : i32
    return %c0_i32, %c0_i32_0 : i32, i32
  }
  func.func @transform_3(%arg0: i32) -> (i32, i32, i32) {
    %c0_i32 = arith.constant 0 : i32
    %c0_i32_0 = arith.constant 0 : i32
    %c0_i32_1 = arith.constant 0 : i32
    %c0_i32_2 = arith.constant 0 : i32
    return %c0_i32, %c0_i32_0, %c0_i32_1 : i32, i32, i32
  }
  func.func @transform_4(%arg0: i32) -> (i32, i32, i32) {
    %c0_i32 = arith.constant 0 : i32
    %c0_i32_0 = arith.constant 0 : i32
    %c0_i32_1 = arith.constant 0 : i32
    %c0_i32_2 = arith.constant 0 : i32
    return %c0_i32, %c0_i32_0, %c0_i32_1 : i32, i32, i32
  }
  func.func @transform_5(%arg0: i32) -> (i32, i32, i32) {
    %c0_i32 = arith.constant 0 : i32
    %c0_i32_0 = arith.constant 0 : i32
    %c0_i32_1 = arith.constant 0 : i32
    %c0_i32_2 = arith.constant 0 : i32
    return %c0_i32, %c0_i32_0, %c0_i32_1 : i32, i32, i32
  }
  func.func @transform_6(%arg0: i32) -> (i32, i32, i32) {
    %c0_i32 = arith.constant 0 : i32
    %c0_i32_0 = arith.constant 0 : i32
    %c0_i32_1 = arith.constant 0 : i32
    %c0_i32_2 = arith.constant 0 : i32
    return %c0_i32, %c0_i32_0, %c0_i32_1 : i32, i32, i32
  }
  func.func @transform_7(%arg0: i32) -> (i32, i32, i32) {
    %c0_i32 = arith.constant 0 : i32
    %c0_i32_0 = arith.constant 0 : i32
    %c0_i32_1 = arith.constant 0 : i32
    %c0_i32_2 = arith.constant 0 : i32
    return %c0_i32, %c0_i32_0, %c0_i32_1 : i32, i32, i32
  }
  func.func @transform_8(%arg0: i32) -> (i32, i32, i32) {
    %c0_i32 = arith.constant 0 : i32
    %c0_i32_0 = arith.constant 0 : i32
    %c0_i32_1 = arith.constant 0 : i32
    %c0_i32_2 = arith.constant 0 : i32
    return %c0_i32, %c0_i32_0, %c0_i32_1 : i32, i32, i32
  }
  func.func @transform_9(%arg0: i32) -> (i32, i32) {
    %c0_i32 = arith.constant 0 : i32
    %c0_i32_0 = arith.constant 0 : i32
    %c0_i32_1 = arith.constant 0 : i32
    return %c0_i32, %c0_i32_0 : i32, i32
  }
  func.func @transform_10(%arg0: i32) -> (i32, i32) {
    %c0_i32 = arith.constant 0 : i32
    %c0_i32_0 = arith.constant 0 : i32
    %c0_i32_1 = arith.constant 0 : i32
    return %c0_i32, %c0_i32_0 : i32, i32
  }
  func.func @transform_11(%arg0: i32) -> (i32, i32) {
    %c0_i32 = arith.constant 0 : i32
    %c0_i32_0 = arith.constant 0 : i32
    %c0_i32_1 = arith.constant 0 : i32
    return %c0_i32, %c0_i32_0 : i32, i32
  }
  func.func @transform_12(%arg0: i32) -> (i32, i32) {
    %c0_i32 = arith.constant 0 : i32
    %c0_i32_0 = arith.constant 0 : i32
    %c0_i32_1 = arith.constant 0 : i32
    return %c0_i32, %c0_i32_0 : i32, i32
  }
  func.func @transform_13(%arg0: i32) -> (i32, i32) {
    %c0_i32 = arith.constant 0 : i32
    %c0_i32_0 = arith.constant 0 : i32
    return %arg0, %c0_i32 : i32, i32
  }
  func.func @transform_14(%arg0: i32) -> (i32, i32) {
    %c0_i32 = arith.constant 0 : i32
    %c0_i32_0 = arith.constant 0 : i32
    return %arg0, %c0_i32 : i32, i32
  }
}

module attributes {stable_mosaic.version = 11 : i64} {
  func.func @net_kernel(%arg0: i32, %arg1: memref<128x16xbf16, #tpu.memory_space<vmem>>, %arg2: memref<16x128xbf16, #tpu.memory_space<vmem>>, %arg3: memref<1x128xf32, #tpu.memory_space<vmem>>, %arg4: memref<2x128x128xbf16, #tpu.memory_space<vmem>>, %arg5: memref<2x1x128xf32, #tpu.memory_space<vmem>>, %arg6: memref<2x128x128xbf16, #tpu.memory_space<vmem>>, %arg7: memref<2x1x128xf32, #tpu.memory_space<vmem>>, %arg8: memref<2x128x128xbf16, #tpu.memory_space<vmem>>, %arg9: memref<2x1x128xf32, #tpu.memory_space<vmem>>, %arg10: memref<128x128xbf16, #tpu.memory_space<vmem>>, %arg11: memref<1x128xf32, #tpu.memory_space<vmem>>, %arg12: memref<128x128xbf16, #tpu.memory_space<vmem>>, %arg13: memref<1x128xf32, #tpu.memory_space<vmem>>, %arg14: memref<128x128xf32, #tpu.memory_space<vmem>>, %arg15: memref<128x128xf32, #tpu.memory_space<vmem>>) attributes {dimension_semantics = [#tpu.dimension_semantics<parallel>], iteration_bounds = array<i64: 2>, scalar_prefetch = 0 : i64, scratch_operands = 0 : i64, tpu.core_type = #tpu.core_type<tc>, window_params = [{transform_indices = @transform_0, window_bounds = array<i64: 128, 16>}, {pipeline_mode = #tpu.pipeline_mode<synchronous>, transform_indices = @transform_1, window_bounds = array<i64: 16, 128>}, {pipeline_mode = #tpu.pipeline_mode<synchronous>, transform_indices = @transform_2, window_bounds = array<i64: 1, 128>}, {pipeline_mode = #tpu.pipeline_mode<synchronous>, transform_indices = @transform_3, window_bounds = array<i64: 2, 128, 128>}, {pipeline_mode = #tpu.pipeline_mode<synchronous>, transform_indices = @transform_4, window_bounds = array<i64: 2, 1, 128>}, {pipeline_mode = #tpu.pipeline_mode<synchronous>, transform_indices = @transform_5, window_bounds = array<i64: 2, 128, 128>}, {pipeline_mode = #tpu.pipeline_mode<synchronous>, transform_indices = @transform_6, window_bounds = array<i64: 2, 1, 128>}, {pipeline_mode = #tpu.pipeline_mode<synchronous>, transform_indices = @transform_7, window_bounds = array<i64: 2, 128, 128>}, {pipeline_mode = #tpu.pipeline_mode<synchronous>, transform_indices = @transform_8, window_bounds = array<i64: 2, 1, 128>}, {pipeline_mode = #tpu.pipeline_mode<synchronous>, transform_indices = @transform_9, window_bounds = array<i64: 128, 128>}, {pipeline_mode = #tpu.pipeline_mode<synchronous>, transform_indices = @transform_10, window_bounds = array<i64: 1, 128>}, {pipeline_mode = #tpu.pipeline_mode<synchronous>, transform_indices = @transform_11, window_bounds = array<i64: 128, 128>}, {pipeline_mode = #tpu.pipeline_mode<synchronous>, transform_indices = @transform_12, window_bounds = array<i64: 1, 128>}, {transform_indices = @transform_13, window_bounds = array<i64: 128, 128>}, {transform_indices = @transform_14, window_bounds = array<i64: 128, 128>}]} {
    %c0 = arith.constant 0 : index
    %c0_0 = arith.constant 0 : index
    %0 = vector.load %arg1[%c0, %c0_0] : memref<128x16xbf16, #tpu.memory_space<vmem>>, vector<128x16xbf16>
    %c0_1 = arith.constant 0 : index
    %c0_2 = arith.constant 0 : index
    %1 = vector.load %arg2[%c0_1, %c0_2] : memref<16x128xbf16, #tpu.memory_space<vmem>>, vector<16x128xbf16>
    %c0_3 = arith.constant 0 : index
    %c0_4 = arith.constant 0 : index
    %2 = vector.load %arg3[%c0_3, %c0_4] : memref<1x128xf32, #tpu.memory_space<vmem>>, vector<1x128xf32>
    %cst = arith.constant dense<0.000000e+00> : vector<128x128xf32>
    %3 = tpu.matmul %0, %1, %cst {dimension_numbers = #tpu.dot_dimension_numbers<[1], [0], [0], [1], [0, 0, 1, 1], [], []>} : vector<128x16xbf16>, vector<16x128xbf16>, vector<128x128xf32> -> vector<128x128xf32>
    %4 = vector.broadcast %2 : vector<1x128xf32> to vector<128x128xf32>
    %5 = arith.addf %3, %4 : vector<128x128xf32>
    %cst_5 = arith.constant 0.000000e+00 : f32
    %6 = vector.broadcast %cst_5 : f32 to vector<128x128xf32>
    %7 = arith.cmpf oge, %5, %6 : vector<128x128xf32>
    %cst_6 = arith.constant 0.00999999977 : f32
    %8 = vector.broadcast %cst_6 : f32 to vector<128x128xf32>
    %9 = arith.mulf %8, %5 : vector<128x128xf32>
    %10 = arith.select %7, %5, %9 : vector<128x128xi1>, vector<128x128xf32>
    %11 = arith.truncf %10 : vector<128x128xf32> to vector<128x128xbf16>
    %c0_7 = arith.constant 0 : index
    %c0_8 = arith.constant 0 : index
    %c0_9 = arith.constant 0 : index
    %12 = vector.load %arg4[%c0_7, %c0_8, %c0_9] : memref<2x128x128xbf16, #tpu.memory_space<vmem>>, vector<1x128x128xbf16>
    %13 = vector.shape_cast %12 : vector<1x128x128xbf16> to vector<128x128xbf16>
    %c0_10 = arith.constant 0 : index
    %c0_11 = arith.constant 0 : index
    %c0_12 = arith.constant 0 : index
    %14 = vector.load %arg5[%c0_10, %c0_11, %c0_12] : memref<2x1x128xf32, #tpu.memory_space<vmem>>, vector<1x1x128xf32>
    %15 = vector.shape_cast %14 : vector<1x1x128xf32> to vector<1x128xf32>
    %cst_13 = arith.constant dense<0.000000e+00> : vector<128x128xf32>
    %16 = tpu.matmul %11, %13, %cst_13 {dimension_numbers = #tpu.dot_dimension_numbers<[1], [0], [0], [1], [0, 0, 1, 1], [], []>} : vector<128x128xbf16>, vector<128x128xbf16>, vector<128x128xf32> -> vector<128x128xf32>
    %17 = vector.broadcast %15 : vector<1x128xf32> to vector<128x128xf32>
    %18 = arith.addf %16, %17 : vector<128x128xf32>
    %cst_14 = arith.constant 0.000000e+00 : f32
    %19 = vector.broadcast %cst_14 : f32 to vector<128x128xf32>
    %20 = arith.cmpf oge, %18, %19 : vector<128x128xf32>
    %cst_15 = arith.constant 0.00999999977 : f32
    %21 = vector.broadcast %cst_15 : f32 to vector<128x128xf32>
    %22 = arith.mulf %21, %18 : vector<128x128xf32>
    %23 = arith.select %20, %18, %22 : vector<128x128xi1>, vector<128x128xf32>
    %24 = arith.truncf %23 : vector<128x128xf32> to vector<128x128xbf16>
    %c0_16 = arith.constant 0 : index
    %c0_17 = arith.constant 0 : index
    %c0_18 = arith.constant 0 : index
    %25 = vector.load %arg6[%c0_16, %c0_17, %c0_18] : memref<2x128x128xbf16, #tpu.memory_space<vmem>>, vector<1x128x128xbf16>
    %26 = vector.shape_cast %25 : vector<1x128x128xbf16> to vector<128x128xbf16>
    %c0_19 = arith.constant 0 : index
    %c0_20 = arith.constant 0 : index
    %c0_21 = arith.constant 0 : index
    %27 = vector.load %arg7[%c0_19, %c0_20, %c0_21] : memref<2x1x128xf32, #tpu.memory_space<vmem>>, vector<1x1x128xf32>
    %28 = vector.shape_cast %27 : vector<1x1x128xf32> to vector<1x128xf32>
    %cst_22 = arith.constant dense<0.000000e+00> : vector<128x128xf32>
    %29 = tpu.matmul %24, %26, %cst_22 {dimension_numbers = #tpu.dot_dimension_numbers<[1], [0], [0], [1], [0, 0, 1, 1], [], []>} : vector<128x128xbf16>, vector<128x128xbf16>, vector<128x128xf32> -> vector<128x128xf32>
    %30 = vector.broadcast %28 : vector<1x128xf32> to vector<128x128xf32>
    %31 = arith.addf %29, %30 : vector<128x128xf32>
    %cst_23 = arith.constant 0.000000e+00 : f32
    %32 = vector.broadcast %cst_23 : f32 to vector<128x128xf32>
    %33 = arith.cmpf oge, %31, %32 : vector<128x128xf32>
    %cst_24 = arith.constant 0.00999999977 : f32
    %34 = vector.broadcast %cst_24 : f32 to vector<128x128xf32>
    %35 = arith.mulf %34, %31 : vector<128x128xf32>
    %36 = arith.select %33, %31, %35 : vector<128x128xi1>, vector<128x128xf32>
    %37 = arith.truncf %36 : vector<128x128xf32> to vector<128x128xbf16>
    %c0_25 = arith.constant 0 : index
    %c0_26 = arith.constant 0 : index
    %c0_27 = arith.constant 0 : index
    %38 = vector.load %arg8[%c0_25, %c0_26, %c0_27] : memref<2x128x128xbf16, #tpu.memory_space<vmem>>, vector<1x128x128xbf16>
    %39 = vector.shape_cast %38 : vector<1x128x128xbf16> to vector<128x128xbf16>
    %c0_28 = arith.constant 0 : index
    %c0_29 = arith.constant 0 : index
    %c0_30 = arith.constant 0 : index
    %40 = vector.load %arg9[%c0_28, %c0_29, %c0_30] : memref<2x1x128xf32, #tpu.memory_space<vmem>>, vector<1x1x128xf32>
    %41 = vector.shape_cast %40 : vector<1x1x128xf32> to vector<1x128xf32>
    %cst_31 = arith.constant dense<0.000000e+00> : vector<128x128xf32>
    %42 = tpu.matmul %37, %39, %cst_31 {dimension_numbers = #tpu.dot_dimension_numbers<[1], [0], [0], [1], [0, 0, 1, 1], [], []>} : vector<128x128xbf16>, vector<128x128xbf16>, vector<128x128xf32> -> vector<128x128xf32>
    %43 = vector.broadcast %41 : vector<1x128xf32> to vector<128x128xf32>
    %44 = arith.addf %42, %43 : vector<128x128xf32>
    %45 = arith.extf %11 : vector<128x128xbf16> to vector<128x128xf32>
    %46 = arith.addf %44, %45 : vector<128x128xf32>
    %cst_32 = arith.constant 0.000000e+00 : f32
    %47 = vector.broadcast %cst_32 : f32 to vector<128x128xf32>
    %48 = arith.maximumf %46, %47 : vector<128x128xf32>
    %49 = arith.truncf %48 : vector<128x128xf32> to vector<128x128xbf16>
    %c1 = arith.constant 1 : index
    %c0_33 = arith.constant 0 : index
    %c0_34 = arith.constant 0 : index
    %50 = vector.load %arg4[%c1, %c0_33, %c0_34] : memref<2x128x128xbf16, #tpu.memory_space<vmem>>, vector<1x128x128xbf16>
    %51 = vector.shape_cast %50 : vector<1x128x128xbf16> to vector<128x128xbf16>
    %c1_35 = arith.constant 1 : index
    %c0_36 = arith.constant 0 : index
    %c0_37 = arith.constant 0 : index
    %52 = vector.load %arg5[%c1_35, %c0_36, %c0_37] : memref<2x1x128xf32, #tpu.memory_space<vmem>>, vector<1x1x128xf32>
    %53 = vector.shape_cast %52 : vector<1x1x128xf32> to vector<1x128xf32>
    %cst_38 = arith.constant dense<0.000000e+00> : vector<128x128xf32>
    %54 = tpu.matmul %49, %51, %cst_38 {dimension_numbers = #tpu.dot_dimension_numbers<[1], [0], [0], [1], [0, 0, 1, 1], [], []>} : vector<128x128xbf16>, vector<128x128xbf16>, vector<128x128xf32> -> vector<128x128xf32>
    %55 = vector.broadcast %53 : vector<1x128xf32> to vector<128x128xf32>
    %56 = arith.addf %54, %55 : vector<128x128xf32>
    %cst_39 = arith.constant 0.000000e+00 : f32
    %57 = vector.broadcast %cst_39 : f32 to vector<128x128xf32>
    %58 = arith.cmpf oge, %56, %57 : vector<128x128xf32>
    %cst_40 = arith.constant 0.00999999977 : f32
    %59 = vector.broadcast %cst_40 : f32 to vector<128x128xf32>
    %60 = arith.mulf %59, %56 : vector<128x128xf32>
    %61 = arith.select %58, %56, %60 : vector<128x128xi1>, vector<128x128xf32>
    %62 = arith.truncf %61 : vector<128x128xf32> to vector<128x128xbf16>
    %c1_41 = arith.constant 1 : index
    %c0_42 = arith.constant 0 : index
    %c0_43 = arith.constant 0 : index
    %63 = vector.load %arg6[%c1_41, %c0_42, %c0_43] : memref<2x128x128xbf16, #tpu.memory_space<vmem>>, vector<1x128x128xbf16>
    %64 = vector.shape_cast %63 : vector<1x128x128xbf16> to vector<128x128xbf16>
    %c1_44 = arith.constant 1 : index
    %c0_45 = arith.constant 0 : index
    %c0_46 = arith.constant 0 : index
    %65 = vector.load %arg7[%c1_44, %c0_45, %c0_46] : memref<2x1x128xf32, #tpu.memory_space<vmem>>, vector<1x1x128xf32>
    %66 = vector.shape_cast %65 : vector<1x1x128xf32> to vector<1x128xf32>
    %cst_47 = arith.constant dense<0.000000e+00> : vector<128x128xf32>
    %67 = tpu.matmul %62, %64, %cst_47 {dimension_numbers = #tpu.dot_dimension_numbers<[1], [0], [0], [1], [0, 0, 1, 1], [], []>} : vector<128x128xbf16>, vector<128x128xbf16>, vector<128x128xf32> -> vector<128x128xf32>
    %68 = vector.broadcast %66 : vector<1x128xf32> to vector<128x128xf32>
    %69 = arith.addf %67, %68 : vector<128x128xf32>
    %cst_48 = arith.constant 0.000000e+00 : f32
    %70 = vector.broadcast %cst_48 : f32 to vector<128x128xf32>
    %71 = arith.cmpf oge, %69, %70 : vector<128x128xf32>
    %cst_49 = arith.constant 0.00999999977 : f32
    %72 = vector.broadcast %cst_49 : f32 to vector<128x128xf32>
    %73 = arith.mulf %72, %69 : vector<128x128xf32>
    %74 = arith.select %71, %69, %73 : vector<128x128xi1>, vector<128x128xf32>
    %75 = arith.truncf %74 : vector<128x128xf32> to vector<128x128xbf16>
    %c1_50 = arith.constant 1 : index
    %c0_51 = arith.constant 0 : index
    %c0_52 = arith.constant 0 : index
    %76 = vector.load %arg8[%c1_50, %c0_51, %c0_52] : memref<2x128x128xbf16, #tpu.memory_space<vmem>>, vector<1x128x128xbf16>
    %77 = vector.shape_cast %76 : vector<1x128x128xbf16> to vector<128x128xbf16>
    %c1_53 = arith.constant 1 : index
    %c0_54 = arith.constant 0 : index
    %c0_55 = arith.constant 0 : index
    %78 = vector.load %arg9[%c1_53, %c0_54, %c0_55] : memref<2x1x128xf32, #tpu.memory_space<vmem>>, vector<1x1x128xf32>
    %79 = vector.shape_cast %78 : vector<1x1x128xf32> to vector<1x128xf32>
    %cst_56 = arith.constant dense<0.000000e+00> : vector<128x128xf32>
    %80 = tpu.matmul %75, %77, %cst_56 {dimension_numbers = #tpu.dot_dimension_numbers<[1], [0], [0], [1], [0, 0, 1, 1], [], []>} : vector<128x128xbf16>, vector<128x128xbf16>, vector<128x128xf32> -> vector<128x128xf32>
    %81 = vector.broadcast %79 : vector<1x128xf32> to vector<128x128xf32>
    %82 = arith.addf %80, %81 : vector<128x128xf32>
    %83 = arith.extf %49 : vector<128x128xbf16> to vector<128x128xf32>
    %84 = arith.addf %82, %83 : vector<128x128xf32>
    %cst_57 = arith.constant 0.000000e+00 : f32
    %85 = vector.broadcast %cst_57 : f32 to vector<128x128xf32>
    %86 = arith.maximumf %84, %85 : vector<128x128xf32>
    %87 = arith.truncf %86 : vector<128x128xf32> to vector<128x128xbf16>
    %c0_58 = arith.constant 0 : index
    %c0_59 = arith.constant 0 : index
    %88 = vector.load %arg10[%c0_58, %c0_59] : memref<128x128xbf16, #tpu.memory_space<vmem>>, vector<128x128xbf16>
    %c0_60 = arith.constant 0 : index
    %c0_61 = arith.constant 0 : index
    %89 = vector.load %arg11[%c0_60, %c0_61] : memref<1x128xf32, #tpu.memory_space<vmem>>, vector<1x128xf32>
    %cst_62 = arith.constant dense<0.000000e+00> : vector<128x128xf32>
    %90 = tpu.matmul %87, %88, %cst_62 {dimension_numbers = #tpu.dot_dimension_numbers<[1], [0], [0], [1], [0, 0, 1, 1], [], []>} : vector<128x128xbf16>, vector<128x128xbf16>, vector<128x128xf32> -> vector<128x128xf32>
    %91 = vector.broadcast %89 : vector<1x128xf32> to vector<128x128xf32>
    %92 = arith.addf %90, %91 : vector<128x128xf32>
    %cst_63 = arith.constant 0.000000e+00 : f32
    %93 = vector.broadcast %cst_63 : f32 to vector<128x128xf32>
    %94 = arith.cmpf oge, %92, %93 : vector<128x128xf32>
    %cst_64 = arith.constant 0.00999999977 : f32
    %95 = vector.broadcast %cst_64 : f32 to vector<128x128xf32>
    %96 = arith.mulf %95, %92 : vector<128x128xf32>
    %97 = arith.select %94, %92, %96 : vector<128x128xi1>, vector<128x128xf32>
    %c0_65 = arith.constant 0 : index
    %c0_66 = arith.constant 0 : index
    %98 = vector.load %arg15[%c0_65, %c0_66] : memref<128x128xf32, #tpu.memory_space<vmem>>, vector<128x128xf32>
    tpu.vector_store %arg15[%c0_65, %c0_66], %97 {strides = array<i32>} : memref<128x128xf32, #tpu.memory_space<vmem>>, vector<128x128xf32>,
    %99 = arith.truncf %97 : vector<128x128xf32> to vector<128x128xbf16>
    %c0_67 = arith.constant 0 : index
    %c0_68 = arith.constant 0 : index
    %100 = vector.load %arg12[%c0_67, %c0_68] : memref<128x128xbf16, #tpu.memory_space<vmem>>, vector<128x128xbf16>
    %c0_69 = arith.constant 0 : index
    %c0_70 = arith.constant 0 : index
    %101 = vector.load %arg13[%c0_69, %c0_70] : memref<1x128xf32, #tpu.memory_space<vmem>>, vector<1x128xf32>
    %cst_71 = arith.constant dense<0.000000e+00> : vector<128x128xf32>
    %102 = tpu.matmul %99, %100, %cst_71 {dimension_numbers = #tpu.dot_dimension_numbers<[1], [0], [0], [1], [0, 0, 1, 1], [], []>} : vector<128x128xbf16>, vector<128x128xbf16>, vector<128x128xf32> -> vector<128x128xf32>
    %103 = vector.broadcast %101 : vector<1x128xf32> to vector<128x128xf32>
    %104 = arith.addf %102, %103 : vector<128x128xf32>
    %c0_72 = arith.constant 0 : index
    %c0_73 = arith.constant 0 : index
    %105 = vector.load %arg14[%c0_72, %c0_73] : memref<128x128xf32, #tpu.memory_space<vmem>>, vector<128x128xf32>
    tpu.vector_store %arg14[%c0_72, %c0_73], %104 {strides = array<i32>} : memref<128x128xf32, #tpu.memory_space<vmem>>, vector<128x128xf32>,
    return
  }
  func.func @transform_0(%arg0: i32) -> (i32, i32) {
    %c0_i32 = arith.constant 0 : i32
    %c0_i32_0 = arith.constant 0 : i32
    return %arg0, %c0_i32 : i32, i32
  }
  func.func @transform_1(%arg0: i32) -> (i32, i32) {
    %c0_i32 = arith.constant 0 : i32
    %c0_i32_0 = arith.constant 0 : i32
    %c0_i32_1 = arith.constant 0 : i32
    return %c0_i32, %c0_i32_0 : i32, i32
  }
  func.func @transform_2(%arg0: i32) -> (i32, i32) {
    %c0_i32 = arith.constant 0 : i32
    %c0_i32_0 = arith.constant 0 : i32
    %c0_i32_1 = arith.constant 0 : i32
    return %c0_i32, %c0_i32_0 : i32, i32
  }
  func.func @transform_3(%arg0: i32) -> (i32, i32, i32) {
    %c0_i32 = arith.constant 0 : i32
    %c0_i32_0 = arith.constant 0 : i32
    %c0_i32_1 = arith.constant 0 : i32
    %c0_i32_2 = arith.constant 0 : i32
    return %c0_i32, %c0_i32_0, %c0_i32_1 : i32, i32, i32
  }
  func.func @transform_4(%arg0: i32) -> (i32, i32, i32) {
    %c0_i32 = arith.constant 0 : i32
    %c0_i32_0 = arith.constant 0 : i32
    %c0_i32_1 = arith.constant 0 : i32
    %c0_i32_2 = arith.constant 0 : i32
    return %c0_i32, %c0_i32_0, %c0_i32_1 : i32, i32, i32
  }
  func.func @transform_5(%arg0: i32) -> (i32, i32, i32) {
    %c0_i32 = arith.constant 0 : i32
    %c0_i32_0 = arith.constant 0 : i32
    %c0_i32_1 = arith.constant 0 : i32
    %c0_i32_2 = arith.constant 0 : i32
    return %c0_i32, %c0_i32_0, %c0_i32_1 : i32, i32, i32
  }
  func.func @transform_6(%arg0: i32) -> (i32, i32, i32) {
    %c0_i32 = arith.constant 0 : i32
    %c0_i32_0 = arith.constant 0 : i32
    %c0_i32_1 = arith.constant 0 : i32
    %c0_i32_2 = arith.constant 0 : i32
    return %c0_i32, %c0_i32_0, %c0_i32_1 : i32, i32, i32
  }
  func.func @transform_7(%arg0: i32) -> (i32, i32, i32) {
    %c0_i32 = arith.constant 0 : i32
    %c0_i32_0 = arith.constant 0 : i32
    %c0_i32_1 = arith.constant 0 : i32
    %c0_i32_2 = arith.constant 0 : i32
    return %c0_i32, %c0_i32_0, %c0_i32_1 : i32, i32, i32
  }
  func.func @transform_8(%arg0: i32) -> (i32, i32, i32) {
    %c0_i32 = arith.constant 0 : i32
    %c0_i32_0 = arith.constant 0 : i32
    %c0_i32_1 = arith.constant 0 : i32
    %c0_i32_2 = arith.constant 0 : i32
    return %c0_i32, %c0_i32_0, %c0_i32_1 : i32, i32, i32
  }
  func.func @transform_9(%arg0: i32) -> (i32, i32) {
    %c0_i32 = arith.constant 0 : i32
    %c0_i32_0 = arith.constant 0 : i32
    %c0_i32_1 = arith.constant 0 : i32
    return %c0_i32, %c0_i32_0 : i32, i32
  }
  func.func @transform_10(%arg0: i32) -> (i32, i32) {
    %c0_i32 = arith.constant 0 : i32
    %c0_i32_0 = arith.constant 0 : i32
    %c0_i32_1 = arith.constant 0 : i32
    return %c0_i32, %c0_i32_0 : i32, i32
  }
  func.func @transform_11(%arg0: i32) -> (i32, i32) {
    %c0_i32 = arith.constant 0 : i32
    %c0_i32_0 = arith.constant 0 : i32
    %c0_i32_1 = arith.constant 0 : i32
    return %c0_i32, %c0_i32_0 : i32, i32
  }
  func.func @transform_12(%arg0: i32) -> (i32, i32) {
    %c0_i32 = arith.constant 0 : i32
    %c0_i32_0 = arith.constant 0 : i32
    %c0_i32_1 = arith.constant 0 : i32
    return %c0_i32, %c0_i32_0 : i32, i32
  }
  func.func @transform_13(%arg0: i32) -> (i32, i32) {
    %c0_i32 = arith.constant 0 : i32
    %c0_i32_0 = arith.constant 0 : i32
    return %arg0, %c0_i32 : i32, i32
  }
  func.func @transform_14(%arg0: i32) -> (i32, i32) {
    %c0_i32 = arith.constant 0 : i32
    %c0_i32_0 = arith.constant 0 : i32
    return %arg0, %c0_i32 : i32, i32
  }
}

</mosaic_0001>

<bundles_post_ra>
// kernel: tpu_custom_call.1
= control target key start
LH: loop header
LB: loop body
LE: loop exit
PB: predicated region body
PF: predicated region fallthrough
CT: control target
= control target key end

     0   :  { %s3806_s0 = inlined_call_operand.vmem [shape: bf16[256,16], index: 0, kind: input, shape index: {}]   ;;  %s3807_s1 = inlined_call_operand.vmem [shape: bf16[16,128], index: 1, kind: input, shape index: {}]   ;;  %s3808_s2 = inlined_call_operand.vmem [shape: f32[1,128], index: 2, kind: input, shape index: {}]   ;;  %s3809_s3 = inlined_call_operand.vmem [shape: bf16[2,128,128], index: 3, kind: input, shape index: {}]   ;;  %s3810_s4 = inlined_call_operand.vmem [shape: f32[2,1,128], index: 4, kind: input, shape index: {}]   ;;  %s3811_s5 = inlined_call_operand.hbm [shape: bf16[2,128,128], index: 5, kind: input, shape index: {}]   ;;  %s3812_s6 = inlined_call_operand.vmem [shape: f32[2,1,128], index: 6, kind: input, shape index: {}]   ;;  %s3813_s7 = inlined_call_operand.hbm [shape: bf16[2,128,128], index: 7, kind: input, shape index: {}]   ;;  %s3814_s8 = inlined_call_operand.vmem [shape: f32[2,1,128], index: 8, kind: input, shape index: {}]   ;;  %s3815_s9 = inlined_call_operand.hbm [shape: bf16[128,128], index: 9, kind: input, shape index: {}]   ;;  %s3816_s10 = inlined_call_operand.vmem [shape: f32[1,128], index: 10, kind: input, shape index: {}]   ;;  %s3817_s11 = inlined_call_operand.hbm [shape: bf16[128,128], index: 11, kind: input, shape index: {}]   ;;  %s3818_s12 = inlined_call_operand.vmem [shape: f32[1,128], index: 12, kind: input, shape index: {}]   ;;  %s3819_s13 = inlined_call_operand.hbm [shape: f32[256,128], index: 13, kind: output, shape index: {0}]   ;;  %s3820_s14 = inlined_call_operand.hbm [shape: f32[256,128], index: 14, kind: output, shape index: {1}]  }
   0x1   :  { %3828 = sst [smem:[#allocation24_spill]] %s3811_s5 }
   0x2   :  { %3829 = sst [smem:[#allocation25_spill]] %s3813_s7 }
   0x3   :  { %3830 = sst [smem:[#allocation26_spill]] %s3818_s12 }
   0x4   :  { %3831 = sst [smem:[#allocation27_spill]] %s3819_s13 }
   0x5   :  { %20 = vsyncpa [#allocation3], 0 }
   0x6   :  { %21 = vsyncpa [#allocation6], 0 }
   0x7   :  { %22 = vsyncpa [#allocation9], 0 }
   0x8   :  { %23 = vsyncpa [#allocation4], 0 }
   0x9   :  { %25 = vsyncpa [#allocation4 + $0x1], 0 }
   0xa   :  { %26 = vsyncpa [#allocation12], 0 }
   0xb   :  { %28 = vsyncpa [#allocation12 + $0x1], 0  ;;  %s3229_s29 = smov 0   ;;  %s3231_s30 = smov 0  }
   0xc   :  { %s3233_s15 = smov 0   ;;  %s3235_s16 = smov 0  }
   0xd LB: > { %3832 = sst [smem:[#allocation18_spill]] %s3132_s29  ;;  %s3250_s17 = sadd.s32 4294967295, %s3144_s16   ;;  %s3144_s16 = sphi %s3235_s16, %s3850_s16   ;;  %s3140_s15 = sphi %s3233_s15, %s3852_s15   ;;  %s3136_s30 = sphi %s3231_s30, %s3854_s30   ;;  %s3132_s29 = sphi %s3229_s29, %s3853_s29  }
   0xe   : > { %3833 = sst [smem:[#allocation19_spill]] %s3140_s15  ;;  %s2399_s18 = sadd.s32 4294967294, %s3144_s16  }
   0xf   : > { %3834 = sst [smem:[#allocation20_spill]] %s3144_s16  ;;  %s3254_s19 = sadd.s32 1, %s3144_s16  }
  0x10   : > { %3835 = sst [smem:[#allocation21_spill]] %s3254_s19  ;;  %s319_s20 = sadd.s32 1, %s3140_s15 }
  0x11   : > { %s316_s21 = ssub.s32 %s3144_s16, %s3254_s19  ;;  %p329_p0 = scmp.ne.s32.totalorder %s3140_s15, %s3136_s30 }
  0x12   : > { %p317_p1 = scmp.eq.s32.totalorder %s316_s21, 0  ;;  %p330_p2 = scmp.eq.s32.totalorder %s3250_s17, 1 }
  0x13   : > { %p335_p3 = scmp.ne.s32.totalorder %s3136_s30, %s3132_s29  ;;  %p336_p4 = scmp.eq.s32.totalorder %s2399_s18, 1 }
  0x14   : > { %s3265_s22 = scalar_select %p317_p1, %s3140_s15, %s319_s20  }
  0x15   : > { %p3267_p5 = por %p330_p2, %p329_p0  ;;  %p3271_p6 = por %p336_p4, %p335_p3 }
  0x16   : > { %3836 = sst [smem:[#allocation22_spill]] %s3265_s22  ;;  %p2400_p7 = scmp.ge.s32.totalorder %s3144_s16, 1 }
  0x17   : > { %s3838_s24 = scalar_select %p3271_p6, 1, 0 }
  0x18   : > { %p369_p8 = scmp.lt.s32.totalorder %s3144_s16, 3  ;;  %p2860_p9 = scmp.eq.s32.totalorder %s3250_s17, 0 }
  0x19   : > { %3839 = sst [smem:[#allocation23_spill]] %s3838_s24  ;;  %s3146_s15 = smov [#allocation5]  }
  0x1a   : > { %p3278_p10 = pnand %p2400_p7, %p369_p8  ;;  %s3841_s7 = sld [smem:[#allocation25_spill]] }
  0x1b   : > { %s3842_s5 = sld [smem:[#allocation24_spill]]  ;;  %s411_s19 = sshll.u32 %s3146_s15, 4  ;;  %s412_s19 = int_to_ptr.vmem [resolvable:$true] %s411_s19 }
  0x1c   : > { %p2840_p11 = pneg %p3278_p10  ;;  %s3147_s26 = smov 64  }
  0x1d   : > { %s3148_s27 = smov 4   ;;  %s426_s24 = sshll.u32 %s3815_s9, 4  ;;  %s427_s24 = int_to_ptr.hbm [resolvable:$true] %s426_s24 }
  0x1e   : > { %p3292_p12 = pnand %p2860_p9, %p2840_p11  ;;  %s443_s16 = sshll.u32 %s3817_s11, 4  ;;  %s444_s16 = int_to_ptr.hbm [resolvable:$true] %s443_s16 }
  0x1f   : > { %s3150_s13 = smov [#allocation7]  }
  0x20   : > { %s409_s28 = sshll.u32 %s3841_s7, 4  ;;  %s3149_s7 = smov [#allocation2]   ;;  %s410_s28 = int_to_ptr.hbm [resolvable:$true] %s409_s28 }
  0x21   : > { %s392_s21 = sshll.u32 %s3842_s5, 4  ;;  %s394_s18 = sshll.u32 %s3149_s7, 4  ;;  %s393_s21 = int_to_ptr.hbm [resolvable:$true] %s392_s21  ;;  %s395_s18 = int_to_ptr.vmem [resolvable:$true] %s394_s18 }
  0x22   : > { %2846 = dma.hbm_to_vmem [thread:$0]  (!%p3292_p12), %s410_s28, 2048, %s412_s19, [#allocation6], %s3147_s26, %s3147_s26, %s3148_s27  }
  0x23   : > { %2843 = dma.hbm_to_vmem [thread:$0]  (!%p3292_p12), %s393_s21, 2048, %s395_s18, [#allocation3], %s3147_s26, %s3147_s26, %s3148_s27  }
  0x24   : > { %s428_s12 = sshll.u32 %s3150_s13, 4  ;;  %s3151_s19 = smov [#allocation8]   ;;  %s429_s12 = int_to_ptr.vmem [resolvable:$true] %s428_s12 }
  0x25   : > { %2849 = dma.hbm_to_vmem [thread:$0]  (!%p3292_p12), %s427_s24, 1024, %s429_s12, [#allocation6], %s3147_s26, %s3147_s26, %s3148_s27  }
  0x26   : > { %s445_s7 = sshll.u32 %s3151_s19, 4  ;;  %473 = sbr.rel (%p3278_p10) target bundleno = 1468 (0x5bc), region = 72  ;;  %s446_s7 = int_to_ptr.vmem [resolvable:$true] %s445_s7 }
  0x27   : > { %2852 = dma.hbm_to_vmem [thread:$0]  (!%p3292_p12), %s444_s16, 1024, %s446_s7, [#allocation9], %s3147_s26, %s3147_s26, %s3148_s27  }
  0x2b   : > { %3111 = dma.done.wait (%p2860_p9), [#allocation3], 2048  }
  0x2c   : > { %3113 = vsyncadd (%p2860_p9), [#allocation3], 4294965248 }
  0x2d   : > { %3115 = dma.done.wait (%p2860_p9), [#allocation6], 3072  }
  0x2e   : > { %3117 = vsyncadd (%p2860_p9), [#allocation6], 4294964224 }
  0x2f   : > { %3119 = dma.done.wait (%p2860_p9), [#allocation9], 1024  }
  0x30   : > { %3121 = vsyncadd (%p2860_p9), [#allocation9], 4294966272  ;;  %s2413_s5 = sshll.u32 %s3250_s17, 4  ;;  %v2750_v0 = vld [vmem:[%s3807_s1] sm:$0xff]  ;;  %vm617_vm0 = vcmask 130048   ;;  %v2758_v5 = vld [vmem:[%s3809_s3 + $0x38] sm:$0xff] }
  0x31   : > { %p541_p13 = scmp.lt.s32.totalorder %s2413_s5, 31  ;;  %649 = vmatpush.bf16.msra.mxu0 %v2750_v0  ;;  %2817 = vmatpush.bf16.msra.mxu1 %v2750_v0  ;;  %v2757_v6 = vld [vmem:[%s3809_s3 + $0x30] sm:$0xff]  ;;  %v2756_v7 = vld [vmem:[%s3809_s3 + $0x28] sm:$0xff]  ;;  %v2755_v12 = vld [vmem:[%s3809_s3 + $0x20] sm:$0xff]  ;;  %s3663_s13 = sand.u32 1, %s3136_s30  }
  0x32   : > { %2818 = vmatpush.bf16.msra.mxu2 %v2750_v0  ;;  %2819 = vmatpush.bf16.msra.mxu3 %v2750_v0  ;;  %v2754_v13 = vld [vmem:[%s3809_s3 + $0x18] sm:$0xff]  ;;  %v2753_v14 = vld [vmem:[%s3809_s3 + $0x10] sm:$0xff]  ;;  %v2752_v15 = vld [vmem:[%s3809_s3 + $0x8] sm:$0xff]  ;;  %s2411_s22 = sshll.u32 %s3663_s13, 7  ;;  %s2815_s25 = sshll.u32 %s3250_s17, 7 }
  0x33   : > { %s3856_s5 = smov (!%p541_p13, %s2413_s5), 31  ;;  %v2751_v16 = vld [vmem:[%s3809_s3] sm:$0xff]  ;;  %s3674_s24 = scalar_lea.vmem [#allocation11], %s2411_s22 }
  0x34   : > { %s2414_s12 = sshll.u32 %s3856_s5, 2  ;;  %v3366_v17 = vld [vmem:[%s3808_s2] ss:$0 sm:$0xff]  ;;  %s2259_s26 = scalar_lea.hbm %s3820_s14, %s2815_s25 }
  0x35   : > { %s544_s16 = scalar_lea.vmem %s3806_s0, %s2414_s12  ;;  %871 = vmatpush.bf16.msrb.mxu1 %v2758_v5  ;;  %s3844_s20 = sld [smem:[#allocation26_spill]] }
  0x36   : > { %v2742_v1 = vld [vmem:[%s544_s16] sm:$0xff]  ;;  %v2744_v2 = vld [vmem:[%s544_s16 + $0x10] sm:$0xff]  ;;  %v2749_v4 = vld [vmem:[%s544_s16 + $0x38] sm:$0xff]  ;;  %s2260_s15 = sshll.u32 %s3674_s24, 4  ;;  %s2262_s19 = sshll.u32 %s2259_s26, 4  ;;  %s2261_s15 = int_to_ptr.vmem [resolvable:$true] %s2260_s15  ;;  %s2263_s19 = int_to_ptr.hbm [resolvable:$true] %s2262_s19 }
  0x37   : > { %v2746_v3 = vld [vmem:[%s544_s16 + $0x20] sm:$0xff]  ;;  %2451 = vmatmul.msk.bf16.vlgmr.msra.gmra.mxu0 %vm617_vm0, %v2742_v1  ;;  %2453 = vmatmul.msk.bf16.vlgmr.msra.gmra.mxu1 %vm617_vm0, %v2744_v2  ;;  %v2743_v8 = vld [vmem:[%s544_s16 + $0x8] sm:$0xff]  ;;  %v2745_v9 = vld [vmem:[%s544_s16 + $0x18] sm:$0xff]  ;;  %s2231_s7 = scalar_lea.sflag [#allocation12], %s3663_s13  ;;  %s3052_s5 = sshra.s32 %s2263_s19, 4  ;;  %s3053_s5 = int_to_ptr.hbm [resolvable:$true] %s3052_s5 }
  0x38   : > { %2455 = vmatmul.msk.bf16.vlgmr.msra.gmra.mxu2 %vm617_vm0, %v2746_v3  ;;  %2458 = vmatmul.msk.bf16.vlgmr.msra.gmra.mxu3 %vm617_vm0, %v2749_v4  ;;  %v2747_v10 = vld [vmem:[%s544_s16 + $0x28] sm:$0xff]  ;;  %v2748_v11 = vld [vmem:[%s544_s16 + $0x30] sm:$0xff]  ;;  %s3054_s12 = scalar_lea.hbm %s3053_s5, 128  ;;  %s3058_s28 = scalar_lea.hbm %s3820_s14, 256 }
  0x39   : > { %872 = vmatpush.bf16.msrb.mxu1 %v2757_v6  ;;  %p3055_p0 = scmp.ne.s32.totalorder %s3053_s5, %s3054_s12  ;;  %p3059_p3 = scmp.lt.s32.totalorder %s3053_s5, %s3820_s14 }
  0x3a   : > { %p3060_p4 = scmp.lt.s32.totalorder %s3058_s28, %s3054_s12 }
  0x3b   : > { %p3056_p1 = pnand %p3055_p0, %p3267_p5 }
  0x3c   : > { %p3061_p7 = por %p3060_p4, %p3059_p3 }
  0x3d   : > { %873 = vmatpush.bf16.msrb.mxu1 %v2756_v7  ;;  %p3057_p2 = pneg %p3056_p1 }
  0x3f   : > { %p3062_p8 = pnand %p3061_p7, %p3057_p2 }
  0x41   : > { %874 = vmatpush.bf16.msrb.mxu1 %v2755_v12 }
  0x45   : > { %875 = vmatpush.bf16.msrb.mxu1 %v2754_v13  ;;  %v2766_v13 = vld [vmem:[#allocation2 + $0x38] sm:$0xff] }
  0x46   : > { %1044 = vmatpush.bf16.msrb.mxu2 %v2766_v13 }
  0x47   : > { %2452 = vmatmul.msk.bf16.gmra.mxu0 %vm617_vm0, %v2743_v8  ;;  %2454 = vmatmul.msk.bf16.gmra.mxu1 %vm617_vm0, %v2745_v9 }
  0x48   : > { %2456 = vmatmul.msk.bf16.gmra.mxu2 %vm617_vm0, %v2747_v10 }
  0x49   : > { %876 = vmatpush.bf16.msrb.mxu1 %v2753_v14 }
  0x4d   : > { %877 = vmatpush.bf16.msrb.mxu1 %v2752_v15 }
  0x51   : > { %878 = vmatpush.bf16.msrb.mxu1 %v2751_v16 }
  0x58   : > { %2457 = vmatmul.msk.bf16.gmra.mxu2 %vm617_vm0, %v2748_v11 }
  0xb4   : > { %v651_v18 = vpop.f32.mrf.mxu0  ;;  %v661_v28 = vpop.f32.mrf.mxu1 }
  0xb5   : > { %v652_v19 = vadd.f32 %v3366_v17, %v651_v18  ;;  %v662_v43 = vadd.f32 %v3366_v17, %v661_v28 }
  0xb7   : > { %v707_v20 = vmul.f32 0.01, %v652_v19  ;;  %vm691_vm1 = vcmp.ge.f32.partialorder %v652_v19, 0.0  ;;  %v711_v49 = vmul.f32 0.01, %v662_v43  ;;  %vm695_vm5 = vcmp.ge.f32.partialorder %v662_v43, 0.0 }
  0xb9   : > { %v723_v22 = vsel %vm691_vm1, %v652_v19, %v707_v20  ;;  %v727_v51 = vsel %vm695_vm5, %v662_v43, %v711_v49  ;;  %v2761_v49 = vld [vmem:[#allocation2 + $0x10] sm:$0xff] }
  0xba   : > { %v3370_v25 = vpack.c.bf16 %v723_v22, %v723_v22  ;;  %v3386_v53 = vpack.c.bf16 %v727_v51, %v727_v51 }
  0xbb   : > { %v671_v55 = vpop.f32.mrf.mxu2 }
  0xbc   : > { %v653_v21 = vpop.f32.mrf.mxu0  ;;  %v791_v30 = vunpack.c.l.b16 %v3370_v25  ;;  %v663_v36 = vpop.f32.mrf.mxu1  ;;  %v795_v57 = vunpack.c.l.b16 %v3386_v53  ;;  %v672_v8 = vadd.f32 %v3366_v17, %v671_v55 }
  0xbd   : > { %v654_v23 = vadd.f32 %v3366_v17, %v653_v21  ;;  %v664_v44 = vadd.f32 %v3366_v17, %v663_v36  ;;  %v2763_v36 = vld [vmem:[#allocation2 + $0x20] sm:$0xff] }
  0xbe   : > { %v715_v11 = vmul.f32 0.01, %v672_v8  ;;  %vm699_vm9 = vcmp.ge.f32.partialorder %v672_v8, 0.0 }
  0xbf   : > { %vm692_vm2 = vcmp.ge.f32.partialorder %v654_v23, 0.0  ;;  %v708_v24 = vmul.f32 0.01, %v654_v23  ;;  %v712_v50 = vmul.f32 0.01, %v664_v44  ;;  %vm696_vm6 = vcmp.ge.f32.partialorder %v664_v44, 0.0 }
  0xc0   : > { %v731_v14 = vsel %vm699_vm9, %v672_v8, %v715_v11  ;;  %v3435_v11 = vld [vmem:[%s3810_s4] ss:$0 sm:$0xff] }
  0xc1   : > { %v724_v26 = vsel %vm692_vm2, %v654_v23, %v708_v24  ;;  %v728_v52 = vsel %vm696_vm6, %v664_v44, %v712_v50  ;;  %v3402_v18 = vpack.c.bf16 %v731_v14, %v731_v14 }
  0xc2   : > { %v3372_v27 = vpack.c.bf16 %v724_v26, %v724_v26  ;;  %v3388_v54 = vpack.c.bf16 %v728_v52, %v728_v52 }
  0xc3   : > { %v673_v0 = vpop.f32.mrf.mxu2  ;;  %v799_v20 = vunpack.c.l.b16 %v3402_v18 }
  0xc4   : > { %v656_v29 = vpop.f32.mrf.mxu0  ;;  %v792_v31 = vunpack.c.l.b16 %v3372_v27  ;;  %v666_v48 = vpop.f32.mrf.mxu1  ;;  %v796_v58 = vunpack.c.l.b16 %v3388_v54  ;;  %v674_v9 = vadd.f32 %v3366_v17, %v673_v0  ;;  %v2760_v0 = vld [vmem:[#allocation2 + $0x8] sm:$0xff] }
  0xc5   : > { %v657_v32 = vadd.f32 %v3366_v17, %v656_v29  ;;  %v667_v59 = vadd.f32 %v3366_v17, %v666_v48  ;;  %v2762_v48 = vld [vmem:[#allocation2 + $0x18] sm:$0xff] }
  0xc6   : > { %v807_v33 = vpack.c.b16 %v792_v31, %v791_v30  ;;  %v809_v61 = vpack.c.b16 %v796_v58, %v795_v57  ;;  %v716_v12 = vmul.f32 0.01, %v674_v9  ;;  %vm700_vm10 = vcmp.ge.f32.partialorder %v674_v9, 0.0  ;;  %v2765_v30 = vld [vmem:[#allocation2 + $0x30] sm:$0xff]  ;;  %v2764_v31 = vld [vmem:[#allocation2 + $0x28] sm:$0xff] }
  0xc7   : > { %v709_v34 = vmul.f32 0.01, %v657_v32  ;;  %vm693_vm3 = vcmp.ge.f32.partialorder %v657_v32, 0.0  ;;  %v713_v62 = vmul.f32 0.01, %v667_v59  ;;  %vm697_vm7 = vcmp.ge.f32.partialorder %v667_v59, 0.0  ;;  %1045 = vmatpush.bf16.msrb.mxu2 %v2765_v30 }
  0xc8   : > { %879 = vmatmul.bf16.vlgmr.msrb.gmra.mxu1 %v807_v33  ;;  %v732_v15 = vsel %vm700_vm10, %v674_v9, %v716_v12 }
  0xc9   : > { %v725_v37 = vsel %vm693_vm3, %v657_v32, %v709_v34  ;;  %v729_v1 = vsel %vm697_vm7, %v667_v59, %v713_v62  ;;  %v3404_v19 = vpack.c.bf16 %v732_v15, %v732_v15 }
  0xca   : > { %v3378_v40 = vpack.c.bf16 %v725_v37, %v725_v37  ;;  %v3394_v3 = vpack.c.bf16 %v729_v1, %v729_v1 }
  0xcb   : > { %v676_v7 = vpop.f32.mrf.mxu2  ;;  %v800_v21 = vunpack.c.l.b16 %v3404_v19  ;;  %1046 = vmatpush.bf16.msrb.mxu2 %v2764_v31 }
  0xcc   : > { %v658_v35 = vpop.f32.mrf.mxu0  ;;  %v793_v45 = vunpack.c.l.b16 %v3378_v40  ;;  %v668_v56 = vpop.f32.mrf.mxu1  ;;  %v797_v5 = vunpack.c.l.b16 %v3394_v3  ;;  %v677_v22 = vadd.f32 %v3366_v17, %v676_v7  ;;  %v2759_v7 = vld [vmem:[#allocation2] sm:$0xff] }
  0xcd   : > { %v659_v38 = vadd.f32 %v3366_v17, %v658_v35  ;;  %v669_v60 = vadd.f32 %v3366_v17, %v668_v56  ;;  %v811_v24 = vpack.c.b16 %v800_v21, %v799_v20 }
  0xce   : > { %v717_v28 = vmul.f32 0.01, %v677_v22  ;;  %vm701_vm11 = vcmp.ge.f32.partialorder %v677_v22, 0.0 }
  0xcf   : > { %vm694_vm4 = vcmp.ge.f32.partialorder %v659_v38, 0.0  ;;  %v710_v39 = vmul.f32 0.01, %v659_v38  ;;  %v714_v63 = vmul.f32 0.01, %v669_v60  ;;  %vm698_vm8 = vcmp.ge.f32.partialorder %v669_v60, 0.0  ;;  %1047 = vmatpush.bf16.msrb.mxu2 %v2763_v36 }
  0xd0   : > { %v733_v32 = vsel %vm701_vm11, %v677_v22, %v717_v28 }
  0xd1   : > { %v726_v41 = vsel %vm694_vm4, %v659_v38, %v710_v39  ;;  %v730_v2 = vsel %vm698_vm8, %v669_v60, %v714_v63  ;;  %v3410_v34 = vpack.c.bf16 %v733_v32, %v733_v32 }
  0xd2   : > { %v3380_v42 = vpack.c.bf16 %v726_v41, %v726_v41  ;;  %v3396_v4 = vpack.c.bf16 %v730_v2, %v730_v2 }
  0xd3   : > { %v678_v16 = vpop.f32.mrf.mxu2  ;;  %v801_v38 = vunpack.c.l.b16 %v3410_v34  ;;  %1048 = vmatpush.bf16.msrb.mxu2 %v2762_v48 }
  0xd4   : > { %v794_v46 = vunpack.c.l.b16 %v3380_v42  ;;  %v798_v6 = vunpack.c.l.b16 %v3396_v4  ;;  %v679_v23 = vadd.f32 %v3366_v17, %v678_v16 }
  0xd6   : > { %v808_v47 = vpack.c.b16 %v794_v46, %v793_v45  ;;  %v810_v10 = vpack.c.b16 %v798_v6, %v797_v5  ;;  %v718_v29 = vmul.f32 0.01, %v679_v23  ;;  %vm702_vm12 = vcmp.ge.f32.partialorder %v679_v23, 0.0  ;;  %v686_v45 = vpop.f32.mrf.mxu3 }
  0xd7   : > { %1049 = vmatpush.bf16.msrb.mxu2 %v2761_v49  ;;  %v687_v59 = vadd.f32 %v3366_v17, %v686_v45 }
  0xd8   : > { %884 = vmatmul.bf16.gmra.mxu1 %v808_v47  ;;  %v734_v33 = vsel %vm702_vm12, %v679_v23, %v718_v29 }
  0xd9   : > { %v3412_v35 = vpack.c.bf16 %v734_v33, %v734_v33  ;;  %v721_v62 = vmul.f32 0.01, %v687_v59  ;;  %vm705_vm15 = vcmp.ge.f32.partialorder %v687_v59, 0.0 }
  0xdb   : > { %v681_v26 = vpop.f32.mrf.mxu2  ;;  %v802_v39 = vunpack.c.l.b16 %v3412_v35  ;;  %1050 = vmatpush.bf16.msrb.mxu2 %v2760_v0  ;;  %v737_v1 = vsel %vm705_vm15, %v687_v59, %v721_v62 }
  0xdc   : > { %v682_v41 = vadd.f32 %v3366_v17, %v681_v26  ;;  %v3426_v5 = vpack.c.bf16 %v737_v1, %v737_v1 }
  0xdd   : > { %v812_v44 = vpack.c.b16 %v802_v39, %v801_v38 }
  0xde   : > { %v719_v46 = vmul.f32 0.01, %v682_v41  ;;  %vm703_vm13 = vcmp.ge.f32.partialorder %v682_v41, 0.0  ;;  %v688_v56 = vpop.f32.mrf.mxu3  ;;  %v805_v8 = vunpack.c.l.b16 %v3426_v5 }
  0xdf   : > { %v689_v60 = vadd.f32 %v3366_v17, %v688_v56  ;;  %1051 = vmatpush.bf16.msrb.mxu2 %v2759_v7 }
  0xe0   : > { %v735_v50 = vsel %vm703_vm13, %v682_v41, %v719_v46 }
  0xe1   : > { %v3418_v52 = vpack.c.bf16 %v735_v50, %v735_v50  ;;  %v722_v63 = vmul.f32 0.01, %v689_v60  ;;  %vm706_vm0 = vcmp.ge.f32.partialorder %v689_v60, 0.0 }
  0xe3   : > { %v683_v37 = vpop.f32.mrf.mxu2  ;;  %v803_v57 = vunpack.c.l.b16 %v3418_v52  ;;  %v738_v2 = vsel %vm706_vm0, %v689_v60, %v722_v63 }
  0xe4   : > { %v684_v43 = vadd.f32 %v3366_v17, %v683_v37  ;;  %v3428_v6 = vpack.c.bf16 %v738_v2, %v738_v2 }
  0xe6   : > { %v720_v47 = vmul.f32 0.01, %v684_v43  ;;  %vm704_vm14 = vcmp.ge.f32.partialorder %v684_v43, 0.0  ;;  %v806_v9 = vunpack.c.l.b16 %v3428_v6 }
  0xe8   : > { %889 = vmatmul.bf16.gmra.mxu1 %v809_v61  ;;  %v736_v51 = vsel %vm704_vm14, %v684_v43, %v720_v47  ;;  %v814_v17 = vpack.c.b16 %v806_v9, %v805_v8 }
  0xe9   : > { %v3420_v55 = vpack.c.bf16 %v736_v51, %v736_v51 }
  0xeb   : > { %v804_v58 = vunpack.c.l.b16 %v3420_v55 }
  0xed   : > { %v813_v61 = vpack.c.b16 %v804_v58, %v803_v57 }
  0xf8   : > { %894 = vmatmul.bf16.gmra.mxu1 %v810_v10 }
 0x108   : > { %899 = vmatmul.bf16.gmra.mxu1 %v811_v24 }
 0x118   : > { %904 = vmatmul.bf16.gmra.mxu1 %v812_v44 }
 0x128   : > { %909 = vmatmul.bf16.gmra.mxu1 %v813_v61 }
 0x138   : > { %914 = vmatmul.bf16.gmra.mxu1 %v814_v17 }
 0x145   : > { %v880_v10 = vpop.f32.mrf.mxu1 }
 0x146   : > { %v881_v12 = vadd.f32 %v3435_v11, %v880_v10 }
 0x148   : > { %v936_v14 = vmul.f32 0.01, %v881_v12  ;;  %vm920_vm1 = vcmp.ge.f32.partialorder %v881_v12, 0.0 }
 0x14a   : > { %v952_v20 = vsel %vm920_vm1, %v881_v12, %v936_v14 }
 0x14d   : > { %v882_v13 = vpop.f32.mrf.mxu1 }
 0x14e   : > { %v883_v15 = vadd.f32 %v3435_v11, %v882_v13 }
 0x150   : > { %vm921_vm2 = vcmp.ge.f32.partialorder %v883_v15, 0.0  ;;  %v937_v16 = vmul.f32 0.01, %v883_v15 }
 0x152   : > { %v953_v21 = vsel %vm921_vm2, %v883_v15, %v937_v16 }
 0x153   : > { %v968_v22 = vpack.c.bf16 %v953_v21, %v952_v20 }
 0x155   : > { %v885_v23 = vpop.f32.mrf.mxu1  ;;  %1052 = vmatmul.bf16.vlgmr.msrb.gmra.mxu2 %v968_v22  ;;  %v2774_v22 = vld [vmem:[#allocation5 + $0x38] sm:$0xff] }
 0x156   : > { %v886_v24 = vadd.f32 %v3435_v11, %v885_v23  ;;  %1217 = vmatpush.bf16.msrb.mxu3 %v2774_v22  ;;  %v2773_v23 = vld [vmem:[#allocation5 + $0x30] sm:$0xff] }
 0x158   : > { %v938_v28 = vmul.f32 0.01, %v886_v24  ;;  %vm922_vm3 = vcmp.ge.f32.partialorder %v886_v24, 0.0 }
 0x15a   : > { %v954_v31 = vsel %vm922_vm3, %v886_v24, %v938_v28  ;;  %1218 = vmatpush.bf16.msrb.mxu3 %v2773_v23 }
 0x15d   : > { %v887_v26 = vpop.f32.mrf.mxu1 }
 0x15e   : > { %v888_v29 = vadd.f32 %v3435_v11, %v887_v26  ;;  %v2772_v26 = vld [vmem:[#allocation5 + $0x28] sm:$0xff] }
 0x15f   : > { %1219 = vmatpush.bf16.msrb.mxu3 %v2772_v26 }
 0x160   : > { %v939_v30 = vmul.f32 0.01, %v888_v29  ;;  %vm923_vm4 = vcmp.ge.f32.partialorder %v888_v29, 0.0 }
 0x162   : > { %v955_v32 = vsel %vm923_vm4, %v888_v29, %v939_v30 }
 0x163   : > { %v969_v33 = vpack.c.bf16 %v955_v32, %v954_v31  ;;  %v2771_v31 = vld [vmem:[#allocation5 + $0x20] sm:$0xff] }
 0x164   : > { %1220 = vmatpush.bf16.msrb.mxu3 %v2771_v31 }
 0x165   : > { %v890_v36 = vpop.f32.mrf.mxu1  ;;  %1057 = vmatmul.bf16.gmra.mxu2 %v969_v33 }
 0x166   : > { %v891_v37 = vadd.f32 %v3435_v11, %v890_v36 }
 0x168   : > { %v940_v39 = vmul.f32 0.01, %v891_v37  ;;  %vm924_vm5 = vcmp.ge.f32.partialorder %v891_v37, 0.0 }
 0x16a   : > { %v956_v44 = vsel %vm924_vm5, %v891_v37, %v940_v39  ;;  %v2770_v39 = vld [vmem:[#allocation5 + $0x18] sm:$0xff] }
 0x16b   : > { %1221 = vmatpush.bf16.msrb.mxu3 %v2770_v39 }
 0x16d   : > { %v892_v38 = vpop.f32.mrf.mxu1 }
 0x16e   : > { %v893_v41 = vadd.f32 %v3435_v11, %v892_v38 }
 0x170   : > { %v941_v43 = vmul.f32 0.01, %v893_v41  ;;  %vm925_vm6 = vcmp.ge.f32.partialorder %v893_v41, 0.0 }
 0x172   : > { %v957_v45 = vsel %vm925_vm6, %v893_v41, %v941_v43  ;;  %v2769_v43 = vld [vmem:[#allocation5 + $0x10] sm:$0xff] }
 0x173   : > { %v970_v46 = vpack.c.bf16 %v957_v45, %v956_v44  ;;  %1222 = vmatpush.bf16.msrb.mxu3 %v2769_v43 }
 0x175   : > { %v895_v47 = vpop.f32.mrf.mxu1  ;;  %1062 = vmatmul.bf16.gmra.mxu2 %v970_v46 }
 0x176   : > { %v896_v48 = vadd.f32 %v3435_v11, %v895_v47  ;;  %v2768_v47 = vld [vmem:[#allocation5 + $0x8] sm:$0xff] }
 0x177   : > { %1223 = vmatpush.bf16.msrb.mxu3 %v2768_v47 }
 0x178   : > { %v942_v50 = vmul.f32 0.01, %v896_v48  ;;  %vm926_vm7 = vcmp.ge.f32.partialorder %v896_v48, 0.0 }
 0x17a   : > { %v958_v57 = vsel %vm926_vm7, %v896_v48, %v942_v50 }
 0x17d   : > { %v897_v49 = vpop.f32.mrf.mxu1 }
 0x17e   : > { %v898_v51 = vadd.f32 %v3435_v11, %v897_v49 }
 0x180   : > { %v943_v56 = vmul.f32 0.01, %v898_v51  ;;  %vm927_vm8 = vcmp.ge.f32.partialorder %v898_v51, 0.0 }
 0x182   : > { %v959_v58 = vsel %vm927_vm8, %v898_v51, %v943_v56  ;;  %v2767_v56 = vld [vmem:[#allocation5] sm:$0xff] }
 0x183   : > { %v971_v59 = vpack.c.bf16 %v959_v58, %v958_v57  ;;  %1224 = vmatpush.bf16.msrb.mxu3 %v2767_v56  ;;  %v3456_v58 = vld [vmem:[%s3812_s6] ss:$0 sm:$0xff] }
 0x185   : > { %v900_v60 = vpop.f32.mrf.mxu1  ;;  %1067 = vmatmul.bf16.gmra.mxu2 %v971_v59 }
 0x186   : > { %v901_v61 = vadd.f32 %v3435_v11, %v900_v60 }
 0x188   : > { %v944_v63 = vmul.f32 0.01, %v901_v61  ;;  %vm928_vm9 = vcmp.ge.f32.partialorder %v901_v61, 0.0 }
 0x18a   : > { %v960_v2 = vsel %vm928_vm9, %v901_v61, %v944_v63 }
 0x18d   : > { %v902_v62 = vpop.f32.mrf.mxu1 }
 0x18e   : > { %v903_v0 = vadd.f32 %v3435_v11, %v902_v62 }
 0x190   : > { %v945_v1 = vmul.f32 0.01, %v903_v0  ;;  %vm929_vm10 = vcmp.ge.f32.partialorder %v903_v0, 0.0 }
 0x192   : > { %v961_v7 = vsel %vm929_vm10, %v903_v0, %v945_v1 }
 0x193   : > { %v972_v8 = vpack.c.bf16 %v961_v7, %v960_v2 }
 0x195   : > { %v905_v9 = vpop.f32.mrf.mxu1  ;;  %1072 = vmatmul.bf16.gmra.mxu2 %v972_v8 }
 0x196   : > { %v906_v17 = vadd.f32 %v3435_v11, %v905_v9 }
 0x198   : > { %v946_v12 = vmul.f32 0.01, %v906_v17  ;;  %vm930_vm11 = vcmp.ge.f32.partialorder %v906_v17, 0.0 }
 0x19a   : > { %v962_v15 = vsel %vm930_vm11, %v906_v17, %v946_v12 }
 0x19d   : > { %v907_v10 = vpop.f32.mrf.mxu1 }
 0x19e   : > { %v908_v13 = vadd.f32 %v3435_v11, %v907_v10 }
 0x1a0   : > { %v947_v14 = vmul.f32 0.01, %v908_v13  ;;  %vm931_vm12 = vcmp.ge.f32.partialorder %v908_v13, 0.0 }
 0x1a2   : > { %v963_v16 = vsel %vm931_vm12, %v908_v13, %v947_v14 }
 0x1a3   : > { %v973_v20 = vpack.c.bf16 %v963_v16, %v962_v15 }
 0x1a5   : > { %v910_v21 = vpop.f32.mrf.mxu1  ;;  %1077 = vmatmul.bf16.gmra.mxu2 %v973_v20 }
 0x1a6   : > { %v911_v24 = vadd.f32 %v3435_v11, %v910_v21 }
 0x1a8   : > { %v948_v29 = vmul.f32 0.01, %v911_v24  ;;  %vm932_vm13 = vcmp.ge.f32.partialorder %v911_v24, 0.0 }
 0x1aa   : > { %v964_v33 = vsel %vm932_vm13, %v911_v24, %v948_v29 }
 0x1ad   : > { %v912_v28 = vpop.f32.mrf.mxu1 }
 0x1ae   : > { %v913_v30 = vadd.f32 %v3435_v11, %v912_v28 }
 0x1b0   : > { %v949_v32 = vmul.f32 0.01, %v913_v30  ;;  %vm933_vm14 = vcmp.ge.f32.partialorder %v913_v30, 0.0 }
 0x1b2   : > { %v965_v36 = vsel %vm933_vm14, %v913_v30, %v949_v32 }
 0x1b3   : > { %v974_v37 = vpack.c.bf16 %v965_v36, %v964_v33 }
 0x1b5   : > { %v915_v38 = vpop.f32.mrf.mxu1  ;;  %1082 = vmatmul.bf16.gmra.mxu2 %v974_v37 }
 0x1b6   : > { %v916_v41 = vadd.f32 %v3435_v11, %v915_v38 }
 0x1b8   : > { %v950_v45 = vmul.f32 0.01, %v916_v41  ;;  %vm934_vm15 = vcmp.ge.f32.partialorder %v916_v41, 0.0 }
 0x1ba   : > { %v966_v49 = vsel %vm934_vm15, %v916_v41, %v950_v45 }
 0x1bd   : > { %v917_v44 = vpop.f32.mrf.mxu1 }
 0x1be   : > { %v918_v46 = vadd.f32 %v3435_v11, %v917_v44 }
 0x1c0   : > { %v951_v48 = vmul.f32 0.01, %v918_v46  ;;  %vm935_vm0 = vcmp.ge.f32.partialorder %v918_v46, 0.0 }
 0x1c2   : > { %v967_v50 = vsel %vm935_vm0, %v918_v46, %v951_v48 }
 0x1c3   : > { %v975_v51 = vpack.c.bf16 %v967_v50, %v966_v49 }
 0x1c5   : > { %1087 = vmatmul.bf16.gmra.mxu2 %v975_v51 }
 0x1d8   : > { %v1053_v57 = vpop.f32.mrf.mxu2 }
 0x1d9   : > { %v1054_v59 = vadd.f32 %v3456_v58, %v1053_v57 }
 0x1db   : > { %v1109_v60 = vmul.f32 0.01, %v1054_v59  ;;  %vm1093_vm1 = vcmp.ge.f32.partialorder %v1054_v59, 0.0 }
 0x1dd   : > { %v1125_v63 = vsel %vm1093_vm1, %v1054_v59, %v1109_v60 }
 0x1e0   : > { %v1055_v11 = vpop.f32.mrf.mxu2 }
 0x1e1   : > { %v1056_v61 = vadd.f32 %v3456_v58, %v1055_v11 }
 0x1e3   : > { %vm1094_vm2 = vcmp.ge.f32.partialorder %v1056_v61, 0.0  ;;  %v1110_v62 = vmul.f32 0.01, %v1056_v61 }
 0x1e5   : > { %v1126_v0 = vsel %vm1094_vm2, %v1056_v61, %v1110_v62 }
 0x1e6   : > { %v1141_v1 = vpack.c.bf16 %v1126_v0, %v1125_v63 }
 0x1e8   : > { %v1058_v2 = vpop.f32.mrf.mxu2  ;;  %1225 = vmatmul.bf16.vlgmr.msrb.gmra.mxu3 %v1141_v1  ;;  %v2782_v1 = vld [vmem:[%s3809_s3 + $0x78] sm:$0xff] }
 0x1e9   : > { %v1059_v7 = vadd.f32 %v3456_v58, %v1058_v2  ;;  %1448 = vmatpush.bf16.msrb.mxu0 %v2782_v1  ;;  %v2781_v2 = vld [vmem:[%s3809_s3 + $0x70] sm:$0xff]  ;;  %v1269_v1 = vunpack.c.l.bf16 %v3380_v42  ;;  %v2788_v42 = vld [vmem:[#allocation2 + $0x68] sm:$0xff] }
 0x1eb   : > { %v1111_v9 = vmul.f32 0.01, %v1059_v7  ;;  %vm1095_vm3 = vcmp.ge.f32.partialorder %v1059_v7, 0.0 }
 0x1ed   : > { %v1127_v12 = vsel %vm1095_vm3, %v1059_v7, %v1111_v9  ;;  %1449 = vmatpush.bf16.msrb.mxu0 %v2781_v2 }
 0x1f0   : > { %v1060_v8 = vpop.f32.mrf.mxu2 }
 0x1f1   : > { %v1061_v17 = vadd.f32 %v3456_v58, %v1060_v8  ;;  %v2780_v8 = vld [vmem:[%s3809_s3 + $0x68] sm:$0xff] }
 0x1f2   : > { %1450 = vmatpush.bf16.msrb.mxu0 %v2780_v8 }
 0x1f3   : > { %v1112_v10 = vmul.f32 0.01, %v1061_v17  ;;  %vm1096_vm4 = vcmp.ge.f32.partialorder %v1061_v17, 0.0 }
 0x1f5   : > { %v1128_v13 = vsel %vm1096_vm4, %v1061_v17, %v1112_v10 }
 0x1f6   : > { %v1142_v14 = vpack.c.bf16 %v1128_v13, %v1127_v12 }
 0x1f8   : > { %v1063_v15 = vpop.f32.mrf.mxu2  ;;  %1230 = vmatmul.bf16.gmra.mxu3 %v1142_v14 }
 0x1f9   : > { %v1064_v16 = vadd.f32 %v3456_v58, %v1063_v15 }
 0x1fb   : > { %v1113_v21 = vmul.f32 0.01, %v1064_v16  ;;  %vm1097_vm5 = vcmp.ge.f32.partialorder %v1064_v16, 0.0 }
 0x1fd   : > { %v1129_v24 = vsel %vm1097_vm5, %v1064_v16, %v1113_v21 }
 0x200   : > { %v1065_v20 = vpop.f32.mrf.mxu2 }
 0x201   : > { %v1066_v22 = vadd.f32 %v3456_v58, %v1065_v20  ;;  %v2779_v20 = vld [vmem:[%s3809_s3 + $0x60] sm:$0xff] }
 0x202   : > { %1451 = vmatpush.bf16.msrb.mxu0 %v2779_v20 }
 0x203   : > { %v1114_v23 = vmul.f32 0.01, %v1066_v22  ;;  %vm1098_vm6 = vcmp.ge.f32.partialorder %v1066_v22, 0.0 }
 0x205   : > { %v1130_v26 = vsel %vm1098_vm6, %v1066_v22, %v1114_v23  ;;  %v2778_v22 = vld [vmem:[%s3809_s3 + $0x58] sm:$0xff] }
 0x206   : > { %v1143_v28 = vpack.c.bf16 %v1130_v26, %v1129_v24  ;;  %1452 = vmatpush.bf16.msrb.mxu0 %v2778_v22  ;;  %v1271_v22 = vunpack.c.l.bf16 %v3388_v54  ;;  %v2787_v54 = vld [vmem:[#allocation2 + $0x60] sm:$0xff] }
 0x208   : > { %v1068_v29 = vpop.f32.mrf.mxu2  ;;  %1235 = vmatmul.bf16.gmra.mxu3 %v1143_v28 }
 0x209   : > { %v1069_v30 = vadd.f32 %v3456_v58, %v1068_v29  ;;  %v2777_v29 = vld [vmem:[%s3809_s3 + $0x50] sm:$0xff] }
 0x20a   : > { %1453 = vmatpush.bf16.msrb.mxu0 %v2777_v29 }
 0x20b   : > { %v1115_v32 = vmul.f32 0.01, %v1069_v30  ;;  %vm1099_vm7 = vcmp.ge.f32.partialorder %v1069_v30, 0.0 }
 0x20d   : > { %v1131_v37 = vsel %vm1099_vm7, %v1069_v30, %v1115_v32 }
 0x210   : > { %v1070_v31 = vpop.f32.mrf.mxu2 }
 0x211   : > { %v1071_v33 = vadd.f32 %v3456_v58, %v1070_v31 }
 0x213   : > { %v1116_v36 = vmul.f32 0.01, %v1071_v33  ;;  %vm1100_vm8 = vcmp.ge.f32.partialorder %v1071_v33, 0.0 }
 0x215   : > { %v1132_v38 = vsel %vm1100_vm8, %v1071_v33, %v1116_v36  ;;  %v2776_v33 = vld [vmem:[%s3809_s3 + $0x48] sm:$0xff]  ;;  %v3501_v36 = vld [vmem:[%s3814_s8] ss:$0 sm:$0xff] }
 0x216   : > { %v1144_v39 = vpack.c.bf16 %v1132_v38, %v1131_v37  ;;  %1454 = vmatpush.bf16.msrb.mxu0 %v2776_v33 }
 0x218   : > { %v1073_v41 = vpop.f32.mrf.mxu2  ;;  %1240 = vmatmul.bf16.gmra.mxu3 %v1144_v39  ;;  %v1266_v39 = vunpack.c.l.bf16 %v3370_v25 }
 0x219   : > { %v1074_v43 = vadd.f32 %v3456_v58, %v1073_v41 }
 0x21b   : > { %v1117_v45 = vmul.f32 0.01, %v1074_v43  ;;  %vm1101_vm9 = vcmp.ge.f32.partialorder %v1074_v43, 0.0 }
 0x21d   : > { %v1133_v48 = vsel %vm1101_vm9, %v1074_v43, %v1117_v45  ;;  %v2790_v43 = vld [vmem:[#allocation2 + $0x78] sm:$0xff] }
 0x21e   : > { %1623 = vmatpush.bf16.msra.mxu1 %v2790_v43 }
 0x220   : > { %v1075_v44 = vpop.f32.mrf.mxu2 }
 0x221   : > { %v1076_v46 = vadd.f32 %v3456_v58, %v1075_v44 }
 0x223   : > { %v1118_v47 = vmul.f32 0.01, %v1076_v46  ;;  %vm1102_vm10 = vcmp.ge.f32.partialorder %v1076_v46, 0.0 }
 0x225   : > { %v1134_v49 = vsel %vm1102_vm10, %v1076_v46, %v1118_v47  ;;  %v1267_v47 = vunpack.c.l.bf16 %v3372_v27  ;;  %v2789_v27 = vld [vmem:[#allocation2 + $0x70] sm:$0xff] }
 0x226   : > { %v1145_v50 = vpack.c.bf16 %v1134_v49, %v1133_v48  ;;  %1624 = vmatpush.bf16.msra.mxu1 %v2789_v27 }
 0x228   : > { %v1078_v51 = vpop.f32.mrf.mxu2  ;;  %1245 = vmatmul.bf16.gmra.mxu3 %v1145_v50 }
 0x229   : > { %v1079_v56 = vadd.f32 %v3456_v58, %v1078_v51 }
 0x22a   : > { %1625 = vmatpush.bf16.msra.mxu1 %v2788_v42 }
 0x22b   : > { %v1119_v59 = vmul.f32 0.01, %v1079_v56  ;;  %vm1103_vm11 = vcmp.ge.f32.partialorder %v1079_v56, 0.0 }
 0x22d   : > { %v1135_v61 = vsel %vm1103_vm11, %v1079_v56, %v1119_v59 }
 0x22e   : > { %1626 = vmatpush.bf16.msra.mxu1 %v2787_v54 }
 0x230   : > { %v1080_v57 = vpop.f32.mrf.mxu2 }
 0x231   : > { %v1081_v11 = vadd.f32 %v3456_v58, %v1080_v57 }
 0x233   : > { %v1120_v60 = vmul.f32 0.01, %v1081_v11  ;;  %vm1104_vm12 = vcmp.ge.f32.partialorder %v1081_v11, 0.0 }
 0x235   : > { %v1136_v62 = vsel %vm1104_vm12, %v1081_v11, %v1120_v60  ;;  %v1268_v11 = vunpack.c.l.bf16 %v3378_v40 }
 0x236   : > { %v1146_v63 = vpack.c.bf16 %v1136_v62, %v1135_v61 }
 0x238   : > { %v1083_v0 = vpop.f32.mrf.mxu2  ;;  %1250 = vmatmul.bf16.gmra.mxu3 %v1146_v63 }
 0x239   : > { %v1084_v7 = vadd.f32 %v3456_v58, %v1083_v0 }
 0x23b   : > { %v1121_v17 = vmul.f32 0.01, %v1084_v7  ;;  %vm1105_vm13 = vcmp.ge.f32.partialorder %v1084_v7, 0.0 }
 0x23d   : > { %v1137_v13 = vsel %vm1105_vm13, %v1084_v7, %v1121_v17 }
 0x240   : > { %v1085_v9 = vpop.f32.mrf.mxu2 }
 0x241   : > { %v1086_v10 = vadd.f32 %v3456_v58, %v1085_v9 }
 0x243   : > { %v1122_v12 = vmul.f32 0.01, %v1086_v10  ;;  %vm1106_vm14 = vcmp.ge.f32.partialorder %v1086_v10, 0.0 }
 0x245   : > { %v1138_v14 = vsel %vm1106_vm14, %v1086_v10, %v1122_v12 }
 0x246   : > { %v1147_v15 = vpack.c.bf16 %v1138_v14, %v1137_v13  ;;  %v1270_v13 = vunpack.c.l.bf16 %v3386_v53 }
 0x248   : > { %v1088_v16 = vpop.f32.mrf.mxu2  ;;  %1255 = vmatmul.bf16.gmra.mxu3 %v1147_v15 }
 0x249   : > { %v1089_v21 = vadd.f32 %v3456_v58, %v1088_v16 }
 0x24b   : > { %v1123_v24 = vmul.f32 0.01, %v1089_v21  ;;  %vm1107_vm15 = vcmp.ge.f32.partialorder %v1089_v21, 0.0 }
 0x24d   : > { %v1139_v30 = vsel %vm1107_vm15, %v1089_v21, %v1123_v24 }
 0x250   : > { %v1090_v23 = vpop.f32.mrf.mxu2 }
 0x251   : > { %v1091_v26 = vadd.f32 %v3456_v58, %v1090_v23  ;;  %v2775_v58 = vld [vmem:[%s3809_s3 + $0x40] sm:$0xff] }
 0x252   : > { %1455 = vmatpush.bf16.msrb.mxu0 %v2775_v58 }
 0x253   : > { %v1124_v28 = vmul.f32 0.01, %v1091_v26  ;;  %vm1108_vm0 = vcmp.ge.f32.partialorder %v1091_v26, 0.0 }
 0x255   : > { %v1140_v31 = vsel %vm1108_vm0, %v1091_v26, %v1124_v28 }
 0x256   : > { %v1148_v32 = vpack.c.bf16 %v1140_v31, %v1139_v30 }
 0x258   : > { %1260 = vmatmul.bf16.gmra.mxu3 %v1148_v32  ;;  %v1272_v32 = vunpack.c.l.bf16 %v3394_v3 }
 0x26b   : > { %v1226_v37 = vpop.f32.mrf.mxu3 }
 0x26c   : > { %v1227_v38 = vadd.f32 %v3501_v36, %v1226_v37 }
 0x26e   : > { %v1282_v41 = vadd.f32 %v1266_v39, %v1227_v38 }
 0x270   : > { %v1298_v45 = vmax.f32 %v1282_v41, 0.0  ;;  %v1273_v41 = vunpack.c.l.bf16 %v3396_v4  ;;  %v2786_v4 = vld [vmem:[#allocation2 + $0x58] sm:$0xff] }
 0x271   : > { %1627 = vmatpush.bf16.msra.mxu1 %v2786_v4 }
 0x272   : > { %v3507_v49 = vpack.c.bf16 %v1298_v45, %v1298_v45 }
 0x273   : > { %v1228_v44 = vpop.f32.mrf.mxu3 }
 0x274   : > { %v1229_v46 = vadd.f32 %v3501_v36, %v1228_v44  ;;  %v1368_v57 = vunpack.c.l.b16 %v3507_v49 }
 0x276   : > { %v1283_v48 = vadd.f32 %v1267_v47, %v1229_v46 }
 0x278   : > { %v1299_v50 = vmax.f32 %v1283_v48, 0.0 }
 0x27a   : > { %v3509_v51 = vpack.c.bf16 %v1299_v50, %v1299_v50 }
 0x27b   : > { %v1231_v56 = vpop.f32.mrf.mxu3 }
 0x27c   : > { %v1232_v25 = vadd.f32 %v3501_v36, %v1231_v56  ;;  %v1369_v59 = vunpack.c.l.b16 %v3509_v51  ;;  %v1274_v56 = vunpack.c.l.bf16 %v3402_v18 }
 0x27e   : > { %v1384_v60 = vpack.c.b16 %v1369_v59, %v1368_v57  ;;  %v1284_v61 = vadd.f32 %v1268_v11, %v1232_v25 }
 0x280   : > { %1456 = vmatmul.bf16.vlgmr.msrb.gmra.mxu0 %v1384_v60  ;;  %v1300_v63 = vmax.f32 %v1284_v61, 0.0  ;;  %v1275_v61 = vunpack.c.l.bf16 %v3404_v19  ;;  %v2785_v19 = vld [vmem:[#allocation2 + $0x50] sm:$0xff] }
 0x281   : > { %1628 = vmatpush.bf16.msra.mxu1 %v2785_v19 }
 0x282   : > { %v3517_v7 = vpack.c.bf16 %v1300_v63, %v1300_v63 }
 0x283   : > { %v1233_v62 = vpop.f32.mrf.mxu3 }
 0x284   : > { %v1234_v0 = vadd.f32 %v3501_v36, %v1233_v62  ;;  %v1370_v10 = vunpack.c.l.b16 %v3517_v7 }
 0x286   : > { %v1285_v2 = vadd.f32 %v1269_v1, %v1234_v0 }
 0x288   : > { %v1301_v8 = vmax.f32 %v1285_v2, 0.0 }
 0x28a   : > { %v3519_v9 = vpack.c.bf16 %v1301_v8, %v1301_v8 }
 0x28b   : > { %v1236_v17 = vpop.f32.mrf.mxu3 }
 0x28c   : > { %v1237_v40 = vadd.f32 %v3501_v36, %v1236_v17  ;;  %v1371_v12 = vunpack.c.l.b16 %v3519_v9  ;;  %v1276_v17 = vunpack.c.l.bf16 %v3410_v34 }
 0x28e   : > { %v1385_v14 = vpack.c.b16 %v1371_v12, %v1370_v10  ;;  %v1286_v15 = vadd.f32 %v1270_v13, %v1237_v40 }
 0x290   : > { %1461 = vmatmul.bf16.gmra.mxu0 %v1385_v14  ;;  %v1302_v20 = vmax.f32 %v1286_v15, 0.0  ;;  %v1277_v15 = vunpack.c.l.bf16 %v3412_v35 }
 0x292   : > { %v3527_v24 = vpack.c.bf16 %v1302_v20, %v1302_v20 }
 0x293   : > { %v1238_v16 = vpop.f32.mrf.mxu3 }
 0x294   : > { %v1239_v21 = vadd.f32 %v3501_v36, %v1238_v16  ;;  %v1372_v30 = vunpack.c.l.b16 %v3527_v24 }
 0x296   : > { %v1287_v23 = vadd.f32 %v1271_v22, %v1239_v21  ;;  %v2784_v22 = vld [vmem:[#allocation2 + $0x48] sm:$0xff] }
 0x297   : > { %1629 = vmatpush.bf16.msra.mxu1 %v2784_v22 }
 0x298   : > { %v1303_v26 = vmax.f32 %v1287_v23, 0.0 }
 0x29a   : > { %v3529_v28 = vpack.c.bf16 %v1303_v26, %v1303_v26 }
 0x29b   : > { %v1241_v29 = vpop.f32.mrf.mxu3 }
 0x29c   : > { %v1242_v53 = vadd.f32 %v3501_v36, %v1241_v29  ;;  %v1373_v31 = vunpack.c.l.b16 %v3529_v28 }
 0x29e   : > { %v1386_v33 = vpack.c.b16 %v1373_v31, %v1372_v30  ;;  %v1288_v58 = vadd.f32 %v1272_v32, %v1242_v53  ;;  %v1278_v53 = vunpack.c.l.bf16 %v3418_v52 }
 0x2a0   : > { %1466 = vmatmul.bf16.gmra.mxu0 %v1386_v33  ;;  %v1304_v38 = vmax.f32 %v1288_v58, 0.0  ;;  %v1279_v58 = vunpack.c.l.bf16 %v3420_v55 }
 0x2a2   : > { %v3537_v44 = vpack.c.bf16 %v1304_v38, %v1304_v38 }
 0x2a3   : > { %v1243_v37 = vpop.f32.mrf.mxu3 }
 0x2a4   : > { %v1244_v39 = vadd.f32 %v3501_v36, %v1243_v37  ;;  %v1374_v48 = vunpack.c.l.b16 %v3537_v44 }
 0x2a6   : > { %v1289_v43 = vadd.f32 %v1273_v41, %v1244_v39 }
 0x2a8   : > { %v1305_v45 = vmax.f32 %v1289_v43, 0.0 }
 0x2aa   : > { %v3539_v46 = vpack.c.bf16 %v1305_v45, %v1305_v45 }
 0x2ab   : > { %v1246_v47 = vpop.f32.mrf.mxu3 }
 0x2ac   : > { %v1247_v3 = vadd.f32 %v3501_v36, %v1246_v47  ;;  %v1375_v50 = vunpack.c.l.b16 %v3539_v46  ;;  %v1280_v47 = vunpack.c.l.bf16 %v3426_v5 }
 0x2ae   : > { %v1387_v57 = vpack.c.b16 %v1375_v50, %v1374_v48  ;;  %v1290_v25 = vadd.f32 %v1274_v56, %v1247_v3  ;;  %v2783_v50 = vld [vmem:[#allocation2 + $0x40] sm:$0xff] }
 0x2af   : > { %1630 = vmatpush.bf16.msra.mxu1 %v2783_v50  ;;  %v2794_v50 = vld [vmem:[#allocation5 + $0x58] sm:$0xff] }
 0x2b0   : > { %1471 = vmatmul.bf16.gmra.mxu0 %v1387_v57  ;;  %v1306_v11 = vmax.f32 %v1290_v25, 0.0  ;;  %v1281_v25 = vunpack.c.l.bf16 %v3428_v6  ;;  %v3586_v6 = vld [vmem:[%s3810_s4 + $0x1] ss:$0 sm:$0xff] }
 0x2b2   : > { %v3547_v62 = vpack.c.bf16 %v1306_v11, %v1306_v11 }
 0x2b3   : > { %v1248_v59 = vpop.f32.mrf.mxu3 }
 0x2b4   : > { %v1249_v60 = vadd.f32 %v3501_v36, %v1248_v59  ;;  %v1376_v2 = vunpack.c.l.b16 %v3547_v62 }
 0x2b6   : > { %v1291_v27 = vadd.f32 %v1275_v61, %v1249_v60 }
 0x2b8   : > { %v1307_v63 = vmax.f32 %v1291_v27, 0.0 }
 0x2ba   : > { %v3549_v0 = vpack.c.bf16 %v1307_v63, %v1307_v63  ;;  %v2798_v63 = vld [vmem:[#allocation5 + $0x78] sm:$0xff] }
 0x2bb   : > { %v1251_v1 = vpop.f32.mrf.mxu3  ;;  %1798 = vmatpush.bf16.msra.mxu2 %v2798_v63  ;;  %v2793_v63 = vld [vmem:[#allocation5 + $0x50] sm:$0xff] }
 0x2bc   : > { %v1252_v18 = vadd.f32 %v3501_v36, %v1251_v1  ;;  %v1377_v8 = vunpack.c.l.b16 %v3549_v0 }
 0x2be   : > { %v1388_v40 = vpack.c.b16 %v1377_v8, %v1376_v2  ;;  %v1292_v10 = vadd.f32 %v1276_v17, %v1252_v18 }
 0x2c0   : > { %1476 = vmatmul.bf16.gmra.mxu0 %v1388_v40  ;;  %v1308_v13 = vmax.f32 %v1292_v10, 0.0  ;;  %v2797_v40 = vld [vmem:[#allocation5 + $0x70] sm:$0xff] }
 0x2c1   : > { %1799 = vmatpush.bf16.msra.mxu2 %v2797_v40 }
 0x2c2   : > { %v3557_v16 = vpack.c.bf16 %v1308_v13, %v1308_v13 }
 0x2c3   : > { %v1253_v12 = vpop.f32.mrf.mxu3 }
 0x2c4   : > { %v1254_v14 = vadd.f32 %v3501_v36, %v1253_v12  ;;  %v1378_v26 = vunpack.c.l.b16 %v3557_v16 }
 0x2c6   : > { %v1293_v42 = vadd.f32 %v1277_v15, %v1254_v14 }
 0x2c8   : > { %v1309_v20 = vmax.f32 %v1293_v42, 0.0 }
 0x2ca   : > { %v3559_v21 = vpack.c.bf16 %v1309_v20, %v1309_v20 }
 0x2cb   : > { %v1256_v23 = vpop.f32.mrf.mxu3 }
 0x2cc   : > { %v1257_v34 = vadd.f32 %v3501_v36, %v1256_v23  ;;  %v1379_v29 = vunpack.c.l.b16 %v3559_v21  ;;  %v2796_v23 = vld [vmem:[#allocation5 + $0x68] sm:$0xff] }
 0x2cd   : > { %1800 = vmatpush.bf16.msra.mxu2 %v2796_v23 }
 0x2ce   : > { %v1389_v30 = vpack.c.b16 %v1379_v29, %v1378_v26  ;;  %v1294_v35 = vadd.f32 %v1278_v53, %v1257_v34 }
 0x2d0   : > { %1481 = vmatmul.bf16.gmra.mxu0 %v1389_v30  ;;  %v1310_v32 = vmax.f32 %v1294_v35, 0.0 }
 0x2d2   : > { %v3567_v37 = vpack.c.bf16 %v1310_v32, %v1310_v32 }
 0x2d3   : > { %v1258_v31 = vpop.f32.mrf.mxu3 }
 0x2d4   : > { %v1259_v33 = vadd.f32 %v3501_v36, %v1258_v31  ;;  %v1380_v52 = vunpack.c.l.b16 %v3567_v37 }
 0x2d6   : > { %v1295_v54 = vadd.f32 %v1279_v58, %v1259_v33  ;;  %v2795_v58 = vld [vmem:[#allocation5 + $0x60] sm:$0xff] }
 0x2d7   : > { %1801 = vmatpush.bf16.msra.mxu2 %v2795_v58 }
 0x2d8   : > { %v1311_v38 = vmax.f32 %v1295_v54, 0.0 }
 0x2da   : > { %v3569_v39 = vpack.c.bf16 %v1311_v38, %v1311_v38 }
 0x2db   : > { %v1261_v41 = vpop.f32.mrf.mxu3  ;;  %1802 = vmatpush.bf16.msra.mxu2 %v2794_v50 }
 0x2dc   : > { %v1262_v43 = vadd.f32 %v3501_v36, %v1261_v41  ;;  %v1381_v45 = vunpack.c.l.b16 %v3569_v39 }
 0x2de   : > { %v1390_v3 = vpack.c.b16 %v1381_v45, %v1380_v52  ;;  %v1296_v48 = vadd.f32 %v1280_v47, %v1262_v43 }
 0x2df   : > { %1803 = vmatpush.bf16.msra.mxu2 %v2793_v63 }
 0x2e0   : > { %1486 = vmatmul.bf16.gmra.mxu0 %v1390_v3  ;;  %v1312_v56 = vmax.f32 %v1296_v48, 0.0 }
 0x2e2   : > { %v3577_v59 = vpack.c.bf16 %v1312_v56, %v1312_v56 }
 0x2e3   : > { %v1263_v55 = vpop.f32.mrf.mxu3 }
 0x2e4   : > { %v1264_v57 = vadd.f32 %v3501_v36, %v1263_v55  ;;  %v1382_v61 = vunpack.c.l.b16 %v3577_v59 }
 0x2e6   : > { %v1297_v4 = vadd.f32 %v1281_v25, %v1264_v57 }
 0x2e8   : > { %v1313_v11 = vmax.f32 %v1297_v4, 0.0 }
 0x2ea   : > { %v3579_v60 = vpack.c.bf16 %v1313_v11, %v1313_v11 }
 0x2ec   : > { %v1383_v5 = vunpack.c.l.b16 %v3579_v60 }
 0x2ee   : > { %v1391_v27 = vpack.c.b16 %v1383_v5, %v1382_v61 }
 0x2f0   : > { %1491 = vmatmul.bf16.gmra.mxu0 %v1391_v27 }
 0x2fd   : > { %v1457_v1 = vpop.f32.mrf.mxu0 }
 0x2fe   : > { %v1458_v36 = vadd.f32 %v3586_v6, %v1457_v1 }
 0x300   : > { %v1513_v2 = vmul.f32 0.01, %v1458_v36  ;;  %vm1497_vm1 = vcmp.ge.f32.partialorder %v1458_v36, 0.0 }
 0x302   : > { %v1529_v10 = vsel %vm1497_vm1, %v1458_v36, %v1513_v2 }
 0x305   : > { %v1459_v18 = vpop.f32.mrf.mxu0 }
 0x306   : > { %v1460_v8 = vadd.f32 %v3586_v6, %v1459_v18 }
 0x308   : > { %vm1498_vm2 = vcmp.ge.f32.partialorder %v1460_v8, 0.0  ;;  %v1514_v17 = vmul.f32 0.01, %v1460_v8 }
 0x30a   : > { %v1530_v19 = vsel %vm1498_vm2, %v1460_v8, %v1514_v17 }
 0x30b   : > { %v1545_v12 = vpack.c.bf16 %v1530_v19, %v1529_v10 }
 0x30d   : > { %v1462_v13 = vpop.f32.mrf.mxu0  ;;  %1631 = vmatmul.bf16.vlgmr.msra.gmra.mxu1 %v1545_v12  ;;  %v2792_v12 = vld [vmem:[#allocation5 + $0x48] sm:$0xff] }
 0x30e   : > { %v1463_v14 = vadd.f32 %v3586_v6, %v1462_v13  ;;  %1804 = vmatpush.bf16.msra.mxu2 %v2792_v12 }
 0x310   : > { %v1515_v42 = vmul.f32 0.01, %v1463_v14  ;;  %vm1499_vm3 = vcmp.ge.f32.partialorder %v1463_v14, 0.0 }
 0x312   : > { %v1531_v34 = vsel %vm1499_vm3, %v1463_v14, %v1515_v42 }
 0x315   : > { %v1464_v15 = vpop.f32.mrf.mxu0 }
 0x316   : > { %v1465_v20 = vadd.f32 %v3586_v6, %v1464_v15 }
 0x318   : > { %v1516_v22 = vmul.f32 0.01, %v1465_v20  ;;  %vm1500_vm4 = vcmp.ge.f32.partialorder %v1465_v20, 0.0 }
 0x31a   : > { %v1532_v26 = vsel %vm1500_vm4, %v1465_v20, %v1516_v22 }
 0x31b   : > { %v1546_v29 = vpack.c.bf16 %v1532_v26, %v1531_v34 }
 0x31d   : > { %v1467_v53 = vpop.f32.mrf.mxu0  ;;  %1636 = vmatmul.bf16.gmra.mxu1 %v1546_v29 }
 0x31e   : > { %v1468_v30 = vadd.f32 %v3586_v6, %v1467_v53 }
 0x320   : > { %v1517_v31 = vmul.f32 0.01, %v1468_v30  ;;  %vm1501_vm5 = vcmp.ge.f32.partialorder %v1468_v30, 0.0 }
 0x322   : > { %v1533_v54 = vsel %vm1501_vm5, %v1468_v30, %v1517_v31  ;;  %v2791_v31 = vld [vmem:[#allocation5 + $0x40] sm:$0xff] }
 0x323   : > { %1805 = vmatpush.bf16.msra.mxu2 %v2791_v31 }
 0x325   : > { %v1469_v35 = vpop.f32.mrf.mxu0 }
 0x326   : > { %v1470_v32 = vadd.f32 %v3586_v6, %v1469_v35 }
 0x328   : > { %vm1502_vm6 = vcmp.ge.f32.partialorder %v1470_v32, 0.0  ;;  %v1518_v33 = vmul.f32 0.01, %v1470_v32 }
 0x32a   : > { %v1534_v38 = vsel %vm1502_vm6, %v1470_v32, %v1518_v33 }
 0x32b   : > { %v1547_v41 = vpack.c.bf16 %v1534_v38, %v1533_v54 }
 0x32d   : > { %v1472_v43 = vpop.f32.mrf.mxu0  ;;  %1641 = vmatmul.bf16.gmra.mxu1 %v1547_v41 }
 0x32e   : > { %v1473_v52 = vadd.f32 %v3586_v6, %v1472_v43 }
 0x330   : > { %v1519_v47 = vmul.f32 0.01, %v1473_v52  ;;  %vm1503_vm7 = vcmp.ge.f32.partialorder %v1473_v52, 0.0 }
 0x332   : > { %v1535_v55 = vsel %vm1503_vm7, %v1473_v52, %v1519_v47  ;;  %v3607_v47 = vld [vmem:[%s3812_s6 + $0x1] ss:$0 sm:$0xff] }
 0x335   : > { %v1474_v45 = vpop.f32.mrf.mxu0 }
 0x336   : > { %v1475_v3 = vadd.f32 %v3586_v6, %v1474_v45 }
 0x338   : > { %vm1504_vm8 = vcmp.ge.f32.partialorder %v1475_v3, 0.0  ;;  %v1520_v48 = vmul.f32 0.01, %v1475_v3 }
 0x33a   : > { %v1536_v56 = vsel %vm1504_vm8, %v1475_v3, %v1520_v48  ;;  %v2806_v3 = vld [vmem:[#allocation7 + $0x38] sm:$0xff] }
 0x33b   : > { %v1548_v57 = vpack.c.bf16 %v1536_v56, %v1535_v55  ;;  %1971 = vmatpush.bf16.msra.mxu3 %v2806_v3 }
 0x33d   : > { %v1477_v25 = vpop.f32.mrf.mxu0  ;;  %1646 = vmatmul.bf16.gmra.mxu1 %v1548_v57 }
 0x33e   : > { %v1478_v4 = vadd.f32 %v3586_v6, %v1477_v25 }
 0x340   : > { %v1521_v61 = vmul.f32 0.01, %v1478_v4  ;;  %vm1505_vm9 = vcmp.ge.f32.partialorder %v1478_v4, 0.0 }
 0x342   : > { %v1537_v1 = vsel %vm1505_vm9, %v1478_v4, %v1521_v61  ;;  %v2805_v61 = vld [vmem:[#allocation7 + $0x30] sm:$0xff] }
 0x343   : > { %1972 = vmatpush.bf16.msra.mxu3 %v2805_v61 }
 0x345   : > { %v1479_v11 = vpop.f32.mrf.mxu0 }
 0x346   : > { %v1480_v5 = vadd.f32 %v3586_v6, %v1479_v11 }
 0x348   : > { %vm1506_vm10 = vcmp.ge.f32.partialorder %v1480_v5, 0.0  ;;  %v1522_v27 = vmul.f32 0.01, %v1480_v5 }
 0x34a   : > { %v1538_v36 = vsel %vm1506_vm10, %v1480_v5, %v1522_v27 }
 0x34b   : > { %v1549_v18 = vpack.c.bf16 %v1538_v36, %v1537_v1 }
 0x34d   : > { %v1482_v2 = vpop.f32.mrf.mxu0  ;;  %1651 = vmatmul.bf16.gmra.mxu1 %v1549_v18 }
 0x34e   : > { %v1483_v8 = vadd.f32 %v3586_v6, %v1482_v2 }
 0x350   : > { %v1523_v40 = vmul.f32 0.01, %v1483_v8  ;;  %vm1507_vm11 = vcmp.ge.f32.partialorder %v1483_v8, 0.0 }
 0x352   : > { %v1539_v13 = vsel %vm1507_vm11, %v1483_v8, %v1523_v40  ;;  %v2804_v40 = vld [vmem:[#allocation7 + $0x28] sm:$0xff] }
 0x353   : > { %1973 = vmatpush.bf16.msra.mxu3 %v2804_v40 }
 0x355   : > { %v1484_v17 = vpop.f32.mrf.mxu0 }
 0x356   : > { %v1485_v10 = vadd.f32 %v3586_v6, %v1484_v17 }
 0x358   : > { %vm1508_vm12 = vcmp.ge.f32.partialorder %v1485_v10, 0.0  ;;  %v1524_v19 = vmul.f32 0.01, %v1485_v10 }
 0x35a   : > { %v1540_v14 = vsel %vm1508_vm12, %v1485_v10, %v1524_v19 }
 0x35b   : > { %v1550_v15 = vpack.c.bf16 %v1540_v14, %v1539_v13 }
 0x35d   : > { %v1487_v42 = vpop.f32.mrf.mxu0  ;;  %1656 = vmatmul.bf16.gmra.mxu1 %v1550_v15 }
 0x35e   : > { %v1488_v20 = vadd.f32 %v3586_v6, %v1487_v42 }
 0x360   : > { %v1525_v23 = vmul.f32 0.01, %v1488_v20  ;;  %vm1509_vm13 = vcmp.ge.f32.partialorder %v1488_v20, 0.0 }
 0x362   : > { %v1541_v29 = vsel %vm1509_vm13, %v1488_v20, %v1525_v23  ;;  %v2803_v23 = vld [vmem:[#allocation7 + $0x20] sm:$0xff] }
 0x363   : > { %1974 = vmatpush.bf16.msra.mxu3 %v2803_v23 }
 0x365   : > { %v1489_v22 = vpop.f32.mrf.mxu0 }
 0x366   : > { %v1490_v34 = vadd.f32 %v3586_v6, %v1489_v22 }
 0x368   : > { %vm1510_vm14 = vcmp.ge.f32.partialorder %v1490_v34, 0.0  ;;  %v1526_v26 = vmul.f32 0.01, %v1490_v34 }
 0x36a   : > { %v1542_v53 = vsel %vm1510_vm14, %v1490_v34, %v1526_v26 }
 0x36b   : > { %v1551_v30 = vpack.c.bf16 %v1542_v53, %v1541_v29 }
 0x36d   : > { %v1492_v35 = vpop.f32.mrf.mxu0  ;;  %1661 = vmatmul.bf16.gmra.mxu1 %v1551_v30 }
 0x36e   : > { %v1493_v32 = vadd.f32 %v3586_v6, %v1492_v35 }
 0x370   : > { %v1527_v58 = vmul.f32 0.01, %v1493_v32  ;;  %vm1511_vm15 = vcmp.ge.f32.partialorder %v1493_v32, 0.0 }
 0x372   : > { %v1543_v41 = vsel %vm1511_vm15, %v1493_v32, %v1527_v58  ;;  %v2802_v58 = vld [vmem:[#allocation7 + $0x18] sm:$0xff] }
 0x373   : > { %1975 = vmatpush.bf16.msra.mxu3 %v2802_v58 }
 0x375   : > { %v1494_v33 = vpop.f32.mrf.mxu0 }
 0x376   : > { %v1495_v54 = vadd.f32 %v3586_v6, %v1494_v33 }
 0x378   : > { %vm1512_vm0 = vcmp.ge.f32.partialorder %v1495_v54, 0.0  ;;  %v1528_v38 = vmul.f32 0.01, %v1495_v54 }
 0x37a   : > { %v1544_v43 = vsel %vm1512_vm0, %v1495_v54, %v1528_v38 }
 0x37b   : > { %v1552_v52 = vpack.c.bf16 %v1544_v43, %v1543_v41 }
 0x37d   : > { %1666 = vmatmul.bf16.gmra.mxu1 %v1552_v52 }
 0x38a   : > { %v1632_v45 = vpop.f32.mrf.mxu1 }
 0x38b   : > { %v1633_v48 = vadd.f32 %v3607_v47, %v1632_v45 }
 0x38d   : > { %v1688_v55 = vmul.f32 0.01, %v1633_v48  ;;  %vm1672_vm1 = vcmp.ge.f32.partialorder %v1633_v48, 0.0 }
 0x38f   : > { %v1704_v57 = vsel %vm1672_vm1, %v1633_v48, %v1688_v55  ;;  %v2801_v55 = vld [vmem:[#allocation7 + $0x10] sm:$0xff] }
 0x390   : > { %1976 = vmatpush.bf16.msra.mxu3 %v2801_v55  ;;  %v1850_v55 = vunpack.c.l.bf16 %v3519_v9 }
 0x392   : > { %v1634_v50 = vpop.f32.mrf.mxu1 }
 0x393   : > { %v1635_v6 = vadd.f32 %v3607_v47, %v1634_v50 }
 0x395   : > { %vm1673_vm2 = vcmp.ge.f32.partialorder %v1635_v6, 0.0  ;;  %v1689_v56 = vmul.f32 0.01, %v1635_v6 }
 0x397   : > { %v1705_v25 = vsel %vm1673_vm2, %v1635_v6, %v1689_v56 }
 0x398   : > { %v1720_v4 = vpack.c.bf16 %v1705_v25, %v1704_v57 }
 0x39a   : > { %v1637_v11 = vpop.f32.mrf.mxu1  ;;  %1806 = vmatmul.bf16.vlgmr.msra.gmra.mxu2 %v1720_v4 }
 0x39b   : > { %v1638_v5 = vadd.f32 %v3607_v47, %v1637_v11 }
 0x39d   : > { %v1690_v63 = vmul.f32 0.01, %v1638_v5  ;;  %vm1674_vm3 = vcmp.ge.f32.partialorder %v1638_v5, 0.0 }
 0x39f   : > { %v1706_v18 = vsel %vm1674_vm3, %v1638_v5, %v1690_v63  ;;  %v2800_v63 = vld [vmem:[#allocation7 + $0x8] sm:$0xff] }
 0x3a0   : > { %1977 = vmatpush.bf16.msra.mxu3 %v2800_v63  ;;  %v1852_v63 = vunpack.c.l.bf16 %v3529_v28 }
 0x3a2   : > { %v1639_v27 = vpop.f32.mrf.mxu1 }
 0x3a3   : > { %v1640_v1 = vadd.f32 %v3607_v47, %v1639_v27 }
 0x3a5   : > { %vm1675_vm4 = vcmp.ge.f32.partialorder %v1640_v1, 0.0  ;;  %v1691_v36 = vmul.f32 0.01, %v1640_v1 }
 0x3a7   : > { %v1707_v2 = vsel %vm1675_vm4, %v1640_v1, %v1691_v36 }
 0x3a8   : > { %v1721_v8 = vpack.c.bf16 %v1707_v2, %v1706_v18 }
 0x3aa   : > { %v1642_v17 = vpop.f32.mrf.mxu1  ;;  %1811 = vmatmul.bf16.gmra.mxu2 %v1721_v8 }
 0x3ab   : > { %v1643_v10 = vadd.f32 %v3607_v47, %v1642_v17 }
 0x3ad   : > { %v1692_v12 = vmul.f32 0.01, %v1643_v10  ;;  %vm1676_vm5 = vcmp.ge.f32.partialorder %v1643_v10, 0.0 }
 0x3af   : > { %v1708_v15 = vsel %vm1676_vm5, %v1643_v10, %v1692_v12 }
 0x3b2   : > { %v1644_v19 = vpop.f32.mrf.mxu1 }
 0x3b3   : > { %v1645_v13 = vadd.f32 %v3607_v47, %v1644_v19 }
 0x3b5   : > { %vm1677_vm6 = vcmp.ge.f32.partialorder %v1645_v13, 0.0  ;;  %v1693_v14 = vmul.f32 0.01, %v1645_v13 }
 0x3b7   : > { %v1709_v42 = vsel %vm1677_vm6, %v1645_v13, %v1693_v14  ;;  %v2799_v14 = vld [vmem:[#allocation7] sm:$0xff] }
 0x3b8   : > { %v1722_v20 = vpack.c.bf16 %v1709_v42, %v1708_v15  ;;  %1978 = vmatpush.bf16.msra.mxu3 %v2799_v14 }
 0x3ba   : > { %v1647_v22 = vpop.f32.mrf.mxu1  ;;  %1816 = vmatmul.bf16.gmra.mxu2 %v1722_v20 }
 0x3bb   : > { %v1648_v34 = vadd.f32 %v3607_v47, %v1647_v22 }
 0x3bd   : > { %v1694_v29 = vmul.f32 0.01, %v1648_v34  ;;  %vm1678_vm7 = vcmp.ge.f32.partialorder %v1648_v34, 0.0 }
 0x3bf   : > { %v1710_v35 = vsel %vm1678_vm7, %v1648_v34, %v1694_v29  ;;  %v3628_v29 = vld [vmem:[%s3814_s8 + $0x1] ss:$0 sm:$0xff] }
 0x3c2   : > { %v1649_v26 = vpop.f32.mrf.mxu1 }
 0x3c3   : > { %v1650_v53 = vadd.f32 %v3607_v47, %v1649_v26 }
 0x3c5   : > { %vm1679_vm8 = vcmp.ge.f32.partialorder %v1650_v53, 0.0  ;;  %v1695_v30 = vmul.f32 0.01, %v1650_v53 }
 0x3c7   : > { %v1711_v31 = vsel %vm1679_vm8, %v1650_v53, %v1695_v30  ;;  %v2814_v30 = vld [vmem:[#allocation8 + $0x38] sm:$0xff] }
 0x3c8   : > { %v1723_v32 = vpack.c.bf16 %v1711_v31, %v1710_v35  ;;  %v1847_v35 = vunpack.c.l.bf16 %v3507_v49  ;;  %2160 = vmatpush.bf16.msra.mxu0 %v2814_v30 }
 0x3ca   : > { %v1652_v33 = vpop.f32.mrf.mxu1  ;;  %1821 = vmatmul.bf16.gmra.mxu2 %v1723_v32 }
 0x3cb   : > { %v1653_v54 = vadd.f32 %v3607_v47, %v1652_v33  ;;  %v1848_v33 = vunpack.c.l.bf16 %v3509_v51 }
 0x3cd   : > { %v1696_v41 = vmul.f32 0.01, %v1653_v54  ;;  %vm1680_vm9 = vcmp.ge.f32.partialorder %v1653_v54, 0.0 }
 0x3cf   : > { %v1712_v45 = vsel %vm1680_vm9, %v1653_v54, %v1696_v41 }
 0x3d2   : > { %v1654_v38 = vpop.f32.mrf.mxu1 }
 0x3d3   : > { %v1655_v43 = vadd.f32 %v3607_v47, %v1654_v38 }
 0x3d5   : > { %vm1681_vm10 = vcmp.ge.f32.partialorder %v1655_v43, 0.0  ;;  %v1697_v52 = vmul.f32 0.01, %v1655_v43 }
 0x3d7   : > { %v1713_v3 = vsel %vm1681_vm10, %v1655_v43, %v1697_v52 }
 0x3d8   : > { %v1724_v48 = vpack.c.bf16 %v1713_v3, %v1712_v45  ;;  %v2813_v45 = vld [vmem:[#allocation8 + $0x30] sm:$0xff]  ;;  %v1849_v3 = vunpack.c.l.bf16 %v3517_v7 }
 0x3d9   : > { %2161 = vmatpush.bf16.msra.mxu0 %v2813_v45 }
 0x3da   : > { %v1657_v50 = vpop.f32.mrf.mxu1  ;;  %1826 = vmatmul.bf16.gmra.mxu2 %v1724_v48 }
 0x3db   : > { %v1658_v6 = vadd.f32 %v3607_v47, %v1657_v50 }
 0x3dd   : > { %v1698_v57 = vmul.f32 0.01, %v1658_v6  ;;  %vm1682_vm11 = vcmp.ge.f32.partialorder %v1658_v6, 0.0 }
 0x3df   : > { %v1714_v11 = vsel %vm1682_vm11, %v1658_v6, %v1698_v57 }
 0x3e2   : > { %v1659_v56 = vpop.f32.mrf.mxu1 }
 0x3e3   : > { %v1660_v25 = vadd.f32 %v3607_v47, %v1659_v56 }
 0x3e5   : > { %vm1683_vm12 = vcmp.ge.f32.partialorder %v1660_v25, 0.0  ;;  %v1699_v4 = vmul.f32 0.01, %v1660_v25 }
 0x3e7   : > { %v1715_v61 = vsel %vm1683_vm12, %v1660_v25, %v1699_v4 }
 0x3e8   : > { %v1725_v5 = vpack.c.bf16 %v1715_v61, %v1714_v11  ;;  %v2812_v11 = vld [vmem:[#allocation8 + $0x28] sm:$0xff]  ;;  %v1851_v61 = vunpack.c.l.bf16 %v3527_v24 }
 0x3e9   : > { %2162 = vmatpush.bf16.msra.mxu0 %v2812_v11 }
 0x3ea   : > { %v1662_v27 = vpop.f32.mrf.mxu1  ;;  %1831 = vmatmul.bf16.gmra.mxu2 %v1725_v5 }
 0x3eb   : > { %v1663_v1 = vadd.f32 %v3607_v47, %v1662_v27 }
 0x3ed   : > { %v1700_v18 = vmul.f32 0.01, %v1663_v1  ;;  %vm1684_vm13 = vcmp.ge.f32.partialorder %v1663_v1, 0.0 }
 0x3ef   : > { %v1716_v17 = vsel %vm1684_vm13, %v1663_v1, %v1700_v18 }
 0x3f2   : > { %v1664_v36 = vpop.f32.mrf.mxu1 }
 0x3f3   : > { %v1665_v2 = vadd.f32 %v3607_v47, %v1664_v36 }
 0x3f5   : > { %vm1685_vm14 = vcmp.ge.f32.partialorder %v1665_v2, 0.0  ;;  %v1701_v8 = vmul.f32 0.01, %v1665_v2 }
 0x3f7   : > { %v1717_v40 = vsel %vm1685_vm14, %v1665_v2, %v1701_v8 }
 0x3f8   : > { %v1726_v10 = vpack.c.bf16 %v1717_v40, %v1716_v17  ;;  %v2811_v17 = vld [vmem:[#allocation8 + $0x20] sm:$0xff]  ;;  %v1853_v40 = vunpack.c.l.bf16 %v3537_v44 }
 0x3f9   : > { %2163 = vmatpush.bf16.msra.mxu0 %v2811_v17 }
 0x3fa   : > { %v1667_v19 = vpop.f32.mrf.mxu1  ;;  %1836 = vmatmul.bf16.gmra.mxu2 %v1726_v10 }
 0x3fb   : > { %v1668_v12 = vadd.f32 %v3607_v47, %v1667_v19 }
 0x3fd   : > { %v1702_v15 = vmul.f32 0.01, %v1668_v12  ;;  %vm1686_vm15 = vcmp.ge.f32.partialorder %v1668_v12, 0.0 }
 0x3ff   : > { %v1718_v22 = vsel %vm1686_vm15, %v1668_v12, %v1702_v15  ;;  %v1854_v12 = vunpack.c.l.bf16 %v3539_v46 }
 0x402   : > { %v1669_v13 = vpop.f32.mrf.mxu1 }
 0x403   : > { %v1670_v42 = vadd.f32 %v3607_v47, %v1669_v13 }
 0x405   : > { %vm1687_vm0 = vcmp.ge.f32.partialorder %v1670_v42, 0.0  ;;  %v1703_v20 = vmul.f32 0.01, %v1670_v42 }
 0x407   : > { %v1719_v23 = vsel %vm1687_vm0, %v1670_v42, %v1703_v20 }
 0x408   : > { %v1727_v34 = vpack.c.bf16 %v1719_v23, %v1718_v22  ;;  %v2810_v22 = vld [vmem:[#allocation8 + $0x18] sm:$0xff]  ;;  %v1855_v23 = vunpack.c.l.bf16 %v3547_v62 }
 0x409   : > { %2164 = vmatpush.bf16.msra.mxu0 %v2810_v22 }
 0x40a   : > { %1841 = vmatmul.bf16.gmra.mxu2 %v1727_v34 }
 0x41d   : > { %v1807_v26 = vpop.f32.mrf.mxu2 }
 0x41e   : > { %v1808_v53 = vadd.f32 %v3628_v29, %v1807_v26 }
 0x420   : > { %v1863_v31 = vadd.f32 %v1847_v35, %v1808_v53  ;;  %v1856_v53 = vunpack.c.l.bf16 %v3549_v0 }
 0x422   : > { %v1879_v54 = vmax.f32 %v1863_v31, 0.0 }
 0x425   : > { %v1809_v47 = vpop.f32.mrf.mxu2 }
 0x426   : > { %v1810_v32 = vadd.f32 %v3628_v29, %v1809_v47 }
 0x428   : > { %v1864_v58 = vadd.f32 %v1848_v33, %v1810_v32  ;;  %v2809_v33 = vld [vmem:[#allocation8 + $0x10] sm:$0xff] }
 0x429   : > { %2165 = vmatpush.bf16.msra.mxu0 %v2809_v33 }
 0x42a   : > { %v1880_v38 = vmax.f32 %v1864_v58, 0.0  ;;  %v1857_v58 = vunpack.c.l.bf16 %v3557_v16 }
 0x42c   : > { %v1895_v41 = vpack.c.bf16 %v1880_v38, %v1879_v54 }
 0x42d   : > { %v1812_v43 = vpop.f32.mrf.mxu2 }
 0x42e   : > { %1979 = vmatmul.bf16.vlgmr.msra.gmra.mxu3 %v1895_v41  ;;  %v1813_v52 = vadd.f32 %v3628_v29, %v1812_v43  ;;  %v1858_v41 = vunpack.c.l.bf16 %v3559_v21 }
 0x430   : > { %v1865_v48 = vadd.f32 %v1849_v3, %v1813_v52 }
 0x432   : > { %v1881_v51 = vmax.f32 %v1865_v48, 0.0 }
 0x435   : > { %v1814_v49 = vpop.f32.mrf.mxu2 }
 0x436   : > { %v1815_v50 = vadd.f32 %v3628_v29, %v1814_v49  ;;  %v2808_v49 = vld [vmem:[#allocation8 + $0x8] sm:$0xff] }
 0x437   : > { %2166 = vmatpush.bf16.msra.mxu0 %v2808_v49 }
 0x438   : > { %v1866_v6 = vadd.f32 %v1850_v55, %v1815_v50  ;;  %v1859_v50 = vunpack.c.l.bf16 %v3567_v37 }
 0x43a   : > { %v1882_v56 = vmax.f32 %v1866_v6, 0.0 }
 0x43c   : > { %v1896_v57 = vpack.c.bf16 %v1882_v56, %v1881_v51  ;;  %v1860_v51 = vunpack.c.l.bf16 %v3569_v39 }
 0x43d   : > { %v1817_v25 = vpop.f32.mrf.mxu2 }
 0x43e   : > { %1984 = vmatmul.bf16.gmra.mxu3 %v1896_v57  ;;  %v1818_v4 = vadd.f32 %v3628_v29, %v1817_v25 }
 0x440   : > { %v1867_v5 = vadd.f32 %v1851_v61, %v1818_v4  ;;  %v1861_v61 = vunpack.c.l.bf16 %v3577_v59  ;;  %v3668_v59 = vld [vmem:[%s3816_s10] ss:$0 sm:$0xff] }
 0x442   : > { %v1883_v9 = vmax.f32 %v1867_v5, 0.0 }
 0x445   : > { %v1819_v7 = vpop.f32.mrf.mxu2 }
 0x446   : > { %v1820_v27 = vadd.f32 %v3628_v29, %v1819_v7 }
 0x448   : > { %v1868_v1 = vadd.f32 %v1852_v63, %v1820_v27  ;;  %v1862_v27 = vunpack.c.l.bf16 %v3579_v60  ;;  %v2807_v63 = vld [vmem:[#allocation8] sm:$0xff] }
 0x449   : > { %2167 = vmatpush.bf16.msra.mxu0 %v2807_v63 }
 0x44a   : > { %v1884_v36 = vmax.f32 %v1868_v1, 0.0 }
 0x44c   : > { %v1897_v18 = vpack.c.bf16 %v1884_v36, %v1883_v9 }
 0x44d   : > { %v1822_v2 = vpop.f32.mrf.mxu2 }
 0x44e   : > { %1989 = vmatmul.bf16.gmra.mxu3 %v1897_v18  ;;  %v1823_v8 = vadd.f32 %v3628_v29, %v1822_v2 }
 0x450   : > { %v1869_v10 = vadd.f32 %v1853_v40, %v1823_v8 }
 0x452   : > { %v1885_v28 = vmax.f32 %v1869_v10, 0.0 }
 0x455   : > { %v1824_v24 = vpop.f32.mrf.mxu2 }
 0x456   : > { %v1825_v19 = vadd.f32 %v3628_v29, %v1824_v24 }
 0x458   : > { %v1870_v13 = vadd.f32 %v1854_v12, %v1825_v19 }
 0x45a   : > { %v1886_v14 = vmax.f32 %v1870_v13, 0.0 }
 0x45c   : > { %v1898_v15 = vpack.c.bf16 %v1886_v14, %v1885_v28 }
 0x45d   : > { %v1827_v42 = vpop.f32.mrf.mxu2 }
 0x45e   : > { %1994 = vmatmul.bf16.gmra.mxu3 %v1898_v15  ;;  %v1828_v20 = vadd.f32 %v3628_v29, %v1827_v42 }
 0x460   : > { %v1871_v34 = vadd.f32 %v1855_v23, %v1828_v20 }
 0x462   : > { %v1887_v46 = vmax.f32 %v1871_v34, 0.0 }
 0x465   : > { %v1829_v44 = vpop.f32.mrf.mxu2 }
 0x466   : > { %v1830_v26 = vadd.f32 %v3628_v29, %v1829_v44 }
 0x468   : > { %v1872_v30 = vadd.f32 %v1856_v53, %v1830_v26 }
 0x46a   : > { %v1888_v35 = vmax.f32 %v1872_v30, 0.0 }
 0x46c   : > { %v1899_v47 = vpack.c.bf16 %v1888_v35, %v1887_v46 }
 0x46d   : > { %v1832_v31 = vpop.f32.mrf.mxu2 }
 0x46e   : > { %1999 = vmatmul.bf16.gmra.mxu3 %v1899_v47  ;;  %v1833_v32 = vadd.f32 %v3628_v29, %v1832_v31 }
 0x470   : > { %v1873_v54 = vadd.f32 %v1857_v58, %v1833_v32 }
 0x472   : > { %v1889_v0 = vmax.f32 %v1873_v54, 0.0 }
 0x475   : > { %v1834_v62 = vpop.f32.mrf.mxu2 }
 0x476   : > { %v1835_v38 = vadd.f32 %v3628_v29, %v1834_v62 }
 0x478   : > { %v1874_v43 = vadd.f32 %v1858_v41, %v1835_v38 }
 0x47a   : > { %v1890_v52 = vmax.f32 %v1874_v43, 0.0 }
 0x47c   : > { %v1900_v45 = vpack.c.bf16 %v1890_v52, %v1889_v0 }
 0x47d   : > { %v1837_v3 = vpop.f32.mrf.mxu2 }
 0x47e   : > { %2004 = vmatmul.bf16.gmra.mxu3 %v1900_v45  ;;  %v1838_v48 = vadd.f32 %v3628_v29, %v1837_v3 }
 0x480   : > { %v1875_v55 = vadd.f32 %v1859_v50, %v1838_v48 }
 0x482   : > { %v1891_v21 = vmax.f32 %v1875_v55, 0.0 }
 0x485   : > { %v1839_v16 = vpop.f32.mrf.mxu2 }
 0x486   : > { %v1840_v6 = vadd.f32 %v3628_v29, %v1839_v16 }
 0x488   : > { %v1876_v56 = vadd.f32 %v1860_v51, %v1840_v6 }
 0x48a   : > { %v1892_v57 = vmax.f32 %v1876_v56, 0.0 }
 0x48c   : > { %v1901_v25 = vpack.c.bf16 %v1892_v57, %v1891_v21 }
 0x48d   : > { %v1842_v4 = vpop.f32.mrf.mxu2 }
 0x48e   : > { %2009 = vmatmul.bf16.gmra.mxu3 %v1901_v25  ;;  %v1843_v11 = vadd.f32 %v3628_v29, %v1842_v4 }
 0x490   : > { %v1877_v5 = vadd.f32 %v1861_v61, %v1843_v11 }
 0x492   : > { %v1893_v39 = vmax.f32 %v1877_v5, 0.0 }
 0x495   : > { %v1844_v7 = vpop.f32.mrf.mxu2 }
 0x496   : > { %v1845_v37 = vadd.f32 %v3628_v29, %v1844_v7 }
 0x498   : > { %v1878_v1 = vadd.f32 %v1862_v27, %v1845_v37 }
 0x49a   : > { %v1894_v9 = vmax.f32 %v1878_v1, 0.0 }
 0x49c   : > { %v1902_v36 = vpack.c.bf16 %v1894_v9, %v1893_v39 }
 0x49e   : > { %2014 = vmatmul.bf16.gmra.mxu3 %v1902_v36 }
 0x4b1   : > { %v1980_v29 = vpop.f32.mrf.mxu3 }
 0x4b2   : > { %v1981_v60 = vadd.f32 %v3668_v59, %v1980_v29 }
 0x4b4   : > { %vm2020_vm1 = vcmp.ge.f32.partialorder %v1981_v60, 0.0  ;;  %v2036_v18 = vmul.f32 0.01, %v1981_v60 }
 0x4b6   : > { %v2052_v2 = vsel %vm2020_vm1, %v1981_v60, %v2036_v18 }
 0x4b7   : > { %2068 = vst [vmem:[%s3674_s24] sm:$0xff] %v2052_v2 }
 0x4b9   : > { %v1982_v8 = vpop.f32.mrf.mxu3 }
 0x4ba   : > { %v1983_v17 = vadd.f32 %v3668_v59, %v1982_v8 }
 0x4bc   : > { %vm2021_vm2 = vcmp.ge.f32.partialorder %v1983_v17, 0.0  ;;  %v2037_v40 = vmul.f32 0.01, %v1983_v17 }
 0x4be   : > { %v2053_v24 = vsel %vm2021_vm2, %v1983_v17, %v2037_v40 }
 0x4bf   : > { %2069 = vst [vmem:[%s3674_s24 + $0x8] sm:$0xff] %v2053_v24  ;;  %v2084_v10 = vpack.c.bf16 %v2053_v24, %v2052_v2 }
 0x4c1   : > { %v1985_v19 = vpop.f32.mrf.mxu3  ;;  %2168 = vmatmul.bf16.vlgmr.msra.gmra.mxu0 %v2084_v10 }
 0x4c2   : > { %v1986_v12 = vadd.f32 %v3668_v59, %v1985_v19  ;;  %v3716_v19 = vld [vmem:[%s3844_s20] ss:$0 sm:$0xff] }
 0x4c4   : > { %v2038_v13 = vmul.f32 0.01, %v1986_v12  ;;  %vm2022_vm3 = vcmp.ge.f32.partialorder %v1986_v12, 0.0 }
 0x4c6   : > { %v2054_v28 = vsel %vm2022_vm3, %v1986_v12, %v2038_v13 }
 0x4c7   : > { %2070 = vst [vmem:[%s3674_s24 + $0x10] sm:$0xff] %v2054_v28 }
 0x4c9   : > { %v1987_v14 = vpop.f32.mrf.mxu3 }
 0x4ca   : > { %v1988_v15 = vadd.f32 %v3668_v59, %v1987_v14 }
 0x4cc   : > { %v2039_v42 = vmul.f32 0.01, %v1988_v15  ;;  %vm2023_vm4 = vcmp.ge.f32.partialorder %v1988_v15, 0.0 }
 0x4ce   : > { %v2055_v20 = vsel %vm2023_vm4, %v1988_v15, %v2039_v42 }
 0x4cf   : > { %2071 = vst [vmem:[%s3674_s24 + $0x18] sm:$0xff] %v2055_v20  ;;  %v2085_v22 = vpack.c.bf16 %v2055_v20, %v2054_v28 }
 0x4d1   : > { %v1990_v23 = vpop.f32.mrf.mxu3  ;;  %2173 = vmatmul.bf16.gmra.mxu0 %v2085_v22 }
 0x4d2   : > { %v1991_v44 = vadd.f32 %v3668_v59, %v1990_v23 }
 0x4d4   : > { %vm2024_vm5 = vcmp.ge.f32.partialorder %v1991_v44, 0.0  ;;  %v2040_v34 = vmul.f32 0.01, %v1991_v44 }
 0x4d6   : > { %v2056_v26 = vsel %vm2024_vm5, %v1991_v44, %v2040_v34 }
 0x4d7   : > { %2072 = vst [vmem:[%s3674_s24 + $0x20] sm:$0xff] %v2056_v26 }
 0x4d9   : > { %v1992_v53 = vpop.f32.mrf.mxu3 }
 0x4da   : > { %v1993_v30 = vadd.f32 %v3668_v59, %v1992_v53 }
 0x4dc   : > { %vm2025_vm6 = vcmp.ge.f32.partialorder %v1993_v30, 0.0  ;;  %v2041_v46 = vmul.f32 0.01, %v1993_v30 }
 0x4de   : > { %v2057_v35 = vsel %vm2025_vm6, %v1993_v30, %v2041_v46 }
 0x4df   : > { %2073 = vst [vmem:[%s3674_s24 + $0x28] sm:$0xff] %v2057_v35  ;;  %v2086_v47 = vpack.c.bf16 %v2057_v35, %v2056_v26 }
 0x4e1   : > { %v1995_v31 = vpop.f32.mrf.mxu3  ;;  %2178 = vmatmul.bf16.gmra.mxu0 %v2086_v47 }
 0x4e2   : > { %v1996_v32 = vadd.f32 %v3668_v59, %v1995_v31 }
 0x4e4   : > { %vm2026_vm7 = vcmp.ge.f32.partialorder %v1996_v32, 0.0  ;;  %v2042_v33 = vmul.f32 0.01, %v1996_v32 }
 0x4e6   : > { %v2058_v58 = vsel %vm2026_vm7, %v1996_v32, %v2042_v33 }
 0x4e7   : > { %2074 = vst [vmem:[%s3674_s24 + $0x30] sm:$0xff] %v2058_v58 }
 0x4e9   : > { %v1997_v62 = vpop.f32.mrf.mxu3 }
 0x4ea   : > { %v1998_v54 = vadd.f32 %v3668_v59, %v1997_v62 }
 0x4ec   : > { %vm2027_vm8 = vcmp.ge.f32.partialorder %v1998_v54, 0.0  ;;  %v2043_v38 = vmul.f32 0.01, %v1998_v54 }
 0x4ee   : > { %v2059_v41 = vsel %vm2027_vm8, %v1998_v54, %v2043_v38 }
 0x4ef   : > { %2075 = vst [vmem:[%s3674_s24 + $0x38] sm:$0xff] %v2059_v41  ;;  %v2087_v43 = vpack.c.bf16 %v2059_v41, %v2058_v58 }
 0x4f1   : > { %v2000_v0 = vpop.f32.mrf.mxu3  ;;  %2183 = vmatmul.bf16.gmra.mxu0 %v2087_v43 }
 0x4f2   : > { %v2001_v52 = vadd.f32 %v3668_v59, %v2000_v0 }
 0x4f4   : > { %vm2028_vm9 = vcmp.ge.f32.partialorder %v2001_v52, 0.0  ;;  %v2044_v45 = vmul.f32 0.01, %v2001_v52 }
 0x4f6   : > { %v2060_v3 = vsel %vm2028_vm9, %v2001_v52, %v2044_v45 }
 0x4f7   : > { %2076 = vst [vmem:[%s3674_s24 + $0x40] sm:$0xff] %v2060_v3 }
 0x4f9   : > { %v2002_v49 = vpop.f32.mrf.mxu3 }
 0x4fa   : > { %v2003_v48 = vadd.f32 %v3668_v59, %v2002_v49 }
 0x4fc   : > { %vm2029_vm10 = vcmp.ge.f32.partialorder %v2003_v48, 0.0  ;;  %v2045_v50 = vmul.f32 0.01, %v2003_v48 }
 0x4fe   : > { %v2061_v16 = vsel %vm2029_vm10, %v2003_v48, %v2045_v50 }
 0x4ff   : > { %2077 = vst [vmem:[%s3674_s24 + $0x48] sm:$0xff] %v2061_v16  ;;  %v2088_v55 = vpack.c.bf16 %v2061_v16, %v2060_v3 }
 0x501   : > { %v2005_v6 = vpop.f32.mrf.mxu3  ;;  %2188 = vmatmul.bf16.gmra.mxu0 %v2088_v55 }
 0x502   : > { %v2006_v51 = vadd.f32 %v3668_v59, %v2005_v6 }
 0x504   : > { %vm2030_vm11 = vcmp.ge.f32.partialorder %v2006_v51, 0.0  ;;  %v2046_v56 = vmul.f32 0.01, %v2006_v51 }
 0x506   : > { %v2062_v21 = vsel %vm2030_vm11, %v2006_v51, %v2046_v56 }
 0x507   : > { %2078 = vst [vmem:[%s3674_s24 + $0x50] sm:$0xff] %v2062_v21 }
 0x509   : > { %v2007_v57 = vpop.f32.mrf.mxu3 }
 0x50a   : > { %v2008_v25 = vadd.f32 %v3668_v59, %v2007_v57 }
 0x50c   : > { %vm2031_vm12 = vcmp.ge.f32.partialorder %v2008_v25, 0.0  ;;  %v2047_v4 = vmul.f32 0.01, %v2008_v25 }
 0x50e   : > { %v2063_v11 = vsel %vm2031_vm12, %v2008_v25, %v2047_v4 }
 0x50f   : > { %2079 = vst [vmem:[%s3674_s24 + $0x58] sm:$0xff] %v2063_v11  ;;  %v2089_v61 = vpack.c.bf16 %v2063_v11, %v2062_v21 }
 0x511   : > { %v2010_v7 = vpop.f32.mrf.mxu3  ;;  %2193 = vmatmul.bf16.gmra.mxu0 %v2089_v61 }
 0x512   : > { %v2011_v5 = vadd.f32 %v3668_v59, %v2010_v7 }
 0x514   : > { %vm2032_vm13 = vcmp.ge.f32.partialorder %v2011_v5, 0.0  ;;  %v2048_v37 = vmul.f32 0.01, %v2011_v5 }
 0x516   : > { %v2064_v27 = vsel %vm2032_vm13, %v2011_v5, %v2048_v37 }
 0x517   : > { %2080 = vst [vmem:[%s3674_s24 + $0x60] sm:$0xff] %v2064_v27 }
 0x519   : > { %v2012_v63 = vpop.f32.mrf.mxu3 }
 0x51a   : > { %v2013_v1 = vadd.f32 %v3668_v59, %v2012_v63 }
 0x51c   : > { %vm2033_vm14 = vcmp.ge.f32.partialorder %v2013_v1, 0.0  ;;  %v2049_v39 = vmul.f32 0.01, %v2013_v1 }
 0x51e   : > { %v2065_v9 = vsel %vm2033_vm14, %v2013_v1, %v2049_v39 }
 0x51f   : > { %2081 = vst [vmem:[%s3674_s24 + $0x68] sm:$0xff] %v2065_v9  ;;  %v2090_v36 = vpack.c.bf16 %v2065_v9, %v2064_v27 }
 0x521   : > { %v2015_v29 = vpop.f32.mrf.mxu3  ;;  %2198 = vmatmul.bf16.gmra.mxu0 %v2090_v36 }
 0x522   : > { %v2016_v60 = vadd.f32 %v3668_v59, %v2015_v29 }
 0x524   : > { %vm2034_vm15 = vcmp.ge.f32.partialorder %v2016_v60, 0.0  ;;  %v2050_v18 = vmul.f32 0.01, %v2016_v60 }
 0x526   : > { %v2066_v2 = vsel %vm2034_vm15, %v2016_v60, %v2050_v18 }
 0x527   : > { %2082 = vst [vmem:[%s3674_s24 + $0x70] sm:$0xff] %v2066_v2 }
 0x529   : > { %v2017_v8 = vpop.f32.mrf.mxu3 }
 0x52a   : > { %v2018_v17 = vadd.f32 %v3668_v59, %v2017_v8 }
 0x52c   : > { %vm2035_vm0 = vcmp.ge.f32.partialorder %v2018_v17, 0.0  ;;  %v2051_v40 = vmul.f32 0.01, %v2018_v17 }
 0x52e   : > { %v2067_v24 = vsel %vm2035_vm0, %v2018_v17, %v2051_v40 }
 0x52f   : > { %2083 = vst [vmem:[%s3674_s24 + $0x78] sm:$0xff] %v2067_v24  ;;  %v2091_v10 = vpack.c.bf16 %v2067_v24, %v2066_v2 }
 0x531   : > { %2203 = vmatmul.bf16.gmra.mxu0 %v2091_v10 }
 0x532   : > { %3065 = shalt.err (!%p3062_p8)
}
 0x533   : > { %s3152_s24 = smov 128   ;;  %s3153_s26 = smov 8  }
 0x534   : > { %2837 = dma.vmem_to_hbm [thread:$0]  (%p3267_p5), %s2261_s15, 2048, %s2263_s19, %s2231_s7, %s3152_s24, %s3152_s24, %s3153_s26  }
 0x535   : > { %s3736_s18 = scalar_lea.vmem [#allocation10], %s2411_s22  ;;  %s3845_s15 = sld [smem:[#allocation27_spill]] }
 0x536   : > { %s2243_s5 = sshll.u32 %s3736_s18, 4  ;;  %s2226_s29 = scalar_lea.sflag [#allocation4], %s3663_s13  ;;  %s2244_s5 = int_to_ptr.vmem [resolvable:$true] %s2243_s5 }
 0x53b   : > { %s3846_s19 = smov %s3845_s15  ;;  %s2242_s7 = scalar_lea.hbm %s3845_s15, %s2815_s25 }
 0x53c   : > { %s2245_s12 = sshll.u32 %s2242_s7, 4  ;;  %s3086_s25 = scalar_lea.hbm %s3846_s19, 256  ;;  %s2246_s12 = int_to_ptr.hbm [resolvable:$true] %s2245_s12 }
 0x53d   : > { %s3080_s16 = sshra.s32 %s2246_s12, 4  ;;  %s3081_s16 = int_to_ptr.hbm [resolvable:$true] %s3080_s16 }
 0x53e   : > { %v2169_v59 = vpop.f32.mrf.mxu0  ;;  %s3082_s28 = scalar_lea.hbm %s3081_s16, 128  ;;  %p3087_p12 = scmp.lt.s32.totalorder %s3081_s16, %s3846_s19 }
 0x53f   : > { %v2170_v12 = vadd.f32 %v3716_v19, %v2169_v59  ;;  %p3083_p9 = scmp.ne.s32.totalorder %s3081_s16, %s3082_s28  ;;  %p3088_p13 = scmp.lt.s32.totalorder %s3086_s25, %s3082_s28 }
 0x541   : > { %2209 = vst [vmem:[%s3736_s18] sm:$0xff] %v2170_v12  ;;  %p3084_p10 = pnand %p3083_p9, %p3267_p5  ;;  %p3089_p0 = por %p3088_p13, %p3087_p12 }
 0x543   : > { %p3085_p11 = pneg %p3084_p10 }
 0x545   : > { %p3090_p1 = pnand %p3089_p0, %p3085_p11 }
 0x546   : > { %v2171_v13 = vpop.f32.mrf.mxu0 }
 0x547   : > { %v2172_v28 = vadd.f32 %v3716_v19, %v2171_v13 }
 0x549   : > { %2210 = vst [vmem:[%s3736_s18 + $0x8] sm:$0xff] %v2172_v28 }
 0x54e   : > { %v2174_v14 = vpop.f32.mrf.mxu0 }
 0x54f   : > { %v2175_v15 = vadd.f32 %v3716_v19, %v2174_v14 }
 0x551   : > { %2211 = vst [vmem:[%s3736_s18 + $0x10] sm:$0xff] %v2175_v15 }
 0x556   : > { %v2176_v42 = vpop.f32.mrf.mxu0 }
 0x557   : > { %v2177_v20 = vadd.f32 %v3716_v19, %v2176_v42 }
 0x559   : > { %2212 = vst [vmem:[%s3736_s18 + $0x18] sm:$0xff] %v2177_v20 }
 0x55e   : > { %v2179_v22 = vpop.f32.mrf.mxu0 }
 0x55f   : > { %v2180_v23 = vadd.f32 %v3716_v19, %v2179_v22 }
 0x561   : > { %2213 = vst [vmem:[%s3736_s18 + $0x20] sm:$0xff] %v2180_v23 }
 0x566   : > { %v2181_v44 = vpop.f32.mrf.mxu0 }
 0x567   : > { %v2182_v34 = vadd.f32 %v3716_v19, %v2181_v44 }
 0x569   : > { %2214 = vst [vmem:[%s3736_s18 + $0x28] sm:$0xff] %v2182_v34 }
 0x56e   : > { %v2184_v26 = vpop.f32.mrf.mxu0 }
 0x56f   : > { %v2185_v53 = vadd.f32 %v3716_v19, %v2184_v26 }
 0x571   : > { %2215 = vst [vmem:[%s3736_s18 + $0x30] sm:$0xff] %v2185_v53 }
 0x576   : > { %v2186_v30 = vpop.f32.mrf.mxu0 }
 0x577   : > { %v2187_v46 = vadd.f32 %v3716_v19, %v2186_v30 }
 0x579   : > { %2216 = vst [vmem:[%s3736_s18 + $0x38] sm:$0xff] %v2187_v46 }
 0x57e   : > { %v2189_v35 = vpop.f32.mrf.mxu0 }
 0x57f   : > { %v2190_v47 = vadd.f32 %v3716_v19, %v2189_v35 }
 0x581   : > { %2217 = vst [vmem:[%s3736_s18 + $0x40] sm:$0xff] %v2190_v47 }
 0x586   : > { %v2191_v31 = vpop.f32.mrf.mxu0 }
 0x587   : > { %v2192_v32 = vadd.f32 %v3716_v19, %v2191_v31 }
 0x589   : > { %2218 = vst [vmem:[%s3736_s18 + $0x48] sm:$0xff] %v2192_v32 }
 0x58e   : > { %v2194_v33 = vpop.f32.mrf.mxu0 }
 0x58f   : > { %v2195_v58 = vadd.f32 %v3716_v19, %v2194_v33 }
 0x591   : > { %2219 = vst [vmem:[%s3736_s18 + $0x50] sm:$0xff] %v2195_v58 }
 0x596   : > { %v2196_v62 = vpop.f32.mrf.mxu0 }
 0x597   : > { %v2197_v54 = vadd.f32 %v3716_v19, %v2196_v62 }
 0x599   : > { %2220 = vst [vmem:[%s3736_s18 + $0x58] sm:$0xff] %v2197_v54 }
 0x59e   : > { %v2199_v38 = vpop.f32.mrf.mxu0 }
 0x59f   : > { %v2200_v41 = vadd.f32 %v3716_v19, %v2199_v38 }
 0x5a1   : > { %2221 = vst [vmem:[%s3736_s18 + $0x60] sm:$0xff] %v2200_v41 }
 0x5a6   : > { %v2201_v43 = vpop.f32.mrf.mxu0 }
 0x5a7   : > { %v2202_v0 = vadd.f32 %v3716_v19, %v2201_v43 }
 0x5a9   : > { %2222 = vst [vmem:[%s3736_s18 + $0x68] sm:$0xff] %v2202_v0 }
 0x5ae   : > { %v2204_v52 = vpop.f32.mrf.mxu0 }
 0x5af   : > { %v2205_v45 = vadd.f32 %v3716_v19, %v2204_v52 }
 0x5b1   : > { %2223 = vst [vmem:[%s3736_s18 + $0x70] sm:$0xff] %v2205_v45 }
 0x5b6   : > { %v2206_v3 = vpop.f32.mrf.mxu0 }
 0x5b7   : > { %v2207_v49 = vadd.f32 %v3716_v19, %v2206_v3 }
 0x5b9   : > { %2224 = vst [vmem:[%s3736_s18 + $0x78] sm:$0xff] %v2207_v49 }
 0x5ba   : > { %3093 = shalt.err (!%p3090_p1)
}
 0x5bb   : > { %2836 = dma.vmem_to_hbm [thread:$0]  (%p3267_p5), %s2244_s5, 2048, %s2246_s12, %s2226_s29, %s3152_s24, %s3152_s24, %s3153_s26  }
 0x5bc PF: > { %s3847_s13 = sld [smem:[#allocation20_spill]] }
 0x5bd   : > { %s3848_s18 = sld [smem:[#allocation18_spill]] }
 0x5c2   : > { %p2868_p2 = scmp.ge.s32.totalorder %s3847_s13, 2 }
 0x5c3   : > { %s2277_s15 = sand.u32 1, %s3848_s18  }
 0x5c4   : > { %p2854_p3 = pnand %p2868_p2, %p3271_p6  ;;  %s2278_s7 = scalar_lea.sflag [#allocation4], %s2277_s15 }
 0x5c6   : > { %p2855_p4 = pneg %p2854_p3 }
 0x5c8   : > { %3123 = dma.done.wait (%p2855_p4), %s2278_s7, 2048  }
 0x5c9   : > { %3125 = vsyncadd (%p2855_p4), %s2278_s7, 4294965248  ;;  %s2288_s16 = scalar_lea.sflag [#allocation12], %s2277_s15 }
 0x5ca   : > { %3127 = dma.done.wait (%p2855_p4), %s2288_s16, 2048  }
 0x5cb   : > { %3129 = vsyncadd (%p2855_p4), %s2288_s16, 4294965248  ;;  %s3850_s16 = sld [smem:[#allocation21_spill]]  ;;  %s3853_s29 = smov %s3136_s30 }
 0x5cc   : > { %s3851_s23 = sld [smem:[#allocation19_spill]] }
 0x5cd   : > { %s3852_s15 = sld [smem:[#allocation22_spill]] }
 0x5d1   : > { %p31_p5 = scmp.ge.s32.totalorder %s3850_s16, 4  }
 0x5d2   : > { %s3854_s30 = smov %s3851_s23 }
 0x5d3   :  { %33 = sbr.rel (!%p31_p5) target bundleno = 13 (0xd), region = 147 }
 0x5d8   :  { %2294 = vsyncpa [#allocation3], 1 }
 0x5d9   :  { %2296 = vsyncpa [#allocation3 + $0x1], 1 }
 0x5da   :  { %2297 = vsyncpa [#allocation6], 1 }
 0x5db   :  { %2298 = vsyncpa [#allocation9], 1 }
 0x5dc   :  { %2299 = vsyncpa [#allocation4], 1 }
 0x5dd   :  { %2301 = vsyncpa [#allocation4 + $0x1], 1 }
 0x5de   :  { %2302 = vsyncpa [#allocation12], 1 }
 0x5df   :  { %2304 = vsyncpa [#allocation12 + $0x1], 1 }

// kernel: tpu_custom_call.1
= control target key start
LH: loop header
LB: loop body
LE: loop exit
PB: predicated region body
PF: predicated region fallthrough
CT: control target
= control target key end

     0   :  { %s3806_s0 = inlined_call_operand.vmem [shape: bf16[256,16], index: 0, kind: input, shape index: {}]   ;;  %s3807_s1 = inlined_call_operand.vmem [shape: bf16[16,128], index: 1, kind: input, shape index: {}]   ;;  %s3808_s2 = inlined_call_operand.vmem [shape: f32[1,128], index: 2, kind: input, shape index: {}]   ;;  %s3809_s3 = inlined_call_operand.vmem [shape: bf16[2,128,128], index: 3, kind: input, shape index: {}]   ;;  %s3810_s4 = inlined_call_operand.vmem [shape: f32[2,1,128], index: 4, kind: input, shape index: {}]   ;;  %s3811_s5 = inlined_call_operand.hbm [shape: bf16[2,128,128], index: 5, kind: input, shape index: {}]   ;;  %s3812_s6 = inlined_call_operand.vmem [shape: f32[2,1,128], index: 6, kind: input, shape index: {}]   ;;  %s3813_s7 = inlined_call_operand.hbm [shape: bf16[2,128,128], index: 7, kind: input, shape index: {}]   ;;  %s3814_s8 = inlined_call_operand.vmem [shape: f32[2,1,128], index: 8, kind: input, shape index: {}]   ;;  %s3815_s9 = inlined_call_operand.hbm [shape: bf16[128,128], index: 9, kind: input, shape index: {}]   ;;  %s3816_s10 = inlined_call_operand.vmem [shape: f32[1,128], index: 10, kind: input, shape index: {}]   ;;  %s3817_s11 = inlined_call_operand.hbm [shape: bf16[128,128], index: 11, kind: input, shape index: {}]   ;;  %s3818_s12 = inlined_call_operand.vmem [shape: f32[1,128], index: 12, kind: input, shape index: {}]   ;;  %s3819_s13 = inlined_call_operand.hbm [shape: f32[256,128], index: 13, kind: output, shape index: {0}]   ;;  %s3820_s14 = inlined_call_operand.hbm [shape: f32[256,128], index: 14, kind: output, shape index: {1}]  }
   0x1   :  { %3828 = sst [smem:[#allocation24_spill]] %s3811_s5 }
   0x2   :  { %3829 = sst [smem:[#allocation25_spill]] %s3813_s7 }
   0x3   :  { %3830 = sst [smem:[#allocation26_spill]] %s3818_s12 }
   0x4   :  { %3831 = sst [smem:[#allocation27_spill]] %s3819_s13 }
   0x5   :  { %20 = vsyncpa [#allocation3], 0 }
   0x6   :  { %21 = vsyncpa [#allocation6], 0 }
   0x7   :  { %22 = vsyncpa [#allocation9], 0 }
   0x8   :  { %23 = vsyncpa [#allocation4], 0 }
   0x9   :  { %25 = vsyncpa [#allocation4 + $0x1], 0 }
   0xa   :  { %26 = vsyncpa [#allocation12], 0 }
   0xb   :  { %28 = vsyncpa [#allocation12 + $0x1], 0  ;;  %s3229_s29 = smov 0   ;;  %s3231_s30 = smov 0  }
   0xc   :  { %s3233_s15 = smov 0   ;;  %s3235_s16 = smov 0  }
   0xd LB: > { %3832 = sst [smem:[#allocation18_spill]] %s3132_s29  ;;  %s3250_s17 = sadd.s32 4294967295, %s3144_s16   ;;  %s3144_s16 = sphi %s3235_s16, %s3850_s16   ;;  %s3140_s15 = sphi %s3233_s15, %s3852_s15   ;;  %s3136_s30 = sphi %s3231_s30, %s3854_s30   ;;  %s3132_s29 = sphi %s3229_s29, %s3853_s29  }
   0xe   : > { %3833 = sst [smem:[#allocation19_spill]] %s3140_s15  ;;  %s2399_s18 = sadd.s32 4294967294, %s3144_s16  }
   0xf   : > { %3834 = sst [smem:[#allocation20_spill]] %s3144_s16  ;;  %s3254_s19 = sadd.s32 1, %s3144_s16  }
  0x10   : > { %3835 = sst [smem:[#allocation21_spill]] %s3254_s19  ;;  %s319_s20 = sadd.s32 1, %s3140_s15 }
  0x11   : > { %s316_s21 = ssub.s32 %s3144_s16, %s3254_s19  ;;  %p329_p0 = scmp.ne.s32.totalorder %s3140_s15, %s3136_s30 }
  0x12   : > { %p317_p1 = scmp.eq.s32.totalorder %s316_s21, 0  ;;  %p330_p2 = scmp.eq.s32.totalorder %s3250_s17, 1 }
  0x13   : > { %p335_p3 = scmp.ne.s32.totalorder %s3136_s30, %s3132_s29  ;;  %p336_p4 = scmp.eq.s32.totalorder %s2399_s18, 1 }
  0x14   : > { %s3265_s22 = scalar_select %p317_p1, %s3140_s15, %s319_s20  }
  0x15   : > { %p3267_p5 = por %p330_p2, %p329_p0  ;;  %p3271_p6 = por %p336_p4, %p335_p3 }
  0x16   : > { %3836 = sst [smem:[#allocation22_spill]] %s3265_s22  ;;  %p2400_p7 = scmp.ge.s32.totalorder %s3144_s16, 1 }
  0x17   : > { %s3838_s24 = scalar_select %p3271_p6, 1, 0 }
  0x18   : > { %p369_p8 = scmp.lt.s32.totalorder %s3144_s16, 3  ;;  %p2860_p9 = scmp.eq.s32.totalorder %s3250_s17, 0 }
  0x19   : > { %3839 = sst [smem:[#allocation23_spill]] %s3838_s24  ;;  %s3146_s15 = smov [#allocation5]  }
  0x1a   : > { %p3278_p10 = pnand %p2400_p7, %p369_p8  ;;  %s3841_s7 = sld [smem:[#allocation25_spill]] }
  0x1b   : > { %s3842_s5 = sld [smem:[#allocation24_spill]]  ;;  %s411_s19 = sshll.u32 %s3146_s15, 4  ;;  %s412_s19 = int_to_ptr.vmem [resolvable:$true] %s411_s19 }
  0x1c   : > { %p2840_p11 = pneg %p3278_p10  ;;  %s3147_s26 = smov 64  }
  0x1d   : > { %s3148_s27 = smov 4   ;;  %s426_s24 = sshll.u32 %s3815_s9, 4  ;;  %s427_s24 = int_to_ptr.hbm [resolvable:$true] %s426_s24 }
  0x1e   : > { %p3292_p12 = pnand %p2860_p9, %p2840_p11  ;;  %s443_s16 = sshll.u32 %s3817_s11, 4  ;;  %s444_s16 = int_to_ptr.hbm [resolvable:$true] %s443_s16 }
  0x1f   : > { %s3150_s13 = smov [#allocation7]  }
  0x20   : > { %s409_s28 = sshll.u32 %s3841_s7, 4  ;;  %s3149_s7 = smov [#allocation2]   ;;  %s410_s28 = int_to_ptr.hbm [resolvable:$true] %s409_s28 }
  0x21   : > { %s392_s21 = sshll.u32 %s3842_s5, 4  ;;  %s394_s18 = sshll.u32 %s3149_s7, 4  ;;  %s393_s21 = int_to_ptr.hbm [resolvable:$true] %s392_s21  ;;  %s395_s18 = int_to_ptr.vmem [resolvable:$true] %s394_s18 }
  0x22   : > { %2846 = dma.hbm_to_vmem [thread:$0]  (!%p3292_p12), %s410_s28, 2048, %s412_s19, [#allocation6], %s3147_s26, %s3147_s26, %s3148_s27  }
  0x23   : > { %2843 = dma.hbm_to_vmem [thread:$0]  (!%p3292_p12), %s393_s21, 2048, %s395_s18, [#allocation3], %s3147_s26, %s3147_s26, %s3148_s27  }
  0x24   : > { %s428_s12 = sshll.u32 %s3150_s13, 4  ;;  %s3151_s19 = smov [#allocation8]   ;;  %s429_s12 = int_to_ptr.vmem [resolvable:$true] %s428_s12 }
  0x25   : > { %2849 = dma.hbm_to_vmem [thread:$0]  (!%p3292_p12), %s427_s24, 1024, %s429_s12, [#allocation6], %s3147_s26, %s3147_s26, %s3148_s27  }
  0x26   : > { %s445_s7 = sshll.u32 %s3151_s19, 4  ;;  %473 = sbr.rel (%p3278_p10) target bundleno = 1468 (0x5bc), region = 72  ;;  %s446_s7 = int_to_ptr.vmem [resolvable:$true] %s445_s7 }
  0x27   : > { %2852 = dma.hbm_to_vmem [thread:$0]  (!%p3292_p12), %s444_s16, 1024, %s446_s7, [#allocation9], %s3147_s26, %s3147_s26, %s3148_s27  }
  0x2b   : > { %3111 = dma.done.wait (%p2860_p9), [#allocation3], 2048  }
  0x2c   : > { %3113 = vsyncadd (%p2860_p9), [#allocation3], 4294965248 }
  0x2d   : > { %3115 = dma.done.wait (%p2860_p9), [#allocation6], 3072  }
  0x2e   : > { %3117 = vsyncadd (%p2860_p9), [#allocation6], 4294964224 }
  0x2f   : > { %3119 = dma.done.wait (%p2860_p9), [#allocation9], 1024  }
  0x30   : > { %3121 = vsyncadd (%p2860_p9), [#allocation9], 4294966272  ;;  %s2413_s5 = sshll.u32 %s3250_s17, 4  ;;  %v2750_v0 = vld [vmem:[%s3807_s1] sm:$0xff]  ;;  %vm617_vm0 = vcmask 130048   ;;  %v2758_v5 = vld [vmem:[%s3809_s3 + $0x38] sm:$0xff] }
  0x31   : > { %p541_p13 = scmp.lt.s32.totalorder %s2413_s5, 31  ;;  %649 = vmatpush.bf16.msra.mxu0 %v2750_v0  ;;  %2817 = vmatpush.bf16.msra.mxu1 %v2750_v0  ;;  %v2757_v6 = vld [vmem:[%s3809_s3 + $0x30] sm:$0xff]  ;;  %v2756_v7 = vld [vmem:[%s3809_s3 + $0x28] sm:$0xff]  ;;  %v2755_v12 = vld [vmem:[%s3809_s3 + $0x20] sm:$0xff]  ;;  %s3663_s13 = sand.u32 1, %s3136_s30  }
  0x32   : > { %2818 = vmatpush.bf16.msra.mxu2 %v2750_v0  ;;  %2819 = vmatpush.bf16.msra.mxu3 %v2750_v0  ;;  %v2754_v13 = vld [vmem:[%s3809_s3 + $0x18] sm:$0xff]  ;;  %v2753_v14 = vld [vmem:[%s3809_s3 + $0x10] sm:$0xff]  ;;  %v2752_v15 = vld [vmem:[%s3809_s3 + $0x8] sm:$0xff]  ;;  %s2411_s22 = sshll.u32 %s3663_s13, 7  ;;  %s2815_s25 = sshll.u32 %s3250_s17, 7 }
  0x33   : > { %s3856_s5 = smov (!%p541_p13, %s2413_s5), 31  ;;  %v2751_v16 = vld [vmem:[%s3809_s3] sm:$0xff]  ;;  %s3674_s24 = scalar_lea.vmem [#allocation11], %s2411_s22 }
  0x34   : > { %s2414_s12 = sshll.u32 %s3856_s5, 2  ;;  %v3366_v17 = vld [vmem:[%s3808_s2] ss:$0 sm:$0xff]  ;;  %s2259_s26 = scalar_lea.hbm %s3820_s14, %s2815_s25 }
  0x35   : > { %s544_s16 = scalar_lea.vmem %s3806_s0, %s2414_s12  ;;  %871 = vmatpush.bf16.msrb.mxu1 %v2758_v5  ;;  %s3844_s20 = sld [smem:[#allocation26_spill]] }
  0x36   : > { %v2742_v1 = vld [vmem:[%s544_s16] sm:$0xff]  ;;  %v2744_v2 = vld [vmem:[%s544_s16 + $0x10] sm:$0xff]  ;;  %v2749_v4 = vld [vmem:[%s544_s16 + $0x38] sm:$0xff]  ;;  %s2260_s15 = sshll.u32 %s3674_s24, 4  ;;  %s2262_s19 = sshll.u32 %s2259_s26, 4  ;;  %s2261_s15 = int_to_ptr.vmem [resolvable:$true] %s2260_s15  ;;  %s2263_s19 = int_to_ptr.hbm [resolvable:$true] %s2262_s19 }
  0x37   : > { %v2746_v3 = vld [vmem:[%s544_s16 + $0x20] sm:$0xff]  ;;  %2451 = vmatmul.msk.bf16.vlgmr.msra.gmra.mxu0 %vm617_vm0, %v2742_v1  ;;  %2453 = vmatmul.msk.bf16.vlgmr.msra.gmra.mxu1 %vm617_vm0, %v2744_v2  ;;  %v2743_v8 = vld [vmem:[%s544_s16 + $0x8] sm:$0xff]  ;;  %v2745_v9 = vld [vmem:[%s544_s16 + $0x18] sm:$0xff]  ;;  %s2231_s7 = scalar_lea.sflag [#allocation12], %s3663_s13  ;;  %s3052_s5 = sshra.s32 %s2263_s19, 4  ;;  %s3053_s5 = int_to_ptr.hbm [resolvable:$true] %s3052_s5 }
  0x38   : > { %2455 = vmatmul.msk.bf16.vlgmr.msra.gmra.mxu2 %vm617_vm0, %v2746_v3  ;;  %2458 = vmatmul.msk.bf16.vlgmr.msra.gmra.mxu3 %vm617_vm0, %v2749_v4  ;;  %v2747_v10 = vld [vmem:[%s544_s16 + $0x28] sm:$0xff]  ;;  %v2748_v11 = vld [vmem:[%s544_s16 + $0x30] sm:$0xff]  ;;  %s3054_s12 = scalar_lea.hbm %s3053_s5, 128  ;;  %s3058_s28 = scalar_lea.hbm %s3820_s14, 256 }
  0x39   : > { %872 = vmatpush.bf16.msrb.mxu1 %v2757_v6  ;;  %p3055_p0 = scmp.ne.s32.totalorder %s3053_s5, %s3054_s12  ;;  %p3059_p3 = scmp.lt.s32.totalorder %s3053_s5, %s3820_s14 }
  0x3a   : > { %p3060_p4 = scmp.lt.s32.totalorder %s3058_s28, %s3054_s12 }
  0x3b   : > { %p3056_p1 = pnand %p3055_p0, %p3267_p5 }
  0x3c   : > { %p3061_p7 = por %p3060_p4, %p3059_p3 }
  0x3d   : > { %873 = vmatpush.bf16.msrb.mxu1 %v2756_v7  ;;  %p3057_p2 = pneg %p3056_p1 }
  0x3f   : > { %p3062_p8 = pnand %p3061_p7, %p3057_p2 }
  0x41   : > { %874 = vmatpush.bf16.msrb.mxu1 %v2755_v12 }
  0x45   : > { %875 = vmatpush.bf16.msrb.mxu1 %v2754_v13  ;;  %v2766_v13 = vld [vmem:[#allocation2 + $0x38] sm:$0xff] }
  0x46   : > { %1044 = vmatpush.bf16.msrb.mxu2 %v2766_v13 }
  0x47   : > { %2452 = vmatmul.msk.bf16.gmra.mxu0 %vm617_vm0, %v2743_v8  ;;  %2454 = vmatmul.msk.bf16.gmra.mxu1 %vm617_vm0, %v2745_v9 }
  0x48   : > { %2456 = vmatmul.msk.bf16.gmra.mxu2 %vm617_vm0, %v2747_v10 }
  0x49   : > { %876 = vmatpush.bf16.msrb.mxu1 %v2753_v14 }
  0x4d   : > { %877 = vmatpush.bf16.msrb.mxu1 %v2752_v15 }
  0x51   : > { %878 = vmatpush.bf16.msrb.mxu1 %v2751_v16 }
  0x58   : > { %2457 = vmatmul.msk.bf16.gmra.mxu2 %vm617_vm0, %v2748_v11 }
  0xb4   : > { %v651_v18 = vpop.f32.mrf.mxu0  ;;  %v661_v28 = vpop.f32.mrf.mxu1 }
  0xb5   : > { %v652_v19 = vadd.f32 %v3366_v17, %v651_v18  ;;  %v662_v43 = vadd.f32 %v3366_v17, %v661_v28 }
  0xb7   : > { %v707_v20 = vmul.f32 0.01, %v652_v19  ;;  %vm691_vm1 = vcmp.ge.f32.partialorder %v652_v19, 0.0  ;;  %v711_v49 = vmul.f32 0.01, %v662_v43  ;;  %vm695_vm5 = vcmp.ge.f32.partialorder %v662_v43, 0.0 }
  0xb9   : > { %v723_v22 = vsel %vm691_vm1, %v652_v19, %v707_v20  ;;  %v727_v51 = vsel %vm695_vm5, %v662_v43, %v711_v49  ;;  %v2761_v49 = vld [vmem:[#allocation2 + $0x10] sm:$0xff] }
  0xba   : > { %v3370_v25 = vpack.c.bf16 %v723_v22, %v723_v22  ;;  %v3386_v53 = vpack.c.bf16 %v727_v51, %v727_v51 }
  0xbb   : > { %v671_v55 = vpop.f32.mrf.mxu2 }
  0xbc   : > { %v653_v21 = vpop.f32.mrf.mxu0  ;;  %v791_v30 = vunpack.c.l.b16 %v3370_v25  ;;  %v663_v36 = vpop.f32.mrf.mxu1  ;;  %v795_v57 = vunpack.c.l.b16 %v3386_v53  ;;  %v672_v8 = vadd.f32 %v3366_v17, %v671_v55 }
  0xbd   : > { %v654_v23 = vadd.f32 %v3366_v17, %v653_v21  ;;  %v664_v44 = vadd.f32 %v3366_v17, %v663_v36  ;;  %v2763_v36 = vld [vmem:[#allocation2 + $0x20] sm:$0xff] }
  0xbe   : > { %v715_v11 = vmul.f32 0.01, %v672_v8  ;;  %vm699_vm9 = vcmp.ge.f32.partialorder %v672_v8, 0.0 }
  0xbf   : > { %vm692_vm2 = vcmp.ge.f32.partialorder %v654_v23, 0.0  ;;  %v708_v24 = vmul.f32 0.01, %v654_v23  ;;  %v712_v50 = vmul.f32 0.01, %v664_v44  ;;  %vm696_vm6 = vcmp.ge.f32.partialorder %v664_v44, 0.0 }
  0xc0   : > { %v731_v14 = vsel %vm699_vm9, %v672_v8, %v715_v11  ;;  %v3435_v11 = vld [vmem:[%s3810_s4] ss:$0 sm:$0xff] }
  0xc1   : > { %v724_v26 = vsel %vm692_vm2, %v654_v23, %v708_v24  ;;  %v728_v52 = vsel %vm696_vm6, %v664_v44, %v712_v50  ;;  %v3402_v18 = vpack.c.bf16 %v731_v14, %v731_v14 }
  0xc2   : > { %v3372_v27 = vpack.c.bf16 %v724_v26, %v724_v26  ;;  %v3388_v54 = vpack.c.bf16 %v728_v52, %v728_v52 }
  0xc3   : > { %v673_v0 = vpop.f32.mrf.mxu2  ;;  %v799_v20 = vunpack.c.l.b16 %v3402_v18 }
  0xc4   : > { %v656_v29 = vpop.f32.mrf.mxu0  ;;  %v792_v31 = vunpack.c.l.b16 %v3372_v27  ;;  %v666_v48 = vpop.f32.mrf.mxu1  ;;  %v796_v58 = vunpack.c.l.b16 %v3388_v54  ;;  %v674_v9 = vadd.f32 %v3366_v17, %v673_v0  ;;  %v2760_v0 = vld [vmem:[#allocation2 + $0x8] sm:$0xff] }
  0xc5   : > { %v657_v32 = vadd.f32 %v3366_v17, %v656_v29  ;;  %v667_v59 = vadd.f32 %v3366_v17, %v666_v48  ;;  %v2762_v48 = vld [vmem:[#allocation2 + $0x18] sm:$0xff] }
  0xc6   : > { %v807_v33 = vpack.c.b16 %v792_v31, %v791_v30  ;;  %v809_v61 = vpack.c.b16 %v796_v58, %v795_v57  ;;  %v716_v12 = vmul.f32 0.01, %v674_v9  ;;  %vm700_vm10 = vcmp.ge.f32.partialorder %v674_v9, 0.0  ;;  %v2765_v30 = vld [vmem:[#allocation2 + $0x30] sm:$0xff]  ;;  %v2764_v31 = vld [vmem:[#allocation2 + $0x28] sm:$0xff] }
  0xc7   : > { %v709_v34 = vmul.f32 0.01, %v657_v32  ;;  %vm693_vm3 = vcmp.ge.f32.partialorder %v657_v32, 0.0  ;;  %v713_v62 = vmul.f32 0.01, %v667_v59  ;;  %vm697_vm7 = vcmp.ge.f32.partialorder %v667_v59, 0.0  ;;  %1045 = vmatpush.bf16.msrb.mxu2 %v2765_v30 }
  0xc8   : > { %879 = vmatmul.bf16.vlgmr.msrb.gmra.mxu1 %v807_v33  ;;  %v732_v15 = vsel %vm700_vm10, %v674_v9, %v716_v12 }
  0xc9   : > { %v725_v37 = vsel %vm693_vm3, %v657_v32, %v709_v34  ;;  %v729_v1 = vsel %vm697_vm7, %v667_v59, %v713_v62  ;;  %v3404_v19 = vpack.c.bf16 %v732_v15, %v732_v15 }
  0xca   : > { %v3378_v40 = vpack.c.bf16 %v725_v37, %v725_v37  ;;  %v3394_v3 = vpack.c.bf16 %v729_v1, %v729_v1 }
  0xcb   : > { %v676_v7 = vpop.f32.mrf.mxu2  ;;  %v800_v21 = vunpack.c.l.b16 %v3404_v19  ;;  %1046 = vmatpush.bf16.msrb.mxu2 %v2764_v31 }
  0xcc   : > { %v658_v35 = vpop.f32.mrf.mxu0  ;;  %v793_v45 = vunpack.c.l.b16 %v3378_v40  ;;  %v668_v56 = vpop.f32.mrf.mxu1  ;;  %v797_v5 = vunpack.c.l.b16 %v3394_v3  ;;  %v677_v22 = vadd.f32 %v3366_v17, %v676_v7  ;;  %v2759_v7 = vld [vmem:[#allocation2] sm:$0xff] }
  0xcd   : > { %v659_v38 = vadd.f32 %v3366_v17, %v658_v35  ;;  %v669_v60 = vadd.f32 %v3366_v17, %v668_v56  ;;  %v811_v24 = vpack.c.b16 %v800_v21, %v799_v20 }
  0xce   : > { %v717_v28 = vmul.f32 0.01, %v677_v22  ;;  %vm701_vm11 = vcmp.ge.f32.partialorder %v677_v22, 0.0 }
  0xcf   : > { %vm694_vm4 = vcmp.ge.f32.partialorder %v659_v38, 0.0  ;;  %v710_v39 = vmul.f32 0.01, %v659_v38  ;;  %v714_v63 = vmul.f32 0.01, %v669_v60  ;;  %vm698_vm8 = vcmp.ge.f32.partialorder %v669_v60, 0.0  ;;  %1047 = vmatpush.bf16.msrb.mxu2 %v2763_v36 }
  0xd0   : > { %v733_v32 = vsel %vm701_vm11, %v677_v22, %v717_v28 }
  0xd1   : > { %v726_v41 = vsel %vm694_vm4, %v659_v38, %v710_v39  ;;  %v730_v2 = vsel %vm698_vm8, %v669_v60, %v714_v63  ;;  %v3410_v34 = vpack.c.bf16 %v733_v32, %v733_v32 }
  0xd2   : > { %v3380_v42 = vpack.c.bf16 %v726_v41, %v726_v41  ;;  %v3396_v4 = vpack.c.bf16 %v730_v2, %v730_v2 }
  0xd3   : > { %v678_v16 = vpop.f32.mrf.mxu2  ;;  %v801_v38 = vunpack.c.l.b16 %v3410_v34  ;;  %1048 = vmatpush.bf16.msrb.mxu2 %v2762_v48 }
  0xd4   : > { %v794_v46 = vunpack.c.l.b16 %v3380_v42  ;;  %v798_v6 = vunpack.c.l.b16 %v3396_v4  ;;  %v679_v23 = vadd.f32 %v3366_v17, %v678_v16 }
  0xd6   : > { %v808_v47 = vpack.c.b16 %v794_v46, %v793_v45  ;;  %v810_v10 = vpack.c.b16 %v798_v6, %v797_v5  ;;  %v718_v29 = vmul.f32 0.01, %v679_v23  ;;  %vm702_vm12 = vcmp.ge.f32.partialorder %v679_v23, 0.0  ;;  %v686_v45 = vpop.f32.mrf.mxu3 }
  0xd7   : > { %1049 = vmatpush.bf16.msrb.mxu2 %v2761_v49  ;;  %v687_v59 = vadd.f32 %v3366_v17, %v686_v45 }
  0xd8   : > { %884 = vmatmul.bf16.gmra.mxu1 %v808_v47  ;;  %v734_v33 = vsel %vm702_vm12, %v679_v23, %v718_v29 }
  0xd9   : > { %v3412_v35 = vpack.c.bf16 %v734_v33, %v734_v33  ;;  %v721_v62 = vmul.f32 0.01, %v687_v59  ;;  %vm705_vm15 = vcmp.ge.f32.partialorder %v687_v59, 0.0 }
  0xdb   : > { %v681_v26 = vpop.f32.mrf.mxu2  ;;  %v802_v39 = vunpack.c.l.b16 %v3412_v35  ;;  %1050 = vmatpush.bf16.msrb.mxu2 %v2760_v0  ;;  %v737_v1 = vsel %vm705_vm15, %v687_v59, %v721_v62 }
  0xdc   : > { %v682_v41 = vadd.f32 %v3366_v17, %v681_v26  ;;  %v3426_v5 = vpack.c.bf16 %v737_v1, %v737_v1 }
  0xdd   : > { %v812_v44 = vpack.c.b16 %v802_v39, %v801_v38 }
  0xde   : > { %v719_v46 = vmul.f32 0.01, %v682_v41  ;;  %vm703_vm13 = vcmp.ge.f32.partialorder %v682_v41, 0.0  ;;  %v688_v56 = vpop.f32.mrf.mxu3  ;;  %v805_v8 = vunpack.c.l.b16 %v3426_v5 }
  0xdf   : > { %v689_v60 = vadd.f32 %v3366_v17, %v688_v56  ;;  %1051 = vmatpush.bf16.msrb.mxu2 %v2759_v7 }
  0xe0   : > { %v735_v50 = vsel %vm703_vm13, %v682_v41, %v719_v46 }
  0xe1   : > { %v3418_v52 = vpack.c.bf16 %v735_v50, %v735_v50  ;;  %v722_v63 = vmul.f32 0.01, %v689_v60  ;;  %vm706_vm0 = vcmp.ge.f32.partialorder %v689_v60, 0.0 }
  0xe3   : > { %v683_v37 = vpop.f32.mrf.mxu2  ;;  %v803_v57 = vunpack.c.l.b16 %v3418_v52  ;;  %v738_v2 = vsel %vm706_vm0, %v689_v60, %v722_v63 }
  0xe4   : > { %v684_v43 = vadd.f32 %v3366_v17, %v683_v37  ;;  %v3428_v6 = vpack.c.bf16 %v738_v2, %v738_v2 }
  0xe6   : > { %v720_v47 = vmul.f32 0.01, %v684_v43  ;;  %vm704_vm14 = vcmp.ge.f32.partialorder %v684_v43, 0.0  ;;  %v806_v9 = vunpack.c.l.b16 %v3428_v6 }
  0xe8   : > { %889 = vmatmul.bf16.gmra.mxu1 %v809_v61  ;;  %v736_v51 = vsel %vm704_vm14, %v684_v43, %v720_v47  ;;  %v814_v17 = vpack.c.b16 %v806_v9, %v805_v8 }
  0xe9   : > { %v3420_v55 = vpack.c.bf16 %v736_v51, %v736_v51 }
  0xeb   : > { %v804_v58 = vunpack.c.l.b16 %v3420_v55 }
  0xed   : > { %v813_v61 = vpack.c.b16 %v804_v58, %v803_v57 }
  0xf8   : > { %894 = vmatmul.bf16.gmra.mxu1 %v810_v10 }
 0x108   : > { %899 = vmatmul.bf16.gmra.mxu1 %v811_v24 }
 0x118   : > { %904 = vmatmul.bf16.gmra.mxu1 %v812_v44 }
 0x128   : > { %909 = vmatmul.bf16.gmra.mxu1 %v813_v61 }
 0x138   : > { %914 = vmatmul.bf16.gmra.mxu1 %v814_v17 }
 0x145   : > { %v880_v10 = vpop.f32.mrf.mxu1 }
 0x146   : > { %v881_v12 = vadd.f32 %v3435_v11, %v880_v10 }
 0x148   : > { %v936_v14 = vmul.f32 0.01, %v881_v12  ;;  %vm920_vm1 = vcmp.ge.f32.partialorder %v881_v12, 0.0 }
 0x14a   : > { %v952_v20 = vsel %vm920_vm1, %v881_v12, %v936_v14 }
 0x14d   : > { %v882_v13 = vpop.f32.mrf.mxu1 }
 0x14e   : > { %v883_v15 = vadd.f32 %v3435_v11, %v882_v13 }
 0x150   : > { %vm921_vm2 = vcmp.ge.f32.partialorder %v883_v15, 0.0  ;;  %v937_v16 = vmul.f32 0.01, %v883_v15 }
 0x152   : > { %v953_v21 = vsel %vm921_vm2, %v883_v15, %v937_v16 }
 0x153   : > { %v968_v22 = vpack.c.bf16 %v953_v21, %v952_v20 }
 0x155   : > { %v885_v23 = vpop.f32.mrf.mxu1  ;;  %1052 = vmatmul.bf16.vlgmr.msrb.gmra.mxu2 %v968_v22  ;;  %v2774_v22 = vld [vmem:[#allocation5 + $0x38] sm:$0xff] }
 0x156   : > { %v886_v24 = vadd.f32 %v3435_v11, %v885_v23  ;;  %1217 = vmatpush.bf16.msrb.mxu3 %v2774_v22  ;;  %v2773_v23 = vld [vmem:[#allocation5 + $0x30] sm:$0xff] }
 0x158   : > { %v938_v28 = vmul.f32 0.01, %v886_v24  ;;  %vm922_vm3 = vcmp.ge.f32.partialorder %v886_v24, 0.0 }
 0x15a   : > { %v954_v31 = vsel %vm922_vm3, %v886_v24, %v938_v28  ;;  %1218 = vmatpush.bf16.msrb.mxu3 %v2773_v23 }
 0x15d   : > { %v887_v26 = vpop.f32.mrf.mxu1 }
 0x15e   : > { %v888_v29 = vadd.f32 %v3435_v11, %v887_v26  ;;  %v2772_v26 = vld [vmem:[#allocation5 + $0x28] sm:$0xff] }
 0x15f   : > { %1219 = vmatpush.bf16.msrb.mxu3 %v2772_v26 }
 0x160   : > { %v939_v30 = vmul.f32 0.01, %v888_v29  ;;  %vm923_vm4 = vcmp.ge.f32.partialorder %v888_v29, 0.0 }
 0x162   : > { %v955_v32 = vsel %vm923_vm4, %v888_v29, %v939_v30 }
 0x163   : > { %v969_v33 = vpack.c.bf16 %v955_v32, %v954_v31  ;;  %v2771_v31 = vld [vmem:[#allocation5 + $0x20] sm:$0xff] }
 0x164   : > { %1220 = vmatpush.bf16.msrb.mxu3 %v2771_v31 }
 0x165   : > { %v890_v36 = vpop.f32.mrf.mxu1  ;;  %1057 = vmatmul.bf16.gmra.mxu2 %v969_v33 }
 0x166   : > { %v891_v37 = vadd.f32 %v3435_v11, %v890_v36 }
 0x168   : > { %v940_v39 = vmul.f32 0.01, %v891_v37  ;;  %vm924_vm5 = vcmp.ge.f32.partialorder %v891_v37, 0.0 }
 0x16a   : > { %v956_v44 = vsel %vm924_vm5, %v891_v37, %v940_v39  ;;  %v2770_v39 = vld [vmem:[#allocation5 + $0x18] sm:$0xff] }
 0x16b   : > { %1221 = vmatpush.bf16.msrb.mxu3 %v2770_v39 }
 0x16d   : > { %v892_v38 = vpop.f32.mrf.mxu1 }
 0x16e   : > { %v893_v41 = vadd.f32 %v3435_v11, %v892_v38 }
 0x170   : > { %v941_v43 = vmul.f32 0.01, %v893_v41  ;;  %vm925_vm6 = vcmp.ge.f32.partialorder %v893_v41, 0.0 }
 0x172   : > { %v957_v45 = vsel %vm925_vm6, %v893_v41, %v941_v43  ;;  %v2769_v43 = vld [vmem:[#allocation5 + $0x10] sm:$0xff] }
 0x173   : > { %v970_v46 = vpack.c.bf16 %v957_v45, %v956_v44  ;;  %1222 = vmatpush.bf16.msrb.mxu3 %v2769_v43 }
 0x175   : > { %v895_v47 = vpop.f32.mrf.mxu1  ;;  %1062 = vmatmul.bf16.gmra.mxu2 %v970_v46 }
 0x176   : > { %v896_v48 = vadd.f32 %v3435_v11, %v895_v47  ;;  %v2768_v47 = vld [vmem:[#allocation5 + $0x8] sm:$0xff] }
 0x177   : > { %1223 = vmatpush.bf16.msrb.mxu3 %v2768_v47 }
 0x178   : > { %v942_v50 = vmul.f32 0.01, %v896_v48  ;;  %vm926_vm7 = vcmp.ge.f32.partialorder %v896_v48, 0.0 }
 0x17a   : > { %v958_v57 = vsel %vm926_vm7, %v896_v48, %v942_v50 }
 0x17d   : > { %v897_v49 = vpop.f32.mrf.mxu1 }
 0x17e   : > { %v898_v51 = vadd.f32 %v3435_v11, %v897_v49 }
 0x180   : > { %v943_v56 = vmul.f32 0.01, %v898_v51  ;;  %vm927_vm8 = vcmp.ge.f32.partialorder %v898_v51, 0.0 }
 0x182   : > { %v959_v58 = vsel %vm927_vm8, %v898_v51, %v943_v56  ;;  %v2767_v56 = vld [vmem:[#allocation5] sm:$0xff] }
 0x183   : > { %v971_v59 = vpack.c.bf16 %v959_v58, %v958_v57  ;;  %1224 = vmatpush.bf16.msrb.mxu3 %v2767_v56  ;;  %v3456_v58 = vld [vmem:[%s3812_s6] ss:$0 sm:$0xff] }
 0x185   : > { %v900_v60 = vpop.f32.mrf.mxu1  ;;  %1067 = vmatmul.bf16.gmra.mxu2 %v971_v59 }
 0x186   : > { %v901_v61 = vadd.f32 %v3435_v11, %v900_v60 }
 0x188   : > { %v944_v63 = vmul.f32 0.01, %v901_v61  ;;  %vm928_vm9 = vcmp.ge.f32.partialorder %v901_v61, 0.0 }
 0x18a   : > { %v960_v2 = vsel %vm928_vm9, %v901_v61, %v944_v63 }
 0x18d   : > { %v902_v62 = vpop.f32.mrf.mxu1 }
 0x18e   : > { %v903_v0 = vadd.f32 %v3435_v11, %v902_v62 }
 0x190   : > { %v945_v1 = vmul.f32 0.01, %v903_v0  ;;  %vm929_vm10 = vcmp.ge.f32.partialorder %v903_v0, 0.0 }
 0x192   : > { %v961_v7 = vsel %vm929_vm10, %v903_v0, %v945_v1 }
 0x193   : > { %v972_v8 = vpack.c.bf16 %v961_v7, %v960_v2 }
 0x195   : > { %v905_v9 = vpop.f32.mrf.mxu1  ;;  %1072 = vmatmul.bf16.gmra.mxu2 %v972_v8 }
 0x196   : > { %v906_v17 = vadd.f32 %v3435_v11, %v905_v9 }
 0x198   : > { %v946_v12 = vmul.f32 0.01, %v906_v17  ;;  %vm930_vm11 = vcmp.ge.f32.partialorder %v906_v17, 0.0 }
 0x19a   : > { %v962_v15 = vsel %vm930_vm11, %v906_v17, %v946_v12 }
 0x19d   : > { %v907_v10 = vpop.f32.mrf.mxu1 }
 0x19e   : > { %v908_v13 = vadd.f32 %v3435_v11, %v907_v10 }
 0x1a0   : > { %v947_v14 = vmul.f32 0.01, %v908_v13  ;;  %vm931_vm12 = vcmp.ge.f32.partialorder %v908_v13, 0.0 }
 0x1a2   : > { %v963_v16 = vsel %vm931_vm12, %v908_v13, %v947_v14 }
 0x1a3   : > { %v973_v20 = vpack.c.bf16 %v963_v16, %v962_v15 }
 0x1a5   : > { %v910_v21 = vpop.f32.mrf.mxu1  ;;  %1077 = vmatmul.bf16.gmra.mxu2 %v973_v20 }
 0x1a6   : > { %v911_v24 = vadd.f32 %v3435_v11, %v910_v21 }
 0x1a8   : > { %v948_v29 = vmul.f32 0.01, %v911_v24  ;;  %vm932_vm13 = vcmp.ge.f32.partialorder %v911_v24, 0.0 }
 0x1aa   : > { %v964_v33 = vsel %vm932_vm13, %v911_v24, %v948_v29 }
 0x1ad   : > { %v912_v28 = vpop.f32.mrf.mxu1 }
 0x1ae   : > { %v913_v30 = vadd.f32 %v3435_v11, %v912_v28 }
 0x1b0   : > { %v949_v32 = vmul.f32 0.01, %v913_v30  ;;  %vm933_vm14 = vcmp.ge.f32.partialorder %v913_v30, 0.0 }
 0x1b2   : > { %v965_v36 = vsel %vm933_vm14, %v913_v30, %v949_v32 }
 0x1b3   : > { %v974_v37 = vpack.c.bf16 %v965_v36, %v964_v33 }
 0x1b5   : > { %v915_v38 = vpop.f32.mrf.mxu1  ;;  %1082 = vmatmul.bf16.gmra.mxu2 %v974_v37 }
 0x1b6   : > { %v916_v41 = vadd.f32 %v3435_v11, %v915_v38 }
 0x1b8   : > { %v950_v45 = vmul.f32 0.01, %v916_v41  ;;  %vm934_vm15 = vcmp.ge.f32.partialorder %v916_v41, 0.0 }
 0x1ba   : > { %v966_v49 = vsel %vm934_vm15, %v916_v41, %v950_v45 }
 0x1bd   : > { %v917_v44 = vpop.f32.mrf.mxu1 }
 0x1be   : > { %v918_v46 = vadd.f32 %v3435_v11, %v917_v44 }
 0x1c0   : > { %v951_v48 = vmul.f32 0.01, %v918_v46  ;;  %vm935_vm0 = vcmp.ge.f32.partialorder %v918_v46, 0.0 }
 0x1c2   : > { %v967_v50 = vsel %vm935_vm0, %v918_v46, %v951_v48 }
 0x1c3   : > { %v975_v51 = vpack.c.bf16 %v967_v50, %v966_v49 }
 0x1c5   : > { %1087 = vmatmul.bf16.gmra.mxu2 %v975_v51 }
 0x1d8   : > { %v1053_v57 = vpop.f32.mrf.mxu2 }
 0x1d9   : > { %v1054_v59 = vadd.f32 %v3456_v58, %v1053_v57 }
 0x1db   : > { %v1109_v60 = vmul.f32 0.01, %v1054_v59  ;;  %vm1093_vm1 = vcmp.ge.f32.partialorder %v1054_v59, 0.0 }
 0x1dd   : > { %v1125_v63 = vsel %vm1093_vm1, %v1054_v59, %v1109_v60 }
 0x1e0   : > { %v1055_v11 = vpop.f32.mrf.mxu2 }
 0x1e1   : > { %v1056_v61 = vadd.f32 %v3456_v58, %v1055_v11 }
 0x1e3   : > { %vm1094_vm2 = vcmp.ge.f32.partialorder %v1056_v61, 0.0  ;;  %v1110_v62 = vmul.f32 0.01, %v1056_v61 }
 0x1e5   : > { %v1126_v0 = vsel %vm1094_vm2, %v1056_v61, %v1110_v62 }
 0x1e6   : > { %v1141_v1 = vpack.c.bf16 %v1126_v0, %v1125_v63 }
 0x1e8   : > { %v1058_v2 = vpop.f32.mrf.mxu2  ;;  %1225 = vmatmul.bf16.vlgmr.msrb.gmra.mxu3 %v1141_v1  ;;  %v2782_v1 = vld [vmem:[%s3809_s3 + $0x78] sm:$0xff] }
 0x1e9   : > { %v1059_v7 = vadd.f32 %v3456_v58, %v1058_v2  ;;  %1448 = vmatpush.bf16.msrb.mxu0 %v2782_v1  ;;  %v2781_v2 = vld [vmem:[%s3809_s3 + $0x70] sm:$0xff]  ;;  %v1269_v1 = vunpack.c.l.bf16 %v3380_v42  ;;  %v2788_v42 = vld [vmem:[#allocation2 + $0x68] sm:$0xff] }
 0x1eb   : > { %v1111_v9 = vmul.f32 0.01, %v1059_v7  ;;  %vm1095_vm3 = vcmp.ge.f32.partialorder %v1059_v7, 0.0 }
 0x1ed   : > { %v1127_v12 = vsel %vm1095_vm3, %v1059_v7, %v1111_v9  ;;  %1449 = vmatpush.bf16.msrb.mxu0 %v2781_v2 }
 0x1f0   : > { %v1060_v8 = vpop.f32.mrf.mxu2 }
 0x1f1   : > { %v1061_v17 = vadd.f32 %v3456_v58, %v1060_v8  ;;  %v2780_v8 = vld [vmem:[%s3809_s3 + $0x68] sm:$0xff] }
 0x1f2   : > { %1450 = vmatpush.bf16.msrb.mxu0 %v2780_v8 }
 0x1f3   : > { %v1112_v10 = vmul.f32 0.01, %v1061_v17  ;;  %vm1096_vm4 = vcmp.ge.f32.partialorder %v1061_v17, 0.0 }
 0x1f5   : > { %v1128_v13 = vsel %vm1096_vm4, %v1061_v17, %v1112_v10 }
 0x1f6   : > { %v1142_v14 = vpack.c.bf16 %v1128_v13, %v1127_v12 }
 0x1f8   : > { %v1063_v15 = vpop.f32.mrf.mxu2  ;;  %1230 = vmatmul.bf16.gmra.mxu3 %v1142_v14 }
 0x1f9   : > { %v1064_v16 = vadd.f32 %v3456_v58, %v1063_v15 }
 0x1fb   : > { %v1113_v21 = vmul.f32 0.01, %v1064_v16  ;;  %vm1097_vm5 = vcmp.ge.f32.partialorder %v1064_v16, 0.0 }
 0x1fd   : > { %v1129_v24 = vsel %vm1097_vm5, %v1064_v16, %v1113_v21 }
 0x200   : > { %v1065_v20 = vpop.f32.mrf.mxu2 }
 0x201   : > { %v1066_v22 = vadd.f32 %v3456_v58, %v1065_v20  ;;  %v2779_v20 = vld [vmem:[%s3809_s3 + $0x60] sm:$0xff] }
 0x202   : > { %1451 = vmatpush.bf16.msrb.mxu0 %v2779_v20 }
 0x203   : > { %v1114_v23 = vmul.f32 0.01, %v1066_v22  ;;  %vm1098_vm6 = vcmp.ge.f32.partialorder %v1066_v22, 0.0 }
 0x205   : > { %v1130_v26 = vsel %vm1098_vm6, %v1066_v22, %v1114_v23  ;;  %v2778_v22 = vld [vmem:[%s3809_s3 + $0x58] sm:$0xff] }
 0x206   : > { %v1143_v28 = vpack.c.bf16 %v1130_v26, %v1129_v24  ;;  %1452 = vmatpush.bf16.msrb.mxu0 %v2778_v22  ;;  %v1271_v22 = vunpack.c.l.bf16 %v3388_v54  ;;  %v2787_v54 = vld [vmem:[#allocation2 + $0x60] sm:$0xff] }
 0x208   : > { %v1068_v29 = vpop.f32.mrf.mxu2  ;;  %1235 = vmatmul.bf16.gmra.mxu3 %v1143_v28 }
 0x209   : > { %v1069_v30 = vadd.f32 %v3456_v58, %v1068_v29  ;;  %v2777_v29 = vld [vmem:[%s3809_s3 + $0x50] sm:$0xff] }
 0x20a   : > { %1453 = vmatpush.bf16.msrb.mxu0 %v2777_v29 }
 0x20b   : > { %v1115_v32 = vmul.f32 0.01, %v1069_v30  ;;  %vm1099_vm7 = vcmp.ge.f32.partialorder %v1069_v30, 0.0 }
 0x20d   : > { %v1131_v37 = vsel %vm1099_vm7, %v1069_v30, %v1115_v32 }
 0x210   : > { %v1070_v31 = vpop.f32.mrf.mxu2 }
 0x211   : > { %v1071_v33 = vadd.f32 %v3456_v58, %v1070_v31 }
 0x213   : > { %v1116_v36 = vmul.f32 0.01, %v1071_v33  ;;  %vm1100_vm8 = vcmp.ge.f32.partialorder %v1071_v33, 0.0 }
 0x215   : > { %v1132_v38 = vsel %vm1100_vm8, %v1071_v33, %v1116_v36  ;;  %v2776_v33 = vld [vmem:[%s3809_s3 + $0x48] sm:$0xff]  ;;  %v3501_v36 = vld [vmem:[%s3814_s8] ss:$0 sm:$0xff] }
 0x216   : > { %v1144_v39 = vpack.c.bf16 %v1132_v38, %v1131_v37  ;;  %1454 = vmatpush.bf16.msrb.mxu0 %v2776_v33 }
 0x218   : > { %v1073_v41 = vpop.f32.mrf.mxu2  ;;  %1240 = vmatmul.bf16.gmra.mxu3 %v1144_v39  ;;  %v1266_v39 = vunpack.c.l.bf16 %v3370_v25 }
 0x219   : > { %v1074_v43 = vadd.f32 %v3456_v58, %v1073_v41 }
 0x21b   : > { %v1117_v45 = vmul.f32 0.01, %v1074_v43  ;;  %vm1101_vm9 = vcmp.ge.f32.partialorder %v1074_v43, 0.0 }
 0x21d   : > { %v1133_v48 = vsel %vm1101_vm9, %v1074_v43, %v1117_v45  ;;  %v2790_v43 = vld [vmem:[#allocation2 + $0x78] sm:$0xff] }
 0x21e   : > { %1623 = vmatpush.bf16.msra.mxu1 %v2790_v43 }
 0x220   : > { %v1075_v44 = vpop.f32.mrf.mxu2 }
 0x221   : > { %v1076_v46 = vadd.f32 %v3456_v58, %v1075_v44 }
 0x223   : > { %v1118_v47 = vmul.f32 0.01, %v1076_v46  ;;  %vm1102_vm10 = vcmp.ge.f32.partialorder %v1076_v46, 0.0 }
 0x225   : > { %v1134_v49 = vsel %vm1102_vm10, %v1076_v46, %v1118_v47  ;;  %v1267_v47 = vunpack.c.l.bf16 %v3372_v27  ;;  %v2789_v27 = vld [vmem:[#allocation2 + $0x70] sm:$0xff] }
 0x226   : > { %v1145_v50 = vpack.c.bf16 %v1134_v49, %v1133_v48  ;;  %1624 = vmatpush.bf16.msra.mxu1 %v2789_v27 }
 0x228   : > { %v1078_v51 = vpop.f32.mrf.mxu2  ;;  %1245 = vmatmul.bf16.gmra.mxu3 %v1145_v50 }
 0x229   : > { %v1079_v56 = vadd.f32 %v3456_v58, %v1078_v51 }
 0x22a   : > { %1625 = vmatpush.bf16.msra.mxu1 %v2788_v42 }
 0x22b   : > { %v1119_v59 = vmul.f32 0.01, %v1079_v56  ;;  %vm1103_vm11 = vcmp.ge.f32.partialorder %v1079_v56, 0.0 }
 0x22d   : > { %v1135_v61 = vsel %vm1103_vm11, %v1079_v56, %v1119_v59 }
 0x22e   : > { %1626 = vmatpush.bf16.msra.mxu1 %v2787_v54 }
 0x230   : > { %v1080_v57 = vpop.f32.mrf.mxu2 }
 0x231   : > { %v1081_v11 = vadd.f32 %v3456_v58, %v1080_v57 }
 0x233   : > { %v1120_v60 = vmul.f32 0.01, %v1081_v11  ;;  %vm1104_vm12 = vcmp.ge.f32.partialorder %v1081_v11, 0.0 }
 0x235   : > { %v1136_v62 = vsel %vm1104_vm12, %v1081_v11, %v1120_v60  ;;  %v1268_v11 = vunpack.c.l.bf16 %v3378_v40 }
 0x236   : > { %v1146_v63 = vpack.c.bf16 %v1136_v62, %v1135_v61 }
 0x238   : > { %v1083_v0 = vpop.f32.mrf.mxu2  ;;  %1250 = vmatmul.bf16.gmra.mxu3 %v1146_v63 }
 0x239   : > { %v1084_v7 = vadd.f32 %v3456_v58, %v1083_v0 }
 0x23b   : > { %v1121_v17 = vmul.f32 0.01, %v1084_v7  ;;  %vm1105_vm13 = vcmp.ge.f32.partialorder %v1084_v7, 0.0 }
 0x23d   : > { %v1137_v13 = vsel %vm1105_vm13, %v1084_v7, %v1121_v17 }
 0x240   : > { %v1085_v9 = vpop.f32.mrf.mxu2 }
 0x241   : > { %v1086_v10 = vadd.f32 %v3456_v58, %v1085_v9 }
 0x243   : > { %v1122_v12 = vmul.f32 0.01, %v1086_v10  ;;  %vm1106_vm14 = vcmp.ge.f32.partialorder %v1086_v10, 0.0 }
 0x245   : > { %v1138_v14 = vsel %vm1106_vm14, %v1086_v10, %v1122_v12 }
 0x246   : > { %v1147_v15 = vpack.c.bf16 %v1138_v14, %v1137_v13  ;;  %v1270_v13 = vunpack.c.l.bf16 %v3386_v53 }
 0x248   : > { %v1088_v16 = vpop.f32.mrf.mxu2  ;;  %1255 = vmatmul.bf16.gmra.mxu3 %v1147_v15 }
 0x249   : > { %v1089_v21 = vadd.f32 %v3456_v58, %v1088_v16 }
 0x24b   : > { %v1123_v24 = vmul.f32 0.01, %v1089_v21  ;;  %vm1107_vm15 = vcmp.ge.f32.partialorder %v1089_v21, 0.0 }
 0x24d   : > { %v1139_v30 = vsel %vm1107_vm15, %v1089_v21, %v1123_v24 }
 0x250   : > { %v1090_v23 = vpop.f32.mrf.mxu2 }
 0x251   : > { %v1091_v26 = vadd.f32 %v3456_v58, %v1090_v23  ;;  %v2775_v58 = vld [vmem:[%s3809_s3 + $0x40] sm:$0xff] }
 0x252   : > { %1455 = vmatpush.bf16.msrb.mxu0 %v2775_v58 }
 0x253   : > { %v1124_v28 = vmul.f32 0.01, %v1091_v26  ;;  %vm1108_vm0 = vcmp.ge.f32.partialorder %v1091_v26, 0.0 }
 0x255   : > { %v1140_v31 = vsel %vm1108_vm0, %v1091_v26, %v1124_v28 }
 0x256   : > { %v1148_v32 = vpack.c.bf16 %v1140_v31, %v1139_v30 }
 0x258   : > { %1260 = vmatmul.bf16.gmra.mxu3 %v1148_v32  ;;  %v1272_v32 = vunpack.c.l.bf16 %v3394_v3 }
 0x26b   : > { %v1226_v37 = vpop.f32.mrf.mxu3 }
 0x26c   : > { %v1227_v38 = vadd.f32 %v3501_v36, %v1226_v37 }
 0x26e   : > { %v1282_v41 = vadd.f32 %v1266_v39, %v1227_v38 }
 0x270   : > { %v1298_v45 = vmax.f32 %v1282_v41, 0.0  ;;  %v1273_v41 = vunpack.c.l.bf16 %v3396_v4  ;;  %v2786_v4 = vld [vmem:[#allocation2 + $0x58] sm:$0xff] }
 0x271   : > { %1627 = vmatpush.bf16.msra.mxu1 %v2786_v4 }
 0x272   : > { %v3507_v49 = vpack.c.bf16 %v1298_v45, %v1298_v45 }
 0x273   : > { %v1228_v44 = vpop.f32.mrf.mxu3 }
 0x274   : > { %v1229_v46 = vadd.f32 %v3501_v36, %v1228_v44  ;;  %v1368_v57 = vunpack.c.l.b16 %v3507_v49 }
 0x276   : > { %v1283_v48 = vadd.f32 %v1267_v47, %v1229_v46 }
 0x278   : > { %v1299_v50 = vmax.f32 %v1283_v48, 0.0 }
 0x27a   : > { %v3509_v51 = vpack.c.bf16 %v1299_v50, %v1299_v50 }
 0x27b   : > { %v1231_v56 = vpop.f32.mrf.mxu3 }
 0x27c   : > { %v1232_v25 = vadd.f32 %v3501_v36, %v1231_v56  ;;  %v1369_v59 = vunpack.c.l.b16 %v3509_v51  ;;  %v1274_v56 = vunpack.c.l.bf16 %v3402_v18 }
 0x27e   : > { %v1384_v60 = vpack.c.b16 %v1369_v59, %v1368_v57  ;;  %v1284_v61 = vadd.f32 %v1268_v11, %v1232_v25 }
 0x280   : > { %1456 = vmatmul.bf16.vlgmr.msrb.gmra.mxu0 %v1384_v60  ;;  %v1300_v63 = vmax.f32 %v1284_v61, 0.0  ;;  %v1275_v61 = vunpack.c.l.bf16 %v3404_v19  ;;  %v2785_v19 = vld [vmem:[#allocation2 + $0x50] sm:$0xff] }
 0x281   : > { %1628 = vmatpush.bf16.msra.mxu1 %v2785_v19 }
 0x282   : > { %v3517_v7 = vpack.c.bf16 %v1300_v63, %v1300_v63 }
 0x283   : > { %v1233_v62 = vpop.f32.mrf.mxu3 }
 0x284   : > { %v1234_v0 = vadd.f32 %v3501_v36, %v1233_v62  ;;  %v1370_v10 = vunpack.c.l.b16 %v3517_v7 }
 0x286   : > { %v1285_v2 = vadd.f32 %v1269_v1, %v1234_v0 }
 0x288   : > { %v1301_v8 = vmax.f32 %v1285_v2, 0.0 }
 0x28a   : > { %v3519_v9 = vpack.c.bf16 %v1301_v8, %v1301_v8 }
 0x28b   : > { %v1236_v17 = vpop.f32.mrf.mxu3 }
 0x28c   : > { %v1237_v40 = vadd.f32 %v3501_v36, %v1236_v17  ;;  %v1371_v12 = vunpack.c.l.b16 %v3519_v9  ;;  %v1276_v17 = vunpack.c.l.bf16 %v3410_v34 }
 0x28e   : > { %v1385_v14 = vpack.c.b16 %v1371_v12, %v1370_v10  ;;  %v1286_v15 = vadd.f32 %v1270_v13, %v1237_v40 }
 0x290   : > { %1461 = vmatmul.bf16.gmra.mxu0 %v1385_v14  ;;  %v1302_v20 = vmax.f32 %v1286_v15, 0.0  ;;  %v1277_v15 = vunpack.c.l.bf16 %v3412_v35 }
 0x292   : > { %v3527_v24 = vpack.c.bf16 %v1302_v20, %v1302_v20 }
 0x293   : > { %v1238_v16 = vpop.f32.mrf.mxu3 }
 0x294   : > { %v1239_v21 = vadd.f32 %v3501_v36, %v1238_v16  ;;  %v1372_v30 = vunpack.c.l.b16 %v3527_v24 }
 0x296   : > { %v1287_v23 = vadd.f32 %v1271_v22, %v1239_v21  ;;  %v2784_v22 = vld [vmem:[#allocation2 + $0x48] sm:$0xff] }
 0x297   : > { %1629 = vmatpush.bf16.msra.mxu1 %v2784_v22 }
 0x298   : > { %v1303_v26 = vmax.f32 %v1287_v23, 0.0 }
 0x29a   : > { %v3529_v28 = vpack.c.bf16 %v1303_v26, %v1303_v26 }
 0x29b   : > { %v1241_v29 = vpop.f32.mrf.mxu3 }
 0x29c   : > { %v1242_v53 = vadd.f32 %v3501_v36, %v1241_v29  ;;  %v1373_v31 = vunpack.c.l.b16 %v3529_v28 }
 0x29e   : > { %v1386_v33 = vpack.c.b16 %v1373_v31, %v1372_v30  ;;  %v1288_v58 = vadd.f32 %v1272_v32, %v1242_v53  ;;  %v1278_v53 = vunpack.c.l.bf16 %v3418_v52 }
 0x2a0   : > { %1466 = vmatmul.bf16.gmra.mxu0 %v1386_v33  ;;  %v1304_v38 = vmax.f32 %v1288_v58, 0.0  ;;  %v1279_v58 = vunpack.c.l.bf16 %v3420_v55 }
 0x2a2   : > { %v3537_v44 = vpack.c.bf16 %v1304_v38, %v1304_v38 }
 0x2a3   : > { %v1243_v37 = vpop.f32.mrf.mxu3 }
 0x2a4   : > { %v1244_v39 = vadd.f32 %v3501_v36, %v1243_v37  ;;  %v1374_v48 = vunpack.c.l.b16 %v3537_v44 }
 0x2a6   : > { %v1289_v43 = vadd.f32 %v1273_v41, %v1244_v39 }
 0x2a8   : > { %v1305_v45 = vmax.f32 %v1289_v43, 0.0 }
 0x2aa   : > { %v3539_v46 = vpack.c.bf16 %v1305_v45, %v1305_v45 }
 0x2ab   : > { %v1246_v47 = vpop.f32.mrf.mxu3 }
 0x2ac   : > { %v1247_v3 = vadd.f32 %v3501_v36, %v1246_v47  ;;  %v1375_v50 = vunpack.c.l.b16 %v3539_v46  ;;  %v1280_v47 = vunpack.c.l.bf16 %v3426_v5 }
 0x2ae   : > { %v1387_v57 = vpack.c.b16 %v1375_v50, %v1374_v48  ;;  %v1290_v25 = vadd.f32 %v1274_v56, %v1247_v3  ;;  %v2783_v50 = vld [vmem:[#allocation2 + $0x40] sm:$0xff] }
 0x2af   : > { %1630 = vmatpush.bf16.msra.mxu1 %v2783_v50  ;;  %v2794_v50 = vld [vmem:[#allocation5 + $0x58] sm:$0xff] }
 0x2b0   : > { %1471 = vmatmul.bf16.gmra.mxu0 %v1387_v57  ;;  %v1306_v11 = vmax.f32 %v1290_v25, 0.0  ;;  %v1281_v25 = vunpack.c.l.bf16 %v3428_v6  ;;  %v3586_v6 = vld [vmem:[%s3810_s4 + $0x1] ss:$0 sm:$0xff] }
 0x2b2   : > { %v3547_v62 = vpack.c.bf16 %v1306_v11, %v1306_v11 }
 0x2b3   : > { %v1248_v59 = vpop.f32.mrf.mxu3 }
 0x2b4   : > { %v1249_v60 = vadd.f32 %v3501_v36, %v1248_v59  ;;  %v1376_v2 = vunpack.c.l.b16 %v3547_v62 }
 0x2b6   : > { %v1291_v27 = vadd.f32 %v1275_v61, %v1249_v60 }
 0x2b8   : > { %v1307_v63 = vmax.f32 %v1291_v27, 0.0 }
 0x2ba   : > { %v3549_v0 = vpack.c.bf16 %v1307_v63, %v1307_v63  ;;  %v2798_v63 = vld [vmem:[#allocation5 + $0x78] sm:$0xff] }
 0x2bb   : > { %v1251_v1 = vpop.f32.mrf.mxu3  ;;  %1798 = vmatpush.bf16.msra.mxu2 %v2798_v63  ;;  %v2793_v63 = vld [vmem:[#allocation5 + $0x50] sm:$0xff] }
 0x2bc   : > { %v1252_v18 = vadd.f32 %v3501_v36, %v1251_v1  ;;  %v1377_v8 = vunpack.c.l.b16 %v3549_v0 }
 0x2be   : > { %v1388_v40 = vpack.c.b16 %v1377_v8, %v1376_v2  ;;  %v1292_v10 = vadd.f32 %v1276_v17, %v1252_v18 }
 0x2c0   : > { %1476 = vmatmul.bf16.gmra.mxu0 %v1388_v40  ;;  %v1308_v13 = vmax.f32 %v1292_v10, 0.0  ;;  %v2797_v40 = vld [vmem:[#allocation5 + $0x70] sm:$0xff] }
 0x2c1   : > { %1799 = vmatpush.bf16.msra.mxu2 %v2797_v40 }
 0x2c2   : > { %v3557_v16 = vpack.c.bf16 %v1308_v13, %v1308_v13 }
 0x2c3   : > { %v1253_v12 = vpop.f32.mrf.mxu3 }
 0x2c4   : > { %v1254_v14 = vadd.f32 %v3501_v36, %v1253_v12  ;;  %v1378_v26 = vunpack.c.l.b16 %v3557_v16 }
 0x2c6   : > { %v1293_v42 = vadd.f32 %v1277_v15, %v1254_v14 }
 0x2c8   : > { %v1309_v20 = vmax.f32 %v1293_v42, 0.0 }
 0x2ca   : > { %v3559_v21 = vpack.c.bf16 %v1309_v20, %v1309_v20 }
 0x2cb   : > { %v1256_v23 = vpop.f32.mrf.mxu3 }
 0x2cc   : > { %v1257_v34 = vadd.f32 %v3501_v36, %v1256_v23  ;;  %v1379_v29 = vunpack.c.l.b16 %v3559_v21  ;;  %v2796_v23 = vld [vmem:[#allocation5 + $0x68] sm:$0xff] }
 0x2cd   : > { %1800 = vmatpush.bf16.msra.mxu2 %v2796_v23 }
 0x2ce   : > { %v1389_v30 = vpack.c.b16 %v1379_v29, %v1378_v26  ;;  %v1294_v35 = vadd.f32 %v1278_v53, %v1257_v34 }
 0x2d0   : > { %1481 = vmatmul.bf16.gmra.mxu0 %v1389_v30  ;;  %v1310_v32 = vmax.f32 %v1294_v35, 0.0 }
 0x2d2   : > { %v3567_v37 = vpack.c.bf16 %v1310_v32, %v1310_v32 }
 0x2d3   : > { %v1258_v31 = vpop.f32.mrf.mxu3 }
 0x2d4   : > { %v1259_v33 = vadd.f32 %v3501_v36, %v1258_v31  ;;  %v1380_v52 = vunpack.c.l.b16 %v3567_v37 }
 0x2d6   : > { %v1295_v54 = vadd.f32 %v1279_v58, %v1259_v33  ;;  %v2795_v58 = vld [vmem:[#allocation5 + $0x60] sm:$0xff] }
 0x2d7   : > { %1801 = vmatpush.bf16.msra.mxu2 %v2795_v58 }
 0x2d8   : > { %v1311_v38 = vmax.f32 %v1295_v54, 0.0 }
 0x2da   : > { %v3569_v39 = vpack.c.bf16 %v1311_v38, %v1311_v38 }
 0x2db   : > { %v1261_v41 = vpop.f32.mrf.mxu3  ;;  %1802 = vmatpush.bf16.msra.mxu2 %v2794_v50 }
 0x2dc   : > { %v1262_v43 = vadd.f32 %v3501_v36, %v1261_v41  ;;  %v1381_v45 = vunpack.c.l.b16 %v3569_v39 }
 0x2de   : > { %v1390_v3 = vpack.c.b16 %v1381_v45, %v1380_v52  ;;  %v1296_v48 = vadd.f32 %v1280_v47, %v1262_v43 }
 0x2df   : > { %1803 = vmatpush.bf16.msra.mxu2 %v2793_v63 }
 0x2e0   : > { %1486 = vmatmul.bf16.gmra.mxu0 %v1390_v3  ;;  %v1312_v56 = vmax.f32 %v1296_v48, 0.0 }
 0x2e2   : > { %v3577_v59 = vpack.c.bf16 %v1312_v56, %v1312_v56 }
 0x2e3   : > { %v1263_v55 = vpop.f32.mrf.mxu3 }
 0x2e4   : > { %v1264_v57 = vadd.f32 %v3501_v36, %v1263_v55  ;;  %v1382_v61 = vunpack.c.l.b16 %v3577_v59 }
 0x2e6   : > { %v1297_v4 = vadd.f32 %v1281_v25, %v1264_v57 }
 0x2e8   : > { %v1313_v11 = vmax.f32 %v1297_v4, 0.0 }
 0x2ea   : > { %v3579_v60 = vpack.c.bf16 %v1313_v11, %v1313_v11 }
 0x2ec   : > { %v1383_v5 = vunpack.c.l.b16 %v3579_v60 }
 0x2ee   : > { %v1391_v27 = vpack.c.b16 %v1383_v5, %v1382_v61 }
 0x2f0   : > { %1491 = vmatmul.bf16.gmra.mxu0 %v1391_v27 }
 0x2fd   : > { %v1457_v1 = vpop.f32.mrf.mxu0 }
 0x2fe   : > { %v1458_v36 = vadd.f32 %v3586_v6, %v1457_v1 }
 0x300   : > { %v1513_v2 = vmul.f32 0.01, %v1458_v36  ;;  %vm1497_vm1 = vcmp.ge.f32.partialorder %v1458_v36, 0.0 }
 0x302   : > { %v1529_v10 = vsel %vm1497_vm1, %v1458_v36, %v1513_v2 }
 0x305   : > { %v1459_v18 = vpop.f32.mrf.mxu0 }
 0x306   : > { %v1460_v8 = vadd.f32 %v3586_v6, %v1459_v18 }
 0x308   : > { %vm1498_vm2 = vcmp.ge.f32.partialorder %v1460_v8, 0.0  ;;  %v1514_v17 = vmul.f32 0.01, %v1460_v8 }
 0x30a   : > { %v1530_v19 = vsel %vm1498_vm2, %v1460_v8, %v1514_v17 }
 0x30b   : > { %v1545_v12 = vpack.c.bf16 %v1530_v19, %v1529_v10 }
 0x30d   : > { %v1462_v13 = vpop.f32.mrf.mxu0  ;;  %1631 = vmatmul.bf16.vlgmr.msra.gmra.mxu1 %v1545_v12  ;;  %v2792_v12 = vld [vmem:[#allocation5 + $0x48] sm:$0xff] }
 0x30e   : > { %v1463_v14 = vadd.f32 %v3586_v6, %v1462_v13  ;;  %1804 = vmatpush.bf16.msra.mxu2 %v2792_v12 }
 0x310   : > { %v1515_v42 = vmul.f32 0.01, %v1463_v14  ;;  %vm1499_vm3 = vcmp.ge.f32.partialorder %v1463_v14, 0.0 }
 0x312   : > { %v1531_v34 = vsel %vm1499_vm3, %v1463_v14, %v1515_v42 }
 0x315   : > { %v1464_v15 = vpop.f32.mrf.mxu0 }
 0x316   : > { %v1465_v20 = vadd.f32 %v3586_v6, %v1464_v15 }
 0x318   : > { %v1516_v22 = vmul.f32 0.01, %v1465_v20  ;;  %vm1500_vm4 = vcmp.ge.f32.partialorder %v1465_v20, 0.0 }
 0x31a   : > { %v1532_v26 = vsel %vm1500_vm4, %v1465_v20, %v1516_v22 }
 0x31b   : > { %v1546_v29 = vpack.c.bf16 %v1532_v26, %v1531_v34 }
 0x31d   : > { %v1467_v53 = vpop.f32.mrf.mxu0  ;;  %1636 = vmatmul.bf16.gmra.mxu1 %v1546_v29 }
 0x31e   : > { %v1468_v30 = vadd.f32 %v3586_v6, %v1467_v53 }
 0x320   : > { %v1517_v31 = vmul.f32 0.01, %v1468_v30  ;;  %vm1501_vm5 = vcmp.ge.f32.partialorder %v1468_v30, 0.0 }
 0x322   : > { %v1533_v54 = vsel %vm1501_vm5, %v1468_v30, %v1517_v31  ;;  %v2791_v31 = vld [vmem:[#allocation5 + $0x40] sm:$0xff] }
 0x323   : > { %1805 = vmatpush.bf16.msra.mxu2 %v2791_v31 }
 0x325   : > { %v1469_v35 = vpop.f32.mrf.mxu0 }
 0x326   : > { %v1470_v32 = vadd.f32 %v3586_v6, %v1469_v35 }
 0x328   : > { %vm1502_vm6 = vcmp.ge.f32.partialorder %v1470_v32, 0.0  ;;  %v1518_v33 = vmul.f32 0.01, %v1470_v32 }
 0x32a   : > { %v1534_v38 = vsel %vm1502_vm6, %v1470_v32, %v1518_v33 }
 0x32b   : > { %v1547_v41 = vpack.c.bf16 %v1534_v38, %v1533_v54 }
 0x32d   : > { %v1472_v43 = vpop.f32.mrf.mxu0  ;;  %1641 = vmatmul.bf16.gmra.mxu1 %v1547_v41 }
 0x32e   : > { %v1473_v52 = vadd.f32 %v3586_v6, %v1472_v43 }
 0x330   : > { %v1519_v47 = vmul.f32 0.01, %v1473_v52  ;;  %vm1503_vm7 = vcmp.ge.f32.partialorder %v1473_v52, 0.0 }
 0x332   : > { %v1535_v55 = vsel %vm1503_vm7, %v1473_v52, %v1519_v47  ;;  %v3607_v47 = vld [vmem:[%s3812_s6 + $0x1] ss:$0 sm:$0xff] }
 0x335   : > { %v1474_v45 = vpop.f32.mrf.mxu0 }
 0x336   : > { %v1475_v3 = vadd.f32 %v3586_v6, %v1474_v45 }
 0x338   : > { %vm1504_vm8 = vcmp.ge.f32.partialorder %v1475_v3, 0.0  ;;  %v1520_v48 = vmul.f32 0.01, %v1475_v3 }
 0x33a   : > { %v1536_v56 = vsel %vm1504_vm8, %v1475_v3, %v1520_v48  ;;  %v2806_v3 = vld [vmem:[#allocation7 + $0x38] sm:$0xff] }
 0x33b   : > { %v1548_v57 = vpack.c.bf16 %v1536_v56, %v1535_v55  ;;  %1971 = vmatpush.bf16.msra.mxu3 %v2806_v3 }
 0x33d   : > { %v1477_v25 = vpop.f32.mrf.mxu0  ;;  %1646 = vmatmul.bf16.gmra.mxu1 %v1548_v57 }
 0x33e   : > { %v1478_v4 = vadd.f32 %v3586_v6, %v1477_v25 }
 0x340   : > { %v1521_v61 = vmul.f32 0.01, %v1478_v4  ;;  %vm1505_vm9 = vcmp.ge.f32.partialorder %v1478_v4, 0.0 }
 0x342   : > { %v1537_v1 = vsel %vm1505_vm9, %v1478_v4, %v1521_v61  ;;  %v2805_v61 = vld [vmem:[#allocation7 + $0x30] sm:$0xff] }
 0x343   : > { %1972 = vmatpush.bf16.msra.mxu3 %v2805_v61 }
 0x345   : > { %v1479_v11 = vpop.f32.mrf.mxu0 }
 0x346   : > { %v1480_v5 = vadd.f32 %v3586_v6, %v1479_v11 }
 0x348   : > { %vm1506_vm10 = vcmp.ge.f32.partialorder %v1480_v5, 0.0  ;;  %v1522_v27 = vmul.f32 0.01, %v1480_v5 }
 0x34a   : > { %v1538_v36 = vsel %vm1506_vm10, %v1480_v5, %v1522_v27 }
 0x34b   : > { %v1549_v18 = vpack.c.bf16 %v1538_v36, %v1537_v1 }
 0x34d   : > { %v1482_v2 = vpop.f32.mrf.mxu0  ;;  %1651 = vmatmul.bf16.gmra.mxu1 %v1549_v18 }
 0x34e   : > { %v1483_v8 = vadd.f32 %v3586_v6, %v1482_v2 }
 0x350   : > { %v1523_v40 = vmul.f32 0.01, %v1483_v8  ;;  %vm1507_vm11 = vcmp.ge.f32.partialorder %v1483_v8, 0.0 }
 0x352   : > { %v1539_v13 = vsel %vm1507_vm11, %v1483_v8, %v1523_v40  ;;  %v2804_v40 = vld [vmem:[#allocation7 + $0x28] sm:$0xff] }
 0x353   : > { %1973 = vmatpush.bf16.msra.mxu3 %v2804_v40 }
 0x355   : > { %v1484_v17 = vpop.f32.mrf.mxu0 }
 0x356   : > { %v1485_v10 = vadd.f32 %v3586_v6, %v1484_v17 }
 0x358   : > { %vm1508_vm12 = vcmp.ge.f32.partialorder %v1485_v10, 0.0  ;;  %v1524_v19 = vmul.f32 0.01, %v1485_v10 }
 0x35a   : > { %v1540_v14 = vsel %vm1508_vm12, %v1485_v10, %v1524_v19 }
 0x35b   : > { %v1550_v15 = vpack.c.bf16 %v1540_v14, %v1539_v13 }
 0x35d   : > { %v1487_v42 = vpop.f32.mrf.mxu0  ;;  %1656 = vmatmul.bf16.gmra.mxu1 %v1550_v15 }
 0x35e   : > { %v1488_v20 = vadd.f32 %v3586_v6, %v1487_v42 }
 0x360   : > { %v1525_v23 = vmul.f32 0.01, %v1488_v20  ;;  %vm1509_vm13 = vcmp.ge.f32.partialorder %v1488_v20, 0.0 }
 0x362   : > { %v1541_v29 = vsel %vm1509_vm13, %v1488_v20, %v1525_v23  ;;  %v2803_v23 = vld [vmem:[#allocation7 + $0x20] sm:$0xff] }
 0x363   : > { %1974 = vmatpush.bf16.msra.mxu3 %v2803_v23 }
 0x365   : > { %v1489_v22 = vpop.f32.mrf.mxu0 }
 0x366   : > { %v1490_v34 = vadd.f32 %v3586_v6, %v1489_v22 }
 0x368   : > { %vm1510_vm14 = vcmp.ge.f32.partialorder %v1490_v34, 0.0  ;;  %v1526_v26 = vmul.f32 0.01, %v1490_v34 }
 0x36a   : > { %v1542_v53 = vsel %vm1510_vm14, %v1490_v34, %v1526_v26 }
 0x36b   : > { %v1551_v30 = vpack.c.bf16 %v1542_v53, %v1541_v29 }
 0x36d   : > { %v1492_v35 = vpop.f32.mrf.mxu0  ;;  %1661 = vmatmul.bf16.gmra.mxu1 %v1551_v30 }
 0x36e   : > { %v1493_v32 = vadd.f32 %v3586_v6, %v1492_v35 }
 0x370   : > { %v1527_v58 = vmul.f32 0.01, %v1493_v32  ;;  %vm1511_vm15 = vcmp.ge.f32.partialorder %v1493_v32, 0.0 }
 0x372   : > { %v1543_v41 = vsel %vm1511_vm15, %v1493_v32, %v1527_v58  ;;  %v2802_v58 = vld [vmem:[#allocation7 + $0x18] sm:$0xff] }
 0x373   : > { %1975 = vmatpush.bf16.msra.mxu3 %v2802_v58 }
 0x375   : > { %v1494_v33 = vpop.f32.mrf.mxu0 }
 0x376   : > { %v1495_v54 = vadd.f32 %v3586_v6, %v1494_v33 }
 0x378   : > { %vm1512_vm0 = vcmp.ge.f32.partialorder %v1495_v54, 0.0  ;;  %v1528_v38 = vmul.f32 0.01, %v1495_v54 }
 0x37a   : > { %v1544_v43 = vsel %vm1512_vm0, %v1495_v54, %v1528_v38 }
 0x37b   : > { %v1552_v52 = vpack.c.bf16 %v1544_v43, %v1543_v41 }
 0x37d   : > { %1666 = vmatmul.bf16.gmra.mxu1 %v1552_v52 }
 0x38a   : > { %v1632_v45 = vpop.f32.mrf.mxu1 }
 0x38b   : > { %v1633_v48 = vadd.f32 %v3607_v47, %v1632_v45 }
 0x38d   : > { %v1688_v55 = vmul.f32 0.01, %v1633_v48  ;;  %vm1672_vm1 = vcmp.ge.f32.partialorder %v1633_v48, 0.0 }
 0x38f   : > { %v1704_v57 = vsel %vm1672_vm1, %v1633_v48, %v1688_v55  ;;  %v2801_v55 = vld [vmem:[#allocation7 + $0x10] sm:$0xff] }
 0x390   : > { %1976 = vmatpush.bf16.msra.mxu3 %v2801_v55  ;;  %v1850_v55 = vunpack.c.l.bf16 %v3519_v9 }
 0x392   : > { %v1634_v50 = vpop.f32.mrf.mxu1 }
 0x393   : > { %v1635_v6 = vadd.f32 %v3607_v47, %v1634_v50 }
 0x395   : > { %vm1673_vm2 = vcmp.ge.f32.partialorder %v1635_v6, 0.0  ;;  %v1689_v56 = vmul.f32 0.01, %v1635_v6 }
 0x397   : > { %v1705_v25 = vsel %vm1673_vm2, %v1635_v6, %v1689_v56 }
 0x398   : > { %v1720_v4 = vpack.c.bf16 %v1705_v25, %v1704_v57 }
 0x39a   : > { %v1637_v11 = vpop.f32.mrf.mxu1  ;;  %1806 = vmatmul.bf16.vlgmr.msra.gmra.mxu2 %v1720_v4 }
 0x39b   : > { %v1638_v5 = vadd.f32 %v3607_v47, %v1637_v11 }
 0x39d   : > { %v1690_v63 = vmul.f32 0.01, %v1638_v5  ;;  %vm1674_vm3 = vcmp.ge.f32.partialorder %v1638_v5, 0.0 }
 0x39f   : > { %v1706_v18 = vsel %vm1674_vm3, %v1638_v5, %v1690_v63  ;;  %v2800_v63 = vld [vmem:[#allocation7 + $0x8] sm:$0xff] }
 0x3a0   : > { %1977 = vmatpush.bf16.msra.mxu3 %v2800_v63  ;;  %v1852_v63 = vunpack.c.l.bf16 %v3529_v28 }
 0x3a2   : > { %v1639_v27 = vpop.f32.mrf.mxu1 }
 0x3a3   : > { %v1640_v1 = vadd.f32 %v3607_v47, %v1639_v27 }
 0x3a5   : > { %vm1675_vm4 = vcmp.ge.f32.partialorder %v1640_v1, 0.0  ;;  %v1691_v36 = vmul.f32 0.01, %v1640_v1 }
 0x3a7   : > { %v1707_v2 = vsel %vm1675_vm4, %v1640_v1, %v1691_v36 }
 0x3a8   : > { %v1721_v8 = vpack.c.bf16 %v1707_v2, %v1706_v18 }
 0x3aa   : > { %v1642_v17 = vpop.f32.mrf.mxu1  ;;  %1811 = vmatmul.bf16.gmra.mxu2 %v1721_v8 }
 0x3ab   : > { %v1643_v10 = vadd.f32 %v3607_v47, %v1642_v17 }
 0x3ad   : > { %v1692_v12 = vmul.f32 0.01, %v1643_v10  ;;  %vm1676_vm5 = vcmp.ge.f32.partialorder %v1643_v10, 0.0 }
 0x3af   : > { %v1708_v15 = vsel %vm1676_vm5, %v1643_v10, %v1692_v12 }
 0x3b2   : > { %v1644_v19 = vpop.f32.mrf.mxu1 }
 0x3b3   : > { %v1645_v13 = vadd.f32 %v3607_v47, %v1644_v19 }
 0x3b5   : > { %vm1677_vm6 = vcmp.ge.f32.partialorder %v1645_v13, 0.0  ;;  %v1693_v14 = vmul.f32 0.01, %v1645_v13 }
 0x3b7   : > { %v1709_v42 = vsel %vm1677_vm6, %v1645_v13, %v1693_v14  ;;  %v2799_v14 = vld [vmem:[#allocation7] sm:$0xff] }
 0x3b8   : > { %v1722_v20 = vpack.c.bf16 %v1709_v42, %v1708_v15  ;;  %1978 = vmatpush.bf16.msra.mxu3 %v2799_v14 }
 0x3ba   : > { %v1647_v22 = vpop.f32.mrf.mxu1  ;;  %1816 = vmatmul.bf16.gmra.mxu2 %v1722_v20 }
 0x3bb   : > { %v1648_v34 = vadd.f32 %v3607_v47, %v1647_v22 }
 0x3bd   : > { %v1694_v29 = vmul.f32 0.01, %v1648_v34  ;;  %vm1678_vm7 = vcmp.ge.f32.partialorder %v1648_v34, 0.0 }
 0x3bf   : > { %v1710_v35 = vsel %vm1678_vm7, %v1648_v34, %v1694_v29  ;;  %v3628_v29 = vld [vmem:[%s3814_s8 + $0x1] ss:$0 sm:$0xff] }
 0x3c2   : > { %v1649_v26 = vpop.f32.mrf.mxu1 }
 0x3c3   : > { %v1650_v53 = vadd.f32 %v3607_v47, %v1649_v26 }
 0x3c5   : > { %vm1679_vm8 = vcmp.ge.f32.partialorder %v1650_v53, 0.0  ;;  %v1695_v30 = vmul.f32 0.01, %v1650_v53 }
 0x3c7   : > { %v1711_v31 = vsel %vm1679_vm8, %v1650_v53, %v1695_v30  ;;  %v2814_v30 = vld [vmem:[#allocation8 + $0x38] sm:$0xff] }
 0x3c8   : > { %v1723_v32 = vpack.c.bf16 %v1711_v31, %v1710_v35  ;;  %v1847_v35 = vunpack.c.l.bf16 %v3507_v49  ;;  %2160 = vmatpush.bf16.msra.mxu0 %v2814_v30 }
 0x3ca   : > { %v1652_v33 = vpop.f32.mrf.mxu1  ;;  %1821 = vmatmul.bf16.gmra.mxu2 %v1723_v32 }
 0x3cb   : > { %v1653_v54 = vadd.f32 %v3607_v47, %v1652_v33  ;;  %v1848_v33 = vunpack.c.l.bf16 %v3509_v51 }
 0x3cd   : > { %v1696_v41 = vmul.f32 0.01, %v1653_v54  ;;  %vm1680_vm9 = vcmp.ge.f32.partialorder %v1653_v54, 0.0 }
 0x3cf   : > { %v1712_v45 = vsel %vm1680_vm9, %v1653_v54, %v1696_v41 }
 0x3d2   : > { %v1654_v38 = vpop.f32.mrf.mxu1 }
 0x3d3   : > { %v1655_v43 = vadd.f32 %v3607_v47, %v1654_v38 }
 0x3d5   : > { %vm1681_vm10 = vcmp.ge.f32.partialorder %v1655_v43, 0.0  ;;  %v1697_v52 = vmul.f32 0.01, %v1655_v43 }
 0x3d7   : > { %v1713_v3 = vsel %vm1681_vm10, %v1655_v43, %v1697_v52 }
 0x3d8   : > { %v1724_v48 = vpack.c.bf16 %v1713_v3, %v1712_v45  ;;  %v2813_v45 = vld [vmem:[#allocation8 + $0x30] sm:$0xff]  ;;  %v1849_v3 = vunpack.c.l.bf16 %v3517_v7 }
 0x3d9   : > { %2161 = vmatpush.bf16.msra.mxu0 %v2813_v45 }
 0x3da   : > { %v1657_v50 = vpop.f32.mrf.mxu1  ;;  %1826 = vmatmul.bf16.gmra.mxu2 %v1724_v48 }
 0x3db   : > { %v1658_v6 = vadd.f32 %v3607_v47, %v1657_v50 }
 0x3dd   : > { %v1698_v57 = vmul.f32 0.01, %v1658_v6  ;;  %vm1682_vm11 = vcmp.ge.f32.partialorder %v1658_v6, 0.0 }
 0x3df   : > { %v1714_v11 = vsel %vm1682_vm11, %v1658_v6, %v1698_v57 }
 0x3e2   : > { %v1659_v56 = vpop.f32.mrf.mxu1 }
 0x3e3   : > { %v1660_v25 = vadd.f32 %v3607_v47, %v1659_v56 }
 0x3e5   : > { %vm1683_vm12 = vcmp.ge.f32.partialorder %v1660_v25, 0.0  ;;  %v1699_v4 = vmul.f32 0.01, %v1660_v25 }
 0x3e7   : > { %v1715_v61 = vsel %vm1683_vm12, %v1660_v25, %v1699_v4 }
 0x3e8   : > { %v1725_v5 = vpack.c.bf16 %v1715_v61, %v1714_v11  ;;  %v2812_v11 = vld [vmem:[#allocation8 + $0x28] sm:$0xff]  ;;  %v1851_v61 = vunpack.c.l.bf16 %v3527_v24 }
 0x3e9   : > { %2162 = vmatpush.bf16.msra.mxu0 %v2812_v11 }
 0x3ea   : > { %v1662_v27 = vpop.f32.mrf.mxu1  ;;  %1831 = vmatmul.bf16.gmra.mxu2 %v1725_v5 }
 0x3eb   : > { %v1663_v1 = vadd.f32 %v3607_v47, %v1662_v27 }
 0x3ed   : > { %v1700_v18 = vmul.f32 0.01, %v1663_v1  ;;  %vm1684_vm13 = vcmp.ge.f32.partialorder %v1663_v1, 0.0 }
 0x3ef   : > { %v1716_v17 = vsel %vm1684_vm13, %v1663_v1, %v1700_v18 }
 0x3f2   : > { %v1664_v36 = vpop.f32.mrf.mxu1 }
 0x3f3   : > { %v1665_v2 = vadd.f32 %v3607_v47, %v1664_v36 }
 0x3f5   : > { %vm1685_vm14 = vcmp.ge.f32.partialorder %v1665_v2, 0.0  ;;  %v1701_v8 = vmul.f32 0.01, %v1665_v2 }
 0x3f7   : > { %v1717_v40 = vsel %vm1685_vm14, %v1665_v2, %v1701_v8 }
 0x3f8   : > { %v1726_v10 = vpack.c.bf16 %v1717_v40, %v1716_v17  ;;  %v2811_v17 = vld [vmem:[#allocation8 + $0x20] sm:$0xff]  ;;  %v1853_v40 = vunpack.c.l.bf16 %v3537_v44 }
 0x3f9   : > { %2163 = vmatpush.bf16.msra.mxu0 %v2811_v17 }
 0x3fa   : > { %v1667_v19 = vpop.f32.mrf.mxu1  ;;  %1836 = vmatmul.bf16.gmra.mxu2 %v1726_v10 }
 0x3fb   : > { %v1668_v12 = vadd.f32 %v3607_v47, %v1667_v19 }
 0x3fd   : > { %v1702_v15 = vmul.f32 0.01, %v1668_v12  ;;  %vm1686_vm15 = vcmp.ge.f32.partialorder %v1668_v12, 0.0 }
 0x3ff   : > { %v1718_v22 = vsel %vm1686_vm15, %v1668_v12, %v1702_v15  ;;  %v1854_v12 = vunpack.c.l.bf16 %v3539_v46 }
 0x402   : > { %v1669_v13 = vpop.f32.mrf.mxu1 }
 0x403   : > { %v1670_v42 = vadd.f32 %v3607_v47, %v1669_v13 }
 0x405   : > { %vm1687_vm0 = vcmp.ge.f32.partialorder %v1670_v42, 0.0  ;;  %v1703_v20 = vmul.f32 0.01, %v1670_v42 }
 0x407   : > { %v1719_v23 = vsel %vm1687_vm0, %v1670_v42, %v1703_v20 }
 0x408   : > { %v1727_v34 = vpack.c.bf16 %v1719_v23, %v1718_v22  ;;  %v2810_v22 = vld [vmem:[#allocation8 + $0x18] sm:$0xff]  ;;  %v1855_v23 = vunpack.c.l.bf16 %v3547_v62 }
 0x409   : > { %2164 = vmatpush.bf16.msra.mxu0 %v2810_v22 }
 0x40a   : > { %1841 = vmatmul.bf16.gmra.mxu2 %v1727_v34 }
 0x41d   : > { %v1807_v26 = vpop.f32.mrf.mxu2 }
 0x41e   : > { %v1808_v53 = vadd.f32 %v3628_v29, %v1807_v26 }
 0x420   : > { %v1863_v31 = vadd.f32 %v1847_v35, %v1808_v53  ;;  %v1856_v53 = vunpack.c.l.bf16 %v3549_v0 }
 0x422   : > { %v1879_v54 = vmax.f32 %v1863_v31, 0.0 }
 0x425   : > { %v1809_v47 = vpop.f32.mrf.mxu2 }
 0x426   : > { %v1810_v32 = vadd.f32 %v3628_v29, %v1809_v47 }
 0x428   : > { %v1864_v58 = vadd.f32 %v1848_v33, %v1810_v32  ;;  %v2809_v33 = vld [vmem:[#allocation8 + $0x10] sm:$0xff] }
 0x429   : > { %2165 = vmatpush.bf16.msra.mxu0 %v2809_v33 }
 0x42a   : > { %v1880_v38 = vmax.f32 %v1864_v58, 0.0  ;;  %v1857_v58 = vunpack.c.l.bf16 %v3557_v16 }
 0x42c   : > { %v1895_v41 = vpack.c.bf16 %v1880_v38, %v1879_v54 }
 0x42d   : > { %v1812_v43 = vpop.f32.mrf.mxu2 }
 0x42e   : > { %1979 = vmatmul.bf16.vlgmr.msra.gmra.mxu3 %v1895_v41  ;;  %v1813_v52 = vadd.f32 %v3628_v29, %v1812_v43  ;;  %v1858_v41 = vunpack.c.l.bf16 %v3559_v21 }
 0x430   : > { %v1865_v48 = vadd.f32 %v1849_v3, %v1813_v52 }
 0x432   : > { %v1881_v51 = vmax.f32 %v1865_v48, 0.0 }
 0x435   : > { %v1814_v49 = vpop.f32.mrf.mxu2 }
 0x436   : > { %v1815_v50 = vadd.f32 %v3628_v29, %v1814_v49  ;;  %v2808_v49 = vld [vmem:[#allocation8 + $0x8] sm:$0xff] }
 0x437   : > { %2166 = vmatpush.bf16.msra.mxu0 %v2808_v49 }
 0x438   : > { %v1866_v6 = vadd.f32 %v1850_v55, %v1815_v50  ;;  %v1859_v50 = vunpack.c.l.bf16 %v3567_v37 }
 0x43a   : > { %v1882_v56 = vmax.f32 %v1866_v6, 0.0 }
 0x43c   : > { %v1896_v57 = vpack.c.bf16 %v1882_v56, %v1881_v51  ;;  %v1860_v51 = vunpack.c.l.bf16 %v3569_v39 }
 0x43d   : > { %v1817_v25 = vpop.f32.mrf.mxu2 }
 0x43e   : > { %1984 = vmatmul.bf16.gmra.mxu3 %v1896_v57  ;;  %v1818_v4 = vadd.f32 %v3628_v29, %v1817_v25 }
 0x440   : > { %v1867_v5 = vadd.f32 %v1851_v61, %v1818_v4  ;;  %v1861_v61 = vunpack.c.l.bf16 %v3577_v59  ;;  %v3668_v59 = vld [vmem:[%s3816_s10] ss:$0 sm:$0xff] }
 0x442   : > { %v1883_v9 = vmax.f32 %v1867_v5, 0.0 }
 0x445   : > { %v1819_v7 = vpop.f32.mrf.mxu2 }
 0x446   : > { %v1820_v27 = vadd.f32 %v3628_v29, %v1819_v7 }
 0x448   : > { %v1868_v1 = vadd.f32 %v1852_v63, %v1820_v27  ;;  %v1862_v27 = vunpack.c.l.bf16 %v3579_v60  ;;  %v2807_v63 = vld [vmem:[#allocation8] sm:$0xff] }
 0x449   : > { %2167 = vmatpush.bf16.msra.mxu0 %v2807_v63 }
 0x44a   : > { %v1884_v36 = vmax.f32 %v1868_v1, 0.0 }
 0x44c   : > { %v1897_v18 = vpack.c.bf16 %v1884_v36, %v1883_v9 }
 0x44d   : > { %v1822_v2 = vpop.f32.mrf.mxu2 }
 0x44e   : > { %1989 = vmatmul.bf16.gmra.mxu3 %v1897_v18  ;;  %v1823_v8 = vadd.f32 %v3628_v29, %v1822_v2 }
 0x450   : > { %v1869_v10 = vadd.f32 %v1853_v40, %v1823_v8 }
 0x452   : > { %v1885_v28 = vmax.f32 %v1869_v10, 0.0 }
 0x455   : > { %v1824_v24 = vpop.f32.mrf.mxu2 }
 0x456   : > { %v1825_v19 = vadd.f32 %v3628_v29, %v1824_v24 }
 0x458   : > { %v1870_v13 = vadd.f32 %v1854_v12, %v1825_v19 }
 0x45a   : > { %v1886_v14 = vmax.f32 %v1870_v13, 0.0 }
 0x45c   : > { %v1898_v15 = vpack.c.bf16 %v1886_v14, %v1885_v28 }
 0x45d   : > { %v1827_v42 = vpop.f32.mrf.mxu2 }
 0x45e   : > { %1994 = vmatmul.bf16.gmra.mxu3 %v1898_v15  ;;  %v1828_v20 = vadd.f32 %v3628_v29, %v1827_v42 }
 0x460   : > { %v1871_v34 = vadd.f32 %v1855_v23, %v1828_v20 }
 0x462   : > { %v1887_v46 = vmax.f32 %v1871_v34, 0.0 }
 0x465   : > { %v1829_v44 = vpop.f32.mrf.mxu2 }
 0x466   : > { %v1830_v26 = vadd.f32 %v3628_v29, %v1829_v44 }
 0x468   : > { %v1872_v30 = vadd.f32 %v1856_v53, %v1830_v26 }
 0x46a   : > { %v1888_v35 = vmax.f32 %v1872_v30, 0.0 }
 0x46c   : > { %v1899_v47 = vpack.c.bf16 %v1888_v35, %v1887_v46 }
 0x46d   : > { %v1832_v31 = vpop.f32.mrf.mxu2 }
 0x46e   : > { %1999 = vmatmul.bf16.gmra.mxu3 %v1899_v47  ;;  %v1833_v32 = vadd.f32 %v3628_v29, %v1832_v31 }
 0x470   : > { %v1873_v54 = vadd.f32 %v1857_v58, %v1833_v32 }
 0x472   : > { %v1889_v0 = vmax.f32 %v1873_v54, 0.0 }
 0x475   : > { %v1834_v62 = vpop.f32.mrf.mxu2 }
 0x476   : > { %v1835_v38 = vadd.f32 %v3628_v29, %v1834_v62 }
 0x478   : > { %v1874_v43 = vadd.f32 %v1858_v41, %v1835_v38 }
 0x47a   : > { %v1890_v52 = vmax.f32 %v1874_v43, 0.0 }
 0x47c   : > { %v1900_v45 = vpack.c.bf16 %v1890_v52, %v1889_v0 }
 0x47d   : > { %v1837_v3 = vpop.f32.mrf.mxu2 }
 0x47e   : > { %2004 = vmatmul.bf16.gmra.mxu3 %v1900_v45  ;;  %v1838_v48 = vadd.f32 %v3628_v29, %v1837_v3 }
 0x480   : > { %v1875_v55 = vadd.f32 %v1859_v50, %v1838_v48 }
 0x482   : > { %v1891_v21 = vmax.f32 %v1875_v55, 0.0 }
 0x485   : > { %v1839_v16 = vpop.f32.mrf.mxu2 }
 0x486   : > { %v1840_v6 = vadd.f32 %v3628_v29, %v1839_v16 }
 0x488   : > { %v1876_v56 = vadd.f32 %v1860_v51, %v1840_v6 }
 0x48a   : > { %v1892_v57 = vmax.f32 %v1876_v56, 0.0 }
 0x48c   : > { %v1901_v25 = vpack.c.bf16 %v1892_v57, %v1891_v21 }
 0x48d   : > { %v1842_v4 = vpop.f32.mrf.mxu2 }
 0x48e   : > { %2009 = vmatmul.bf16.gmra.mxu3 %v1901_v25  ;;  %v1843_v11 = vadd.f32 %v3628_v29, %v1842_v4 }
 0x490   : > { %v1877_v5 = vadd.f32 %v1861_v61, %v1843_v11 }
 0x492   : > { %v1893_v39 = vmax.f32 %v1877_v5, 0.0 }
 0x495   : > { %v1844_v7 = vpop.f32.mrf.mxu2 }
 0x496   : > { %v1845_v37 = vadd.f32 %v3628_v29, %v1844_v7 }
 0x498   : > { %v1878_v1 = vadd.f32 %v1862_v27, %v1845_v37 }
 0x49a   : > { %v1894_v9 = vmax.f32 %v1878_v1, 0.0 }
 0x49c   : > { %v1902_v36 = vpack.c.bf16 %v1894_v9, %v1893_v39 }
 0x49e   : > { %2014 = vmatmul.bf16.gmra.mxu3 %v1902_v36 }
 0x4b1   : > { %v1980_v29 = vpop.f32.mrf.mxu3 }
 0x4b2   : > { %v1981_v60 = vadd.f32 %v3668_v59, %v1980_v29 }
 0x4b4   : > { %vm2020_vm1 = vcmp.ge.f32.partialorder %v1981_v60, 0.0  ;;  %v2036_v18 = vmul.f32 0.01, %v1981_v60 }
 0x4b6   : > { %v2052_v2 = vsel %vm2020_vm1, %v1981_v60, %v2036_v18 }
 0x4b7   : > { %2068 = vst [vmem:[%s3674_s24] sm:$0xff] %v2052_v2 }
 0x4b9   : > { %v1982_v8 = vpop.f32.mrf.mxu3 }
 0x4ba   : > { %v1983_v17 = vadd.f32 %v3668_v59, %v1982_v8 }
 0x4bc   : > { %vm2021_vm2 = vcmp.ge.f32.partialorder %v1983_v17, 0.0  ;;  %v2037_v40 = vmul.f32 0.01, %v1983_v17 }
 0x4be   : > { %v2053_v24 = vsel %vm2021_vm2, %v1983_v17, %v2037_v40 }
 0x4bf   : > { %2069 = vst [vmem:[%s3674_s24 + $0x8] sm:$0xff] %v2053_v24  ;;  %v2084_v10 = vpack.c.bf16 %v2053_v24, %v2052_v2 }
 0x4c1   : > { %v1985_v19 = vpop.f32.mrf.mxu3  ;;  %2168 = vmatmul.bf16.vlgmr.msra.gmra.mxu0 %v2084_v10 }
 0x4c2   : > { %v1986_v12 = vadd.f32 %v3668_v59, %v1985_v19  ;;  %v3716_v19 = vld [vmem:[%s3844_s20] ss:$0 sm:$0xff] }
 0x4c4   : > { %v2038_v13 = vmul.f32 0.01, %v1986_v12  ;;  %vm2022_vm3 = vcmp.ge.f32.partialorder %v1986_v12, 0.0 }
 0x4c6   : > { %v2054_v28 = vsel %vm2022_vm3, %v1986_v12, %v2038_v13 }
 0x4c7   : > { %2070 = vst [vmem:[%s3674_s24 + $0x10] sm:$0xff] %v2054_v28 }
 0x4c9   : > { %v1987_v14 = vpop.f32.mrf.mxu3 }
 0x4ca   : > { %v1988_v15 = vadd.f32 %v3668_v59, %v1987_v14 }
 0x4cc   : > { %v2039_v42 = vmul.f32 0.01, %v1988_v15  ;;  %vm2023_vm4 = vcmp.ge.f32.partialorder %v1988_v15, 0.0 }
 0x4ce   : > { %v2055_v20 = vsel %vm2023_vm4, %v1988_v15, %v2039_v42 }
 0x4cf   : > { %2071 = vst [vmem:[%s3674_s24 + $0x18] sm:$0xff] %v2055_v20  ;;  %v2085_v22 = vpack.c.bf16 %v2055_v20, %v2054_v28 }
 0x4d1   : > { %v1990_v23 = vpop.f32.mrf.mxu3  ;;  %2173 = vmatmul.bf16.gmra.mxu0 %v2085_v22 }
 0x4d2   : > { %v1991_v44 = vadd.f32 %v3668_v59, %v1990_v23 }
 0x4d4   : > { %vm2024_vm5 = vcmp.ge.f32.partialorder %v1991_v44, 0.0  ;;  %v2040_v34 = vmul.f32 0.01, %v1991_v44 }
 0x4d6   : > { %v2056_v26 = vsel %vm2024_vm5, %v1991_v44, %v2040_v34 }
 0x4d7   : > { %2072 = vst [vmem:[%s3674_s24 + $0x20] sm:$0xff] %v2056_v26 }
 0x4d9   : > { %v1992_v53 = vpop.f32.mrf.mxu3 }
 0x4da   : > { %v1993_v30 = vadd.f32 %v3668_v59, %v1992_v53 }
 0x4dc   : > { %vm2025_vm6 = vcmp.ge.f32.partialorder %v1993_v30, 0.0  ;;  %v2041_v46 = vmul.f32 0.01, %v1993_v30 }
 0x4de   : > { %v2057_v35 = vsel %vm2025_vm6, %v1993_v30, %v2041_v46 }
 0x4df   : > { %2073 = vst [vmem:[%s3674_s24 + $0x28] sm:$0xff] %v2057_v35  ;;  %v2086_v47 = vpack.c.bf16 %v2057_v35, %v2056_v26 }
 0x4e1   : > { %v1995_v31 = vpop.f32.mrf.mxu3  ;;  %2178 = vmatmul.bf16.gmra.mxu0 %v2086_v47 }
 0x4e2   : > { %v1996_v32 = vadd.f32 %v3668_v59, %v1995_v31 }
 0x4e4   : > { %vm2026_vm7 = vcmp.ge.f32.partialorder %v1996_v32, 0.0  ;;  %v2042_v33 = vmul.f32 0.01, %v1996_v32 }
 0x4e6   : > { %v2058_v58 = vsel %vm2026_vm7, %v1996_v32, %v2042_v33 }
 0x4e7   : > { %2074 = vst [vmem:[%s3674_s24 + $0x30] sm:$0xff] %v2058_v58 }
 0x4e9   : > { %v1997_v62 = vpop.f32.mrf.mxu3 }
 0x4ea   : > { %v1998_v54 = vadd.f32 %v3668_v59, %v1997_v62 }
 0x4ec   : > { %vm2027_vm8 = vcmp.ge.f32.partialorder %v1998_v54, 0.0  ;;  %v2043_v38 = vmul.f32 0.01, %v1998_v54 }
 0x4ee   : > { %v2059_v41 = vsel %vm2027_vm8, %v1998_v54, %v2043_v38 }
 0x4ef   : > { %2075 = vst [vmem:[%s3674_s24 + $0x38] sm:$0xff] %v2059_v41  ;;  %v2087_v43 = vpack.c.bf16 %v2059_v41, %v2058_v58 }
 0x4f1   : > { %v2000_v0 = vpop.f32.mrf.mxu3  ;;  %2183 = vmatmul.bf16.gmra.mxu0 %v2087_v43 }
 0x4f2   : > { %v2001_v52 = vadd.f32 %v3668_v59, %v2000_v0 }
 0x4f4   : > { %vm2028_vm9 = vcmp.ge.f32.partialorder %v2001_v52, 0.0  ;;  %v2044_v45 = vmul.f32 0.01, %v2001_v52 }
 0x4f6   : > { %v2060_v3 = vsel %vm2028_vm9, %v2001_v52, %v2044_v45 }
 0x4f7   : > { %2076 = vst [vmem:[%s3674_s24 + $0x40] sm:$0xff] %v2060_v3 }
 0x4f9   : > { %v2002_v49 = vpop.f32.mrf.mxu3 }
 0x4fa   : > { %v2003_v48 = vadd.f32 %v3668_v59, %v2002_v49 }
 0x4fc   : > { %vm2029_vm10 = vcmp.ge.f32.partialorder %v2003_v48, 0.0  ;;  %v2045_v50 = vmul.f32 0.01, %v2003_v48 }
 0x4fe   : > { %v2061_v16 = vsel %vm2029_vm10, %v2003_v48, %v2045_v50 }
 0x4ff   : > { %2077 = vst [vmem:[%s3674_s24 + $0x48] sm:$0xff] %v2061_v16  ;;  %v2088_v55 = vpack.c.bf16 %v2061_v16, %v2060_v3 }
 0x501   : > { %v2005_v6 = vpop.f32.mrf.mxu3  ;;  %2188 = vmatmul.bf16.gmra.mxu0 %v2088_v55 }
 0x502   : > { %v2006_v51 = vadd.f32 %v3668_v59, %v2005_v6 }
 0x504   : > { %vm2030_vm11 = vcmp.ge.f32.partialorder %v2006_v51, 0.0  ;;  %v2046_v56 = vmul.f32 0.01, %v2006_v51 }
 0x506   : > { %v2062_v21 = vsel %vm2030_vm11, %v2006_v51, %v2046_v56 }
 0x507   : > { %2078 = vst [vmem:[%s3674_s24 + $0x50] sm:$0xff] %v2062_v21 }
 0x509   : > { %v2007_v57 = vpop.f32.mrf.mxu3 }
 0x50a   : > { %v2008_v25 = vadd.f32 %v3668_v59, %v2007_v57 }
 0x50c   : > { %vm2031_vm12 = vcmp.ge.f32.partialorder %v2008_v25, 0.0  ;;  %v2047_v4 = vmul.f32 0.01, %v2008_v25 }
 0x50e   : > { %v2063_v11 = vsel %vm2031_vm12, %v2008_v25, %v2047_v4 }
 0x50f   : > { %2079 = vst [vmem:[%s3674_s24 + $0x58] sm:$0xff] %v2063_v11  ;;  %v2089_v61 = vpack.c.bf16 %v2063_v11, %v2062_v21 }
 0x511   : > { %v2010_v7 = vpop.f32.mrf.mxu3  ;;  %2193 = vmatmul.bf16.gmra.mxu0 %v2089_v61 }
 0x512   : > { %v2011_v5 = vadd.f32 %v3668_v59, %v2010_v7 }
 0x514   : > { %vm2032_vm13 = vcmp.ge.f32.partialorder %v2011_v5, 0.0  ;;  %v2048_v37 = vmul.f32 0.01, %v2011_v5 }
 0x516   : > { %v2064_v27 = vsel %vm2032_vm13, %v2011_v5, %v2048_v37 }
 0x517   : > { %2080 = vst [vmem:[%s3674_s24 + $0x60] sm:$0xff] %v2064_v27 }
 0x519   : > { %v2012_v63 = vpop.f32.mrf.mxu3 }
 0x51a   : > { %v2013_v1 = vadd.f32 %v3668_v59, %v2012_v63 }
 0x51c   : > { %vm2033_vm14 = vcmp.ge.f32.partialorder %v2013_v1, 0.0  ;;  %v2049_v39 = vmul.f32 0.01, %v2013_v1 }
 0x51e   : > { %v2065_v9 = vsel %vm2033_vm14, %v2013_v1, %v2049_v39 }
 0x51f   : > { %2081 = vst [vmem:[%s3674_s24 + $0x68] sm:$0xff] %v2065_v9  ;;  %v2090_v36 = vpack.c.bf16 %v2065_v9, %v2064_v27 }
 0x521   : > { %v2015_v29 = vpop.f32.mrf.mxu3  ;;  %2198 = vmatmul.bf16.gmra.mxu0 %v2090_v36 }
 0x522   : > { %v2016_v60 = vadd.f32 %v3668_v59, %v2015_v29 }
 0x524   : > { %vm2034_vm15 = vcmp.ge.f32.partialorder %v2016_v60, 0.0  ;;  %v2050_v18 = vmul.f32 0.01, %v2016_v60 }
 0x526   : > { %v2066_v2 = vsel %vm2034_vm15, %v2016_v60, %v2050_v18 }
 0x527   : > { %2082 = vst [vmem:[%s3674_s24 + $0x70] sm:$0xff] %v2066_v2 }
 0x529   : > { %v2017_v8 = vpop.f32.mrf.mxu3 }
 0x52a   : > { %v2018_v17 = vadd.f32 %v3668_v59, %v2017_v8 }
 0x52c   : > { %vm2035_vm0 = vcmp.ge.f32.partialorder %v2018_v17, 0.0  ;;  %v2051_v40 = vmul.f32 0.01, %v2018_v17 }
 0x52e   : > { %v2067_v24 = vsel %vm2035_vm0, %v2018_v17, %v2051_v40 }
 0x52f   : > { %2083 = vst [vmem:[%s3674_s24 + $0x78] sm:$0xff] %v2067_v24  ;;  %v2091_v10 = vpack.c.bf16 %v2067_v24, %v2066_v2 }
 0x531   : > { %2203 = vmatmul.bf16.gmra.mxu0 %v2091_v10 }
 0x532   : > { %3065 = shalt.err (!%p3062_p8)
}
 0x533   : > { %s3152_s24 = smov 128   ;;  %s3153_s26 = smov 8  }
 0x534   : > { %2837 = dma.vmem_to_hbm [thread:$0]  (%p3267_p5), %s2261_s15, 2048, %s2263_s19, %s2231_s7, %s3152_s24, %s3152_s24, %s3153_s26  }
 0x535   : > { %s3736_s18 = scalar_lea.vmem [#allocation10], %s2411_s22  ;;  %s3845_s15 = sld [smem:[#allocation27_spill]] }
 0x536   : > { %s2243_s5 = sshll.u32 %s3736_s18, 4  ;;  %s2226_s29 = scalar_lea.sflag [#allocation4], %s3663_s13  ;;  %s2244_s5 = int_to_ptr.vmem [resolvable:$true] %s2243_s5 }
 0x53b   : > { %s3846_s19 = smov %s3845_s15  ;;  %s2242_s7 = scalar_lea.hbm %s3845_s15, %s2815_s25 }
 0x53c   : > { %s2245_s12 = sshll.u32 %s2242_s7, 4  ;;  %s3086_s25 = scalar_lea.hbm %s3846_s19, 256  ;;  %s2246_s12 = int_to_ptr.hbm [resolvable:$true] %s2245_s12 }
 0x53d   : > { %s3080_s16 = sshra.s32 %s2246_s12, 4  ;;  %s3081_s16 = int_to_ptr.hbm [resolvable:$true] %s3080_s16 }
 0x53e   : > { %v2169_v59 = vpop.f32.mrf.mxu0  ;;  %s3082_s28 = scalar_lea.hbm %s3081_s16, 128  ;;  %p3087_p12 = scmp.lt.s32.totalorder %s3081_s16, %s3846_s19 }
 0x53f   : > { %v2170_v12 = vadd.f32 %v3716_v19, %v2169_v59  ;;  %p3083_p9 = scmp.ne.s32.totalorder %s3081_s16, %s3082_s28  ;;  %p3088_p13 = scmp.lt.s32.totalorder %s3086_s25, %s3082_s28 }
 0x541   : > { %2209 = vst [vmem:[%s3736_s18] sm:$0xff] %v2170_v12  ;;  %p3084_p10 = pnand %p3083_p9, %p3267_p5  ;;  %p3089_p0 = por %p3088_p13, %p3087_p12 }
 0x543   : > { %p3085_p11 = pneg %p3084_p10 }
 0x545   : > { %p3090_p1 = pnand %p3089_p0, %p3085_p11 }
 0x546   : > { %v2171_v13 = vpop.f32.mrf.mxu0 }
 0x547   : > { %v2172_v28 = vadd.f32 %v3716_v19, %v2171_v13 }
 0x549   : > { %2210 = vst [vmem:[%s3736_s18 + $0x8] sm:$0xff] %v2172_v28 }
 0x54e   : > { %v2174_v14 = vpop.f32.mrf.mxu0 }
 0x54f   : > { %v2175_v15 = vadd.f32 %v3716_v19, %v2174_v14 }
 0x551   : > { %2211 = vst [vmem:[%s3736_s18 + $0x10] sm:$0xff] %v2175_v15 }
 0x556   : > { %v2176_v42 = vpop.f32.mrf.mxu0 }
 0x557   : > { %v2177_v20 = vadd.f32 %v3716_v19, %v2176_v42 }
 0x559   : > { %2212 = vst [vmem:[%s3736_s18 + $0x18] sm:$0xff] %v2177_v20 }
 0x55e   : > { %v2179_v22 = vpop.f32.mrf.mxu0 }
 0x55f   : > { %v2180_v23 = vadd.f32 %v3716_v19, %v2179_v22 }
 0x561   : > { %2213 = vst [vmem:[%s3736_s18 + $0x20] sm:$0xff] %v2180_v23 }
 0x566   : > { %v2181_v44 = vpop.f32.mrf.mxu0 }
 0x567   : > { %v2182_v34 = vadd.f32 %v3716_v19, %v2181_v44 }
 0x569   : > { %2214 = vst [vmem:[%s3736_s18 + $0x28] sm:$0xff] %v2182_v34 }
 0x56e   : > { %v2184_v26 = vpop.f32.mrf.mxu0 }
 0x56f   : > { %v2185_v53 = vadd.f32 %v3716_v19, %v2184_v26 }
 0x571   : > { %2215 = vst [vmem:[%s3736_s18 + $0x30] sm:$0xff] %v2185_v53 }
 0x576   : > { %v2186_v30 = vpop.f32.mrf.mxu0 }
 0x577   : > { %v2187_v46 = vadd.f32 %v3716_v19, %v2186_v30 }
 0x579   : > { %2216 = vst [vmem:[%s3736_s18 + $0x38] sm:$0xff] %v2187_v46 }
 0x57e   : > { %v2189_v35 = vpop.f32.mrf.mxu0 }
 0x57f   : > { %v2190_v47 = vadd.f32 %v3716_v19, %v2189_v35 }
 0x581   : > { %2217 = vst [vmem:[%s3736_s18 + $0x40] sm:$0xff] %v2190_v47 }
 0x586   : > { %v2191_v31 = vpop.f32.mrf.mxu0 }
 0x587   : > { %v2192_v32 = vadd.f32 %v3716_v19, %v2191_v31 }
 0x589   : > { %2218 = vst [vmem:[%s3736_s18 + $0x48] sm:$0xff] %v2192_v32 }
 0x58e   : > { %v2194_v33 = vpop.f32.mrf.mxu0 }
 0x58f   : > { %v2195_v58 = vadd.f32 %v3716_v19, %v2194_v33 }
 0x591   : > { %2219 = vst [vmem:[%s3736_s18 + $0x50] sm:$0xff] %v2195_v58 }
 0x596   : > { %v2196_v62 = vpop.f32.mrf.mxu0 }
 0x597   : > { %v2197_v54 = vadd.f32 %v3716_v19, %v2196_v62 }
 0x599   : > { %2220 = vst [vmem:[%s3736_s18 + $0x58] sm:$0xff] %v2197_v54 }
 0x59e   : > { %v2199_v38 = vpop.f32.mrf.mxu0 }
 0x59f   : > { %v2200_v41 = vadd.f32 %v3716_v19, %v2199_v38 }
 0x5a1   : > { %2221 = vst [vmem:[%s3736_s18 + $0x60] sm:$0xff] %v2200_v41 }
 0x5a6   : > { %v2201_v43 = vpop.f32.mrf.mxu0 }
 0x5a7   : > { %v2202_v0 = vadd.f32 %v3716_v19, %v2201_v43 }
 0x5a9   : > { %2222 = vst [vmem:[%s3736_s18 + $0x68] sm:$0xff] %v2202_v0 }
 0x5ae   : > { %v2204_v52 = vpop.f32.mrf.mxu0 }
 0x5af   : > { %v2205_v45 = vadd.f32 %v3716_v19, %v2204_v52 }
 0x5b1   : > { %2223 = vst [vmem:[%s3736_s18 + $0x70] sm:$0xff] %v2205_v45 }
 0x5b6   : > { %v2206_v3 = vpop.f32.mrf.mxu0 }
 0x5b7   : > { %v2207_v49 = vadd.f32 %v3716_v19, %v2206_v3 }
 0x5b9   : > { %2224 = vst [vmem:[%s3736_s18 + $0x78] sm:$0xff] %v2207_v49 }
 0x5ba   : > { %3093 = shalt.err (!%p3090_p1)
}
 0x5bb   : > { %2836 = dma.vmem_to_hbm [thread:$0]  (%p3267_p5), %s2244_s5, 2048, %s2246_s12, %s2226_s29, %s3152_s24, %s3152_s24, %s3153_s26  }
 0x5bc PF: > { %s3847_s13 = sld [smem:[#allocation20_spill]] }
 0x5bd   : > { %s3848_s18 = sld [smem:[#allocation18_spill]] }
 0x5c2   : > { %p2868_p2 = scmp.ge.s32.totalorder %s3847_s13, 2 }
 0x5c3   : > { %s2277_s15 = sand.u32 1, %s3848_s18  }
 0x5c4   : > { %p2854_p3 = pnand %p2868_p2, %p3271_p6  ;;  %s2278_s7 = scalar_lea.sflag [#allocation4], %s2277_s15 }
 0x5c6   : > { %p2855_p4 = pneg %p2854_p3 }
 0x5c8   : > { %3123 = dma.done.wait (%p2855_p4), %s2278_s7, 2048  }
 0x5c9   : > { %3125 = vsyncadd (%p2855_p4), %s2278_s7, 4294965248  ;;  %s2288_s16 = scalar_lea.sflag [#allocation12], %s2277_s15 }
 0x5ca   : > { %3127 = dma.done.wait (%p2855_p4), %s2288_s16, 2048  }
 0x5cb   : > { %3129 = vsyncadd (%p2855_p4), %s2288_s16, 4294965248  ;;  %s3850_s16 = sld [smem:[#allocation21_spill]]  ;;  %s3853_s29 = smov %s3136_s30 }
 0x5cc   : > { %s3851_s23 = sld [smem:[#allocation19_spill]] }
 0x5cd   : > { %s3852_s15 = sld [smem:[#allocation22_spill]] }
 0x5d1   : > { %p31_p5 = scmp.ge.s32.totalorder %s3850_s16, 4  }
 0x5d2   : > { %s3854_s30 = smov %s3851_s23 }
 0x5d3   :  { %33 = sbr.rel (!%p31_p5) target bundleno = 13 (0xd), region = 147 }
 0x5d8   :  { %2294 = vsyncpa [#allocation3], 1 }
 0x5d9   :  { %2296 = vsyncpa [#allocation3 + $0x1], 1 }
 0x5da   :  { %2297 = vsyncpa [#allocation6], 1 }
 0x5db   :  { %2298 = vsyncpa [#allocation9], 1 }
 0x5dc   :  { %2299 = vsyncpa [#allocation4], 1 }
 0x5dd   :  { %2301 = vsyncpa [#allocation4 + $0x1], 1 }
 0x5de   :  { %2302 = vsyncpa [#allocation12], 1 }
 0x5df   :  { %2304 = vsyncpa [#allocation12 + $0x1], 1 }

</bundles_post_ra>
